<compile_context>
chip_gen: v7x
topology: tpu7x:2x2x1
jax: 0.10.0
libtpu: 0.0.40
codegen_flags: <defaults>
</compile_context>

<pallas_src>
import functools

import numpy as np
import jax
import jax.numpy as jnp
from jax import lax
from jax.experimental import pallas as pl
from jax.experimental.pallas import tpu as pltpu


# ---------------------------------------------------------------------------
# Small helpers
# ---------------------------------------------------------------------------
def _is_pow2(n):
    return n > 0 and (n & (n - 1)) == 0


def _num_lane_groups(B, P, coarse_P=None):
    """Largest grid size G (dividing B, whole images per step) such that every
    lane-axis block is a >=256-wide multiple of 128 (coarse blocks >=128).
    Gives a 2-way 'parallel' grid for v7x whenever tensors are big enough;
    degenerates to G=1 (full-extent blocks) for tiny demo shapes."""
    for G in range(B, 1, -1):
        if B % G:
            continue
        n = B // G
        if (n * P) % 128 or (n * P) < 256:
            continue
        if coarse_P is not None and ((n * coarse_P) % 128 or (n * coarse_P) < 128):
            continue
        return G
    return 1


@functools.lru_cache(maxsize=None)
def _pool_matrix(B, H, W):
    """(B*H*W, B*(H//2)*(W//2)) matrix s.t. x_folded @ M == avg_pool2d(k=2)."""
    P = H * W
    Hc, Wc = H // 2, W // 2
    Pc = Hc * Wc
    qi = np.arange(B * P)
    b = qi // P
    p = qi % P
    h, w = p // W, p % W
    qo = b * Pc + (h // 2) * Wc + (w // 2)
    M = np.zeros((B * P, B * Pc), np.float32)
    M[qi, qo] = 0.25
    return M


@functools.lru_cache(maxsize=None)
def _upsample_matrix(B, Hc, Wc):
    """(B*Hc*Wc, B*2Hc*2Wc) bilinear x2 (align_corners=False), block-diag in B."""
    def axis_mat(N):
        dst = np.arange(2 * N, dtype=np.float32)
        src = np.maximum((dst + 0.5) * 0.5 - 0.5, 0.0)   # torch align_corners=False
        lo = np.floor(src).astype(np.int32)
        hi = np.minimum(lo + 1, N - 1)
        frac = (src - lo).astype(np.float32)
        i = np.arange(N)[:, None]
        return ((i == lo[None, :]) * (1.0 - frac)[None, :]
                + (i == hi[None, :]) * frac[None, :]).astype(np.float32)   # (N, 2N)

    Uh, Uw = axis_mat(Hc), axis_mat(Wc)
    Pc, Pf = Hc * Wc, 4 * Hc * Wc
    Uimg = (Uh[:, None, :, None] * Uw[None, :, None, :]).reshape(Pc, Pf)
    U = np.zeros((B * Pc, B * Pf), np.float32)
    for b in range(B):
        U[b * Pc:(b + 1) * Pc, b * Pf:(b + 1) * Pf] = Uimg
    return U


def to_folded(x_nchw):
    """(B, Ch, H, W) -> lane-dense (Ch, B*H*W) with batch packed on lanes."""
    B, Ch, H, W = x_nchw.shape
    return jnp.transpose(x_nchw.reshape(B, Ch, H * W), (1, 0, 2)).reshape(Ch, B * H * W)


def from_folded(xf, B, H, W):
    Ch = xf.shape[0]
    return jnp.transpose(xf.reshape(Ch, B, H * W), (1, 0, 2)).reshape(B, Ch, H, W)


# ---------------------------------------------------------------------------
# Pallas kernel: fused [bilinear-upsample] + 1x1 conv + softmax + per-pixel 3x3
# dynamic filtering (+ skip) + [avg-pool epilogue].  One grid step handles
# n_img whole images folded on the lane axis.
# ---------------------------------------------------------------------------
def _make_filter_stage_kernel(H, W, n_img, C, F, has_skip, has_up, has_pool, linear):
    P = H * W
    BP = n_img * P

    def kernel(*refs):
        it = iter(refs)
        f_ref = next(it)
        x_ref = next(it)
        skip_ref = next(it) if has_skip else None
        up_ref = next(it) if has_up else None
        pool_ref = next(it) if has_pool else None
        w_ref = next(it)
        b_ref = next(it)
        o_ref = next(it)
        pooled_ref = next(it) if has_pool else None

        # ---- 1x1 conv over channels on the MXU: (K, Cf) @ (Cf, BP) ----------
        logits = jnp.dot(w_ref[...], f_ref[...],
                         preferred_element_type=jnp.float32) + b_ref[...]

        # ---- activation on predicted coefficients ---------------------------
        if linear:
            k = logits                                   # ReLU applied after filtering
        else:
            m = jnp.max(logits, axis=0, keepdims=True)   # softmax over coeff axis
            e = jnp.exp(logits - m)
            k = e / jnp.sum(e, axis=0, keepdims=True)    # exact reciprocal (parity)

        # ---- fused bilinear x2 upsample of the coarse input (MXU) -----------
        if has_up:
            x = jnp.dot(x_ref[...], up_ref[...], preferred_element_type=jnp.float32)
        else:
            x = x_ref[...]                               # (C, BP), lane = pixel

        # ---- per-image boundary masks, built once (strength-reduced) --------
        q = lax.broadcasted_iota(jnp.int32, (1, BP), 1)
        p = (q & (P - 1)) if _is_pow2(P) else (q % P)
        h_idx = (p >> (W.bit_length() - 1)) if _is_pow2(W) else (p // W)
        w_idx = (p & (W - 1)) if _is_pow2(W) else (p % W)
        m_top = h_idx >= 1
        m_bot = h_idx < (H - 1)
        m_lef = w_idx >= 1
        m_rig = w_idx < (W - 1)

        skip_val = skip_ref[...] if has_skip else None
        k_skip = k[F * 9:F * 9 + 1, :] if has_skip else None

        # ---- taps-outer / filters-inner: one rolled slab live at a time -----
        accs = [None] * F
        for t in range(9):                               # row-major 3x3 taps
            dv, du = t // 3 - 1, t % 3 - 1
            s = dv * W + du                              # flattened pixel shift
            tap = x if s == 0 else pltpu.roll(x, shift=(-s) % BP, axis=1)
            mask = None
            if dv == 1:
                mask = m_bot
            elif dv == -1:
                mask = m_top
            if du == 1:
                mask = m_rig if mask is None else jnp.logical_and(mask, m_rig)
            elif du == -1:
                mask = m_lef if mask is None else jnp.logical_and(mask, m_lef)
            if mask is not None:
                tap = jnp.where(mask, tap, 0.0)          # zero-padding semantics
            for fi in range(F):
                term = k[fi * 9 + t:fi * 9 + t + 1, :] * tap   # (1,BP) bcast over C
                accs[fi] = term if accs[fi] is None else accs[fi] + term

        if has_skip:                                     # skip stages have F == 1
            for fi in range(F):
                accs[fi] = accs[fi] + k_skip * skip_val
        if linear:
            accs = [jnp.maximum(a, 0.0) for a in accs]   # ReLU after skip add

        # ---- single aligned (F*C, BP) store ---------------------------------
        out_block = accs[0] if F == 1 else jnp.concatenate(accs, axis=0)
        o_ref[...] = out_block.astype(o_ref.dtype)

        # ---- fused avg_pool2d(k=2) epilogue (MXU) ----------------------------
        if has_pool:
            pooled = jnp.dot(out_block, pool_ref[...],
                             preferred_element_type=jnp.float32)
            pooled_ref[...] = pooled.astype(pooled_ref.dtype)

    return kernel


def filter_stage3x3(features, x, stage, *, B, H, W, skip=None,
                    pool=False, upsample=False, linear=False):
    """FilterStage3x3.forward on folded (channels, B*H*W) tensors.

    features: (Cf, B*H*W).  x: (C, B*H*W), or (C, B*(H//2)*(W//2)) if
    upsample=True (bilinear x2 fused into the prologue).  skip: (C, B*H*W).
    Returns out (F*C, B*H*W), plus avg-pooled (F*C, B*(H//2)*(W//2)) if pool.
    """
    Cf = features.shape[0]
    C = x.shape[0]
    F = stage["num_filters"]
    has_skip = stage["has_skip"]
    K = F * 9 + (1 if has_skip else 0)
    P = H * W
    Pc = (H // 2) * (W // 2)
    w, b = stage["w"], stage["b"]

    assert w.shape == (K, Cf) and b.shape == (K, 1)
    assert (skip is not None) == has_skip
    assert not (has_skip and F != 1)          # torch only builds skip stages with F == 1
    assert features.shape == (Cf, B * P)
    if pool or upsample:
        assert H % 2 == 0 and W % 2 == 0
    assert x.shape == (C, B * Pc if upsample else B * P)
    if has_skip:
        assert skip.shape == (C, B * P)

    G = _num_lane_groups(B, P, Pc if (pool or upsample) else None)
    n = B // G                                # whole images per grid step
    BPg, BPcg = n * P, n * Pc

    inputs = [features, x]
    in_specs = [
        pl.BlockSpec((Cf, BPg), lambda g: (0, g)),
        pl.BlockSpec((C, BPcg if upsample else BPg), lambda g: (0, g)),
    ]
    if has_skip:
        inputs.append(skip)
        in_specs.append(pl.BlockSpec((C, BPg), lambda g: (0, g)))
    if upsample:
        inputs.append(_upsample_matrix(B, H // 2, W // 2))
        in_specs.append(pl.BlockSpec((BPcg, BPg), lambda g: (g, g)))   # block-diag in B
    if pool:
        inputs.append(_pool_matrix(B, H, W))
        in_specs.append(pl.BlockSpec((BPg, BPcg), lambda g: (g, g)))   # block-diag in B
    inputs += [w, b]
    in_specs += [
        pl.BlockSpec((K, Cf), lambda g: (0, 0)),
        pl.BlockSpec((K, 1), lambda g: (0, 0)),
    ]

    out_shapes = [jax.ShapeDtypeStruct((F * C, B * P), jnp.float32)]
    out_specs = [pl.BlockSpec((F * C, BPg), lambda g: (0, g))]
    if pool:
        out_shapes.append(jax.ShapeDtypeStruct((F * C, B * Pc), jnp.float32))
        out_specs.append(pl.BlockSpec((F * C, BPcg), lambda g: (0, g)))

    kernel = _make_filter_stage_kernel(H, W, n, C, F, has_skip, upsample, pool, linear)

    flops = 2 * B * P * (Cf * K + 9 * F * C + (C if has_skip else 0))
    if upsample:
        flops += 2 * C * BPcg * BPg * G
    if pool:
        flops += 2 * F * C * BPg * BPcg * G
    bytes_accessed = 4 * (Cf * B * P
                          + C * (B * Pc if upsample else B * P)
                          + (C * B * P if has_skip else 0)
                          + F * C * B * P
                          + (F * C * B * Pc if pool else 0)
                          + (BPg * BPcg * G if (pool or upsample) else 0)
                          + K * (Cf + 1))
    transcendentals = 0 if linear else B * P * K

    call = pl.pallas_call(
        kernel,
        out_shape=tuple(out_shapes) if pool else out_shapes[0],
        grid=(G,),
        in_specs=in_specs,
        out_specs=tuple(out_specs) if pool else out_specs[0],
        compiler_params=pltpu.CompilerParams(
            dimension_semantics=("parallel",),      # >=2 steps feeds both v7x TCs
        ),
        cost_estimate=pl.CostEstimate(
            flops=flops,
            transcendentals=transcendentals,
            bytes_accessed=bytes_accessed,
        ),
    )
    out = call(*inputs)
    return out if pool else out


# ---------------------------------------------------------------------------
# Parameter construction (deterministic) mirroring FilterNetwork.__init__
# ---------------------------------------------------------------------------
def _init_stage(key, num_features, num_filters, has_skip):
    K = num_filters * 9 + (1 if has_skip else 0)
    w = 0.1 * jax.random.normal(key, (K, num_features), jnp.float32)
    b = jnp.zeros((K, 1), jnp.float32)                   # conv.bias.data.fill_(0)
    return {"w": w, "b": b, "num_filters": num_filters, "has_skip": has_skip}


def build_filter_network_params(key, model_config, size_in, depth=0):
    enc_config = model_config["encoder_stages"]
    depth_n = depth + 1
    if depth_n < len(enc_config):
        dec_size = model_config["decoder_stages"][depth][0]
        k1, k2, k3 = jax.random.split(key, 3)
        num_filters_dwn = 2 if depth == 0 else 1
        return {
            "dwn": _init_stage(k1, dec_size, num_filters_dwn, has_skip=False),
            "child": build_filter_network_params(k2, model_config, size_in, depth_n),
            "ups": _init_stage(k3, dec_size, 1, has_skip=True),
        }
    else:
        enc_size = enc_config[depth][0]
        return {"dwn": _init_stage(key, enc_size, 1, has_skip=False), "child": None}


# ---------------------------------------------------------------------------
# FilterNetwork.forward (recursive), on folded (channels, B*H*W) tensors.
# ---------------------------------------------------------------------------
def filter_network_forward(params, f_list, x, *, B, H, W, shuffle_size=1, linear=False):
    features = f_list.pop()
    if shuffle_size > 1:
        # TODO(synk): nearest-neighbour feature upsample kept as plain JAX
        # (unused at shuffle_size == 1); fuse into the stage prologue if needed.
        Cf = features.shape[0]
        Hs, Ws = H // shuffle_size, W // shuffle_size
        f4 = features.reshape(Cf, B, Hs, Ws)
        f4 = jnp.repeat(jnp.repeat(f4, shuffle_size, axis=2), shuffle_size, axis=3)
        features = f4.reshape(Cf, B * H * W)

    if params["child"] is not None:
        # dwn stage with avg_pool2d(k=2) fused into the epilogue.
        x1, yr = filter_stage3x3(features, x, params["dwn"], B=B, H=H, W=W,
                                 pool=True, linear=linear)
        yc = filter_network_forward(params["child"], f_list, yr,
                                    B=B, H=H // 2, W=W // 2,
                                    shuffle_size=shuffle_size, linear=linear)
        # ups stage with bilinear x2 upsample fused into the prologue.
        return filter_stage3x3(features, yc, params["ups"], B=B, H=H, W=W,
                               skip=x1, upsample=True, linear=linear)
    return filter_stage3x3(features, x, params["dwn"], B=B, H=H, W=W, linear=linear)


# ---------------------------------------------------------------------------
if __name__ == "__main__":
    key = jax.random.PRNGKey(0)
    B, size_in, H, W = 2, 8, 16, 16
    C = size_in // 2                                     # red_size = size_in // 2

    model_config = {
        "encoder_stages": [[8], [16]],
        "decoder_stages": [[8]],
        # "linear_kernel": False  (default path -> softmax)
    }
    linear = model_config.get("linear_kernel", False)

    kx, kf0, kf1, kp = jax.random.split(key, 4)
    # torch-convention NCHW inputs; folded to the lane-dense layout inside run().
    x_nchw = jax.random.normal(kx, (B, C, H, W), jnp.float32)
    feat_d0 = jax.random.normal(
        kf0, (B, model_config["decoder_stages"][0][0], H, W), jnp.float32)
    feat_d1 = jax.random.normal(
        kf1, (B, model_config["encoder_stages"][1][0], H // 2, W // 2), jnp.float32)

    params = build_filter_network_params(kp, model_config, size_in, depth=0)

    @jax.jit
    def run(feat_coarse, feat_fine, x):
        # Feature list popped from the back (finest decoder feature last), as in torch.
        f_list = [to_folded(feat_coarse), to_folded(feat_fine)]
        y = filter_network_forward(params, f_list, to_folded(x),
                                   B=B, H=H, W=W, shuffle_size=1, linear=linear)
        return from_folded(y, B, H, W)

    y_nchw = run(feat_d1, feat_d0, x_nchw)               # (2, 8, 16, 16)
    jax.block_until_ready(y_nchw)
    assert y_nchw.shape == (B, 2 * C, H, W)
    print("KERNEL_OK")
</pallas_src>

<mosaic_0001>
module attributes {stable_mosaic.version = 11 : i64} {
  func.func @kernel(%arg0: i32, %arg1: memref<8x512xf32, #tpu.memory_space<vmem>>, %arg2: memref<4x512xf32, #tpu.memory_space<vmem>>, %arg3: memref<512x128xf32, #tpu.memory_space<vmem>>, %arg4: memref<18x8xf32, #tpu.memory_space<vmem>>, %arg5: memref<18x1xf32, #tpu.memory_space<vmem>>, %arg6: memref<8x512xf32, #tpu.memory_space<vmem>>, %arg7: memref<8x128xf32, #tpu.memory_space<vmem>>) attributes {dimension_semantics = [#tpu.dimension_semantics<parallel>], iteration_bounds = array<i64: 1>, scalar_prefetch = 0 : i64, scratch_operands = 0 : i64, tpu.core_type = #tpu.core_type<tc>, window_params = [{transform_indices = @transform_0, window_bounds = array<i64: 8, 512>}, {transform_indices = @transform_1, window_bounds = array<i64: 4, 512>}, {transform_indices = @transform_2, window_bounds = array<i64: 512, 128>}, {pipeline_mode = #tpu.pipeline_mode<synchronous>, transform_indices = @transform_3, window_bounds = array<i64: 18, 8>}, {pipeline_mode = #tpu.pipeline_mode<synchronous>, transform_indices = @transform_4, window_bounds = array<i64: 18, 1>}, {transform_indices = @transform_5, window_bounds = array<i64: 8, 512>}, {transform_indices = @transform_6, window_bounds = array<i64: 8, 128>}]} {
    %c0 = arith.constant 0 : index
    %c0_0 = arith.constant 0 : index
    %0 = vector.load %arg4[%c0, %c0_0] : memref<18x8xf32, #tpu.memory_space<vmem>>, vector<18x8xf32>
    %c0_1 = arith.constant 0 : index
    %c0_2 = arith.constant 0 : index
    %1 = vector.load %arg1[%c0_1, %c0_2] : memref<8x512xf32, #tpu.memory_space<vmem>>, vector<8x512xf32>
    %cst = arith.constant dense<0.000000e+00> : vector<18x512xf32>
    %2 = tpu.matmul %0, %1, %cst {dimension_numbers = #tpu.dot_dimension_numbers<[1], [0], [0], [1], [0, 0, 1, 1], [], []>} : vector<18x8xf32>, vector<8x512xf32>, vector<18x512xf32> -> vector<18x512xf32>
    %c0_3 = arith.constant 0 : index
    %c0_4 = arith.constant 0 : index
    %3 = vector.load %arg5[%c0_3, %c0_4] : memref<18x1xf32, #tpu.memory_space<vmem>>, vector<18x1xf32>
    %4 = vector.broadcast %3 : vector<18x1xf32> to vector<18x512xf32>
    %5 = arith.addf %2, %4 : vector<18x512xf32>
    %cst_5 = arith.constant dense<0xFF800000> : vector<512xf32>
    %6 = vector.multi_reduction <maximumf>, %5, %cst_5 [0] : vector<18x512xf32> to vector<512xf32>
    %7 = vector.shape_cast %6 : vector<512xf32> to vector<1x512xf32>
    %8 = vector.broadcast %7 : vector<1x512xf32> to vector<18x512xf32>
    %9 = arith.subf %5, %8 : vector<18x512xf32>
    %10 = math.exp %9 : vector<18x512xf32>
    %cst_6 = arith.constant dense<0.000000e+00> : vector<512xf32>
    %11 = vector.multi_reduction <add>, %10, %cst_6 [0] : vector<18x512xf32> to vector<512xf32>
    %12 = vector.shape_cast %11 : vector<512xf32> to vector<1x512xf32>
    %13 = vector.broadcast %12 : vector<1x512xf32> to vector<18x512xf32>
    %14 = arith.divf %10, %13 : vector<18x512xf32>
    %c0_7 = arith.constant 0 : index
    %c0_8 = arith.constant 0 : index
    %15 = vector.load %arg2[%c0_7, %c0_8] : memref<4x512xf32, #tpu.memory_space<vmem>>, vector<4x512xf32>
    %16 = tpu.iota {dimensions = array<i32: 1>} : vector<1x512xi32>
    %c255_i32 = arith.constant 255 : i32
    %17 = vector.broadcast %c255_i32 : i32 to vector<1x512xi32>
    %18 = arith.andi %16, %17 : vector<1x512xi32>
    %c4_i32 = arith.constant 4 : i32
    %19 = vector.broadcast %c4_i32 : i32 to vector<1x512xi32>
    %20 = arith.shrsi %18, %19 : vector<1x512xi32>
    %c15_i32 = arith.constant 15 : i32
    %21 = vector.broadcast %c15_i32 : i32 to vector<1x512xi32>
    %22 = arith.andi %18, %21 : vector<1x512xi32>
    %c1_i32 = arith.constant 1 : i32
    %23 = vector.broadcast %c1_i32 : i32 to vector<1x512xi32>
    %24 = arith.cmpi sge, %20, %23 : vector<1x512xi32>
    %c15_i32_9 = arith.constant 15 : i32
    %25 = vector.broadcast %c15_i32_9 : i32 to vector<1x512xi32>
    %26 = arith.cmpi slt, %20, %25 : vector<1x512xi32>
    %c1_i32_10 = arith.constant 1 : i32
    %27 = vector.broadcast %c1_i32_10 : i32 to vector<1x512xi32>
    %28 = arith.cmpi sge, %22, %27 : vector<1x512xi32>
    %c15_i32_11 = arith.constant 15 : i32
    %29 = vector.broadcast %c15_i32_11 : i32 to vector<1x512xi32>
    %30 = arith.cmpi slt, %22, %29 : vector<1x512xi32>
    %c17_i32 = arith.constant 17 : i32
    %31 = tpu.dynamic_rotate %15 by %c17_i32 dim 1 : vector<4x512xf32>, i32 -> vector<4x512xf32>
    %32 = arith.andi %24, %28 : vector<1x512xi1>
    %cst_12 = arith.constant 0.000000e+00 : f32
    %33 = vector.shape_cast %32 : vector<1x512xi1> to vector<1x512xi1>
    %34 = vector.broadcast %33 : vector<1x512xi1> to vector<4x512xi1>
    %35 = vector.broadcast %cst_12 : f32 to vector<4x512xf32>
    %36 = arith.select %34, %31, %35 : vector<4x512xi1>, vector<4x512xf32>
    %37 = vector.extract_strided_slice %14 {offsets = [0, 0], sizes = [1, 512], strides = [1, 1]} : vector<18x512xf32> to vector<1x512xf32>
    %38 = vector.broadcast %37 : vector<1x512xf32> to vector<4x512xf32>
    %39 = arith.mulf %38, %36 : vector<4x512xf32>
    %40 = vector.extract_strided_slice %14 {offsets = [9, 0], sizes = [1, 512], strides = [1, 1]} : vector<18x512xf32> to vector<1x512xf32>
    %41 = vector.broadcast %40 : vector<1x512xf32> to vector<4x512xf32>
    %42 = arith.mulf %41, %36 : vector<4x512xf32>
    %c16_i32 = arith.constant 16 : i32
    %43 = tpu.dynamic_rotate %15 by %c16_i32 dim 1 : vector<4x512xf32>, i32 -> vector<4x512xf32>
    %cst_13 = arith.constant 0.000000e+00 : f32
    %44 = vector.shape_cast %24 : vector<1x512xi1> to vector<1x512xi1>
    %45 = vector.broadcast %44 : vector<1x512xi1> to vector<4x512xi1>
    %46 = vector.broadcast %cst_13 : f32 to vector<4x512xf32>
    %47 = arith.select %45, %43, %46 : vector<4x512xi1>, vector<4x512xf32>
    %48 = vector.extract_strided_slice %14 {offsets = [1, 0], sizes = [1, 512], strides = [1, 1]} : vector<18x512xf32> to vector<1x512xf32>
    %49 = vector.broadcast %48 : vector<1x512xf32> to vector<4x512xf32>
    %50 = arith.mulf %49, %47 : vector<4x512xf32>
    %51 = arith.addf %39, %50 : vector<4x512xf32>
    %52 = vector.extract_strided_slice %14 {offsets = [10, 0], sizes = [1, 512], strides = [1, 1]} : vector<18x512xf32> to vector<1x512xf32>
    %53 = vector.broadcast %52 : vector<1x512xf32> to vector<4x512xf32>
    %54 = arith.mulf %53, %47 : vector<4x512xf32>
    %55 = arith.addf %42, %54 : vector<4x512xf32>
    %c15_i32_14 = arith.constant 15 : i32
    %56 = tpu.dynamic_rotate %15 by %c15_i32_14 dim 1 : vector<4x512xf32>, i32 -> vector<4x512xf32>
    %57 = arith.andi %24, %30 : vector<1x512xi1>
    %cst_15 = arith.constant 0.000000e+00 : f32
    %58 = vector.shape_cast %57 : vector<1x512xi1> to vector<1x512xi1>
    %59 = vector.broadcast %58 : vector<1x512xi1> to vector<4x512xi1>
    %60 = vector.broadcast %cst_15 : f32 to vector<4x512xf32>
    %61 = arith.select %59, %56, %60 : vector<4x512xi1>, vector<4x512xf32>
    %62 = vector.extract_strided_slice %14 {offsets = [2, 0], sizes = [1, 512], strides = [1, 1]} : vector<18x512xf32> to vector<1x512xf32>
    %63 = vector.broadcast %62 : vector<1x512xf32> to vector<4x512xf32>
    %64 = arith.mulf %63, %61 : vector<4x512xf32>
    %65 = arith.addf %51, %64 : vector<4x512xf32>
    %66 = vector.extract_strided_slice %14 {offsets = [11, 0], sizes = [1, 512], strides = [1, 1]} : vector<18x512xf32> to vector<1x512xf32>
    %67 = vector.broadcast %66 : vector<1x512xf32> to vector<4x512xf32>
    %68 = arith.mulf %67, %61 : vector<4x512xf32>
    %69 = arith.addf %55, %68 : vector<4x512xf32>
    %c1_i32_16 = arith.constant 1 : i32
    %70 = tpu.dynamic_rotate %15 by %c1_i32_16 dim 1 : vector<4x512xf32>, i32 -> vector<4x512xf32>
    %cst_17 = arith.constant 0.000000e+00 : f32
    %71 = vector.shape_cast %28 : vector<1x512xi1> to vector<1x512xi1>
    %72 = vector.broadcast %71 : vector<1x512xi1> to vector<4x512xi1>
    %73 = vector.broadcast %cst_17 : f32 to vector<4x512xf32>
    %74 = arith.select %72, %70, %73 : vector<4x512xi1>, vector<4x512xf32>
    %75 = vector.extract_strided_slice %14 {offsets = [3, 0], sizes = [1, 512], strides = [1, 1]} : vector<18x512xf32> to vector<1x512xf32>
    %76 = vector.broadcast %75 : vector<1x512xf32> to vector<4x512xf32>
    %77 = arith.mulf %76, %74 : vector<4x512xf32>
    %78 = arith.addf %65, %77 : vector<4x512xf32>
    %79 = vector.extract_strided_slice %14 {offsets = [12, 0], sizes = [1, 512], strides = [1, 1]} : vector<18x512xf32> to vector<1x512xf32>
    %80 = vector.broadcast %79 : vector<1x512xf32> to vector<4x512xf32>
    %81 = arith.mulf %80, %74 : vector<4x512xf32>
    %82 = arith.addf %69, %81 : vector<4x512xf32>
    %83 = vector.extract_strided_slice %14 {offsets = [4, 0], sizes = [1, 512], strides = [1, 1]} : vector<18x512xf32> to vector<1x512xf32>
    %84 = vector.broadcast %83 : vector<1x512xf32> to vector<4x512xf32>
    %85 = arith.mulf %84, %15 : vector<4x512xf32>
    %86 = arith.addf %78, %85 : vector<4x512xf32>
    %87 = vector.extract_strided_slice %14 {offsets = [13, 0], sizes = [1, 512], strides = [1, 1]} : vector<18x512xf32> to vector<1x512xf32>
    %88 = vector.broadcast %87 : vector<1x512xf32> to vector<4x512xf32>
    %89 = arith.mulf %88, %15 : vector<4x512xf32>
    %90 = arith.addf %82, %89 : vector<4x512xf32>
    %c511_i32 = arith.constant 511 : i32
    %91 = tpu.dynamic_rotate %15 by %c511_i32 dim 1 : vector<4x512xf32>, i32 -> vector<4x512xf32>
    %cst_18 = arith.constant 0.000000e+00 : f32
    %92 = vector.shape_cast %30 : vector<1x512xi1> to vector<1x512xi1>
    %93 = vector.broadcast %92 : vector<1x512xi1> to vector<4x512xi1>
    %94 = vector.broadcast %cst_18 : f32 to vector<4x512xf32>
    %95 = arith.select %93, %91, %94 : vector<4x512xi1>, vector<4x512xf32>
    %96 = vector.extract_strided_slice %14 {offsets = [5, 0], sizes = [1, 512], strides = [1, 1]} : vector<18x512xf32> to vector<1x512xf32>
    %97 = vector.broadcast %96 : vector<1x512xf32> to vector<4x512xf32>
    %98 = arith.mulf %97, %95 : vector<4x512xf32>
    %99 = arith.addf %86, %98 : vector<4x512xf32>
    %100 = vector.extract_strided_slice %14 {offsets = [14, 0], sizes = [1, 512], strides = [1, 1]} : vector<18x512xf32> to vector<1x512xf32>
    %101 = vector.broadcast %100 : vector<1x512xf32> to vector<4x512xf32>
    %102 = arith.mulf %101, %95 : vector<4x512xf32>
    %103 = arith.addf %90, %102 : vector<4x512xf32>
    %c497_i32 = arith.constant 497 : i32
    %104 = tpu.dynamic_rotate %15 by %c497_i32 dim 1 : vector<4x512xf32>, i32 -> vector<4x512xf32>
    %105 = arith.andi %26, %28 : vector<1x512xi1>
    %cst_19 = arith.constant 0.000000e+00 : f32
    %106 = vector.shape_cast %105 : vector<1x512xi1> to vector<1x512xi1>
    %107 = vector.broadcast %106 : vector<1x512xi1> to vector<4x512xi1>
    %108 = vector.broadcast %cst_19 : f32 to vector<4x512xf32>
    %109 = arith.select %107, %104, %108 : vector<4x512xi1>, vector<4x512xf32>
    %110 = vector.extract_strided_slice %14 {offsets = [6, 0], sizes = [1, 512], strides = [1, 1]} : vector<18x512xf32> to vector<1x512xf32>
    %111 = vector.broadcast %110 : vector<1x512xf32> to vector<4x512xf32>
    %112 = arith.mulf %111, %109 : vector<4x512xf32>
    %113 = arith.addf %99, %112 : vector<4x512xf32>
    %114 = vector.extract_strided_slice %14 {offsets = [15, 0], sizes = [1, 512], strides = [1, 1]} : vector<18x512xf32> to vector<1x512xf32>
    %115 = vector.broadcast %114 : vector<1x512xf32> to vector<4x512xf32>
    %116 = arith.mulf %115, %109 : vector<4x512xf32>
    %117 = arith.addf %103, %116 : vector<4x512xf32>
    %c496_i32 = arith.constant 496 : i32
    %118 = tpu.dynamic_rotate %15 by %c496_i32 dim 1 : vector<4x512xf32>, i32 -> vector<4x512xf32>
    %cst_20 = arith.constant 0.000000e+00 : f32
    %119 = vector.shape_cast %26 : vector<1x512xi1> to vector<1x512xi1>
    %120 = vector.broadcast %119 : vector<1x512xi1> to vector<4x512xi1>
    %121 = vector.broadcast %cst_20 : f32 to vector<4x512xf32>
    %122 = arith.select %120, %118, %121 : vector<4x512xi1>, vector<4x512xf32>
    %123 = vector.extract_strided_slice %14 {offsets = [7, 0], sizes = [1, 512], strides = [1, 1]} : vector<18x512xf32> to vector<1x512xf32>
    %124 = vector.broadcast %123 : vector<1x512xf32> to vector<4x512xf32>
    %125 = arith.mulf %124, %122 : vector<4x512xf32>
    %126 = arith.addf %113, %125 : vector<4x512xf32>
    %127 = vector.extract_strided_slice %14 {offsets = [16, 0], sizes = [1, 512], strides = [1, 1]} : vector<18x512xf32> to vector<1x512xf32>
    %128 = vector.broadcast %127 : vector<1x512xf32> to vector<4x512xf32>
    %129 = arith.mulf %128, %122 : vector<4x512xf32>
    %130 = arith.addf %117, %129 : vector<4x512xf32>
    %c495_i32 = arith.constant 495 : i32
    %131 = tpu.dynamic_rotate %15 by %c495_i32 dim 1 : vector<4x512xf32>, i32 -> vector<4x512xf32>
    %132 = arith.andi %26, %30 : vector<1x512xi1>
    %cst_21 = arith.constant 0.000000e+00 : f32
    %133 = vector.shape_cast %132 : vector<1x512xi1> to vector<1x512xi1>
    %134 = vector.broadcast %133 : vector<1x512xi1> to vector<4x512xi1>
    %135 = vector.broadcast %cst_21 : f32 to vector<4x512xf32>
    %136 = arith.select %134, %131, %135 : vector<4x512xi1>, vector<4x512xf32>
    %137 = vector.extract_strided_slice %14 {offsets = [8, 0], sizes = [1, 512], strides = [1, 1]} : vector<18x512xf32> to vector<1x512xf32>
    %138 = vector.broadcast %137 : vector<1x512xf32> to vector<4x512xf32>
    %139 = arith.mulf %138, %136 : vector<4x512xf32>
    %140 = arith.addf %126, %139 : vector<4x512xf32>
    %141 = vector.extract_strided_slice %14 {offsets = [17, 0], sizes = [1, 512], strides = [1, 1]} : vector<18x512xf32> to vector<1x512xf32>
    %142 = vector.broadcast %141 : vector<1x512xf32> to vector<4x512xf32>
    %143 = arith.mulf %142, %136 : vector<4x512xf32>
    %144 = arith.addf %130, %143 : vector<4x512xf32>
    %145 = tpu.concatenate %140, %144 in 0 : vector<4x512xf32>, vector<4x512xf32> -> vector<8x512xf32>
    %c0_22 = arith.constant 0 : index
    %c0_23 = arith.constant 0 : index
    %146 = vector.load %arg6[%c0_22, %c0_23] : memref<8x512xf32, #tpu.memory_space<vmem>>, vector<8x512xf32>
    tpu.vector_store %arg6[%c0_22, %c0_23], %145 {strides = array<i32>} : memref<8x512xf32, #tpu.memory_space<vmem>>, vector<8x512xf32>,
    %c0_24 = arith.constant 0 : index
    %c0_25 = arith.constant 0 : index
    %147 = vector.load %arg3[%c0_24, %c0_25] : memref<512x128xf32, #tpu.memory_space<vmem>>, vector<512x128xf32>
    %cst_26 = arith.constant dense<0.000000e+00> : vector<8x128xf32>
    %148 = tpu.matmul %145, %147, %cst_26 {dimension_numbers = #tpu.dot_dimension_numbers<[1], [0], [0], [1], [0, 0, 1, 1], [], []>} : vector<8x512xf32>, vector<512x128xf32>, vector<8x128xf32> -> vector<8x128xf32>
    %c0_27 = arith.constant 0 : index
    %c0_28 = arith.constant 0 : index
    %149 = vector.load %arg7[%c0_27, %c0_28] : memref<8x128xf32, #tpu.memory_space<vmem>>, vector<8x128xf32>
    tpu.vector_store %arg7[%c0_27, %c0_28], %148 {strides = array<i32>} : memref<8x128xf32, #tpu.memory_space<vmem>>, vector<8x128xf32>,
    return
  }
  func.func @transform_0(%arg0: i32) -> (i32, i32) {
    %c0_i32 = arith.constant 0 : i32
    %c0_i32_0 = arith.constant 0 : i32
    return %c0_i32, %arg0 : i32, i32
  }
  func.func @transform_1(%arg0: i32) -> (i32, i32) {
    %c0_i32 = arith.constant 0 : i32
    %c0_i32_0 = arith.constant 0 : i32
    return %c0_i32, %arg0 : i32, i32
  }
  func.func @transform_2(%arg0: i32) -> (i32, i32) {
    %c0_i32 = arith.constant 0 : i32
    return %arg0, %arg0 : i32, i32
  }
  func.func @transform_3(%arg0: i32) -> (i32, i32) {
    %c0_i32 = arith.constant 0 : i32
    %c0_i32_0 = arith.constant 0 : i32
    %c0_i32_1 = arith.constant 0 : i32
    return %c0_i32, %c0_i32_0 : i32, i32
  }
  func.func @transform_4(%arg0: i32) -> (i32, i32) {
    %c0_i32 = arith.constant 0 : i32
    %c0_i32_0 = arith.constant 0 : i32
    %c0_i32_1 = arith.constant 0 : i32
    return %c0_i32, %c0_i32_0 : i32, i32
  }
  func.func @transform_5(%arg0: i32) -> (i32, i32) {
    %c0_i32 = arith.constant 0 : i32
    %c0_i32_0 = arith.constant 0 : i32
    return %c0_i32, %arg0 : i32, i32
  }
  func.func @transform_6(%arg0: i32) -> (i32, i32) {
    %c0_i32 = arith.constant 0 : i32
    %c0_i32_0 = arith.constant 0 : i32
    return %c0_i32, %arg0 : i32, i32
  }
}

module attributes {stable_mosaic.version = 11 : i64} {
  func.func @kernel(%arg0: i32, %arg1: memref<16x128xf32, #tpu.memory_space<vmem>>, %arg2: memref<8x128xf32, #tpu.memory_space<vmem>>, %arg3: memref<9x16xf32, #tpu.memory_space<vmem>>, %arg4: memref<9x1xf32, #tpu.memory_space<vmem>>, %arg5: memref<8x128xf32, #tpu.memory_space<vmem>>) attributes {dimension_semantics = [#tpu.dimension_semantics<parallel>], iteration_bounds = array<i64: 1>, scalar_prefetch = 0 : i64, scratch_operands = 0 : i64, tpu.core_type = #tpu.core_type<tc>, window_params = [{transform_indices = @transform_0, window_bounds = array<i64: 16, 128>}, {transform_indices = @transform_1, window_bounds = array<i64: 8, 128>}, {pipeline_mode = #tpu.pipeline_mode<synchronous>, transform_indices = @transform_2, window_bounds = array<i64: 9, 16>}, {pipeline_mode = #tpu.pipeline_mode<synchronous>, transform_indices = @transform_3, window_bounds = array<i64: 9, 1>}, {transform_indices = @transform_4, window_bounds = array<i64: 8, 128>}]} {
    %c0 = arith.constant 0 : index
    %c0_0 = arith.constant 0 : index
    %0 = vector.load %arg3[%c0, %c0_0] : memref<9x16xf32, #tpu.memory_space<vmem>>, vector<9x16xf32>
    %c0_1 = arith.constant 0 : index
    %c0_2 = arith.constant 0 : index
    %1 = vector.load %arg1[%c0_1, %c0_2] : memref<16x128xf32, #tpu.memory_space<vmem>>, vector<16x128xf32>
    %cst = arith.constant dense<0.000000e+00> : vector<9x128xf32>
    %2 = tpu.matmul %0, %1, %cst {dimension_numbers = #tpu.dot_dimension_numbers<[1], [0], [0], [1], [0, 0, 1, 1], [], []>} : vector<9x16xf32>, vector<16x128xf32>, vector<9x128xf32> -> vector<9x128xf32>
    %c0_3 = arith.constant 0 : index
    %c0_4 = arith.constant 0 : index
    %3 = vector.load %arg4[%c0_3, %c0_4] : memref<9x1xf32, #tpu.memory_space<vmem>>, vector<9x1xf32>
    %4 = vector.broadcast %3 : vector<9x1xf32> to vector<9x128xf32>
    %5 = arith.addf %2, %4 : vector<9x128xf32>
    %cst_5 = arith.constant dense<0xFF800000> : vector<128xf32>
    %6 = vector.multi_reduction <maximumf>, %5, %cst_5 [0] : vector<9x128xf32> to vector<128xf32>
    %7 = vector.shape_cast %6 : vector<128xf32> to vector<1x128xf32>
    %8 = vector.broadcast %7 : vector<1x128xf32> to vector<9x128xf32>
    %9 = arith.subf %5, %8 : vector<9x128xf32>
    %10 = math.exp %9 : vector<9x128xf32>
    %cst_6 = arith.constant dense<0.000000e+00> : vector<128xf32>
    %11 = vector.multi_reduction <add>, %10, %cst_6 [0] : vector<9x128xf32> to vector<128xf32>
    %12 = vector.shape_cast %11 : vector<128xf32> to vector<1x128xf32>
    %13 = vector.broadcast %12 : vector<1x128xf32> to vector<9x128xf32>
    %14 = arith.divf %10, %13 : vector<9x128xf32>
    %c0_7 = arith.constant 0 : index
    %c0_8 = arith.constant 0 : index
    %15 = vector.load %arg2[%c0_7, %c0_8] : memref<8x128xf32, #tpu.memory_space<vmem>>, vector<8x128xf32>
    %16 = tpu.iota {dimensions = array<i32: 1>} : vector<1x128xi32>
    %c63_i32 = arith.constant 63 : i32
    %17 = vector.broadcast %c63_i32 : i32 to vector<1x128xi32>
    %18 = arith.andi %16, %17 : vector<1x128xi32>
    %c3_i32 = arith.constant 3 : i32
    %19 = vector.broadcast %c3_i32 : i32 to vector<1x128xi32>
    %20 = arith.shrsi %18, %19 : vector<1x128xi32>
    %c7_i32 = arith.constant 7 : i32
    %21 = vector.broadcast %c7_i32 : i32 to vector<1x128xi32>
    %22 = arith.andi %18, %21 : vector<1x128xi32>
    %c1_i32 = arith.constant 1 : i32
    %23 = vector.broadcast %c1_i32 : i32 to vector<1x128xi32>
    %24 = arith.cmpi sge, %20, %23 : vector<1x128xi32>
    %c7_i32_9 = arith.constant 7 : i32
    %25 = vector.broadcast %c7_i32_9 : i32 to vector<1x128xi32>
    %26 = arith.cmpi slt, %20, %25 : vector<1x128xi32>
    %c1_i32_10 = arith.constant 1 : i32
    %27 = vector.broadcast %c1_i32_10 : i32 to vector<1x128xi32>
    %28 = arith.cmpi sge, %22, %27 : vector<1x128xi32>
    %c7_i32_11 = arith.constant 7 : i32
    %29 = vector.broadcast %c7_i32_11 : i32 to vector<1x128xi32>
    %30 = arith.cmpi slt, %22, %29 : vector<1x128xi32>
    %c9_i32 = arith.constant 9 : i32
    %31 = tpu.dynamic_rotate %15 by %c9_i32 dim 1 : vector<8x128xf32>, i32 -> vector<8x128xf32>
    %32 = arith.andi %24, %28 : vector<1x128xi1>
    %cst_12 = arith.constant 0.000000e+00 : f32
    %33 = vector.shape_cast %32 : vector<1x128xi1> to vector<1x128xi1>
    %34 = vector.broadcast %33 : vector<1x128xi1> to vector<8x128xi1>
    %35 = vector.broadcast %cst_12 : f32 to vector<8x128xf32>
    %36 = arith.select %34, %31, %35 : vector<8x128xi1>, vector<8x128xf32>
    %37 = vector.extract_strided_slice %14 {offsets = [0, 0], sizes = [1, 128], strides = [1, 1]} : vector<9x128xf32> to vector<1x128xf32>
    %38 = vector.broadcast %37 : vector<1x128xf32> to vector<8x128xf32>
    %39 = arith.mulf %38, %36 : vector<8x128xf32>
    %c8_i32 = arith.constant 8 : i32
    %40 = tpu.dynamic_rotate %15 by %c8_i32 dim 1 : vector<8x128xf32>, i32 -> vector<8x128xf32>
    %cst_13 = arith.constant 0.000000e+00 : f32
    %41 = vector.shape_cast %24 : vector<1x128xi1> to vector<1x128xi1>
    %42 = vector.broadcast %41 : vector<1x128xi1> to vector<8x128xi1>
    %43 = vector.broadcast %cst_13 : f32 to vector<8x128xf32>
    %44 = arith.select %42, %40, %43 : vector<8x128xi1>, vector<8x128xf32>
    %45 = vector.extract_strided_slice %14 {offsets = [1, 0], sizes = [1, 128], strides = [1, 1]} : vector<9x128xf32> to vector<1x128xf32>
    %46 = vector.broadcast %45 : vector<1x128xf32> to vector<8x128xf32>
    %47 = arith.mulf %46, %44 : vector<8x128xf32>
    %48 = arith.addf %39, %47 : vector<8x128xf32>
    %c7_i32_14 = arith.constant 7 : i32
    %49 = tpu.dynamic_rotate %15 by %c7_i32_14 dim 1 : vector<8x128xf32>, i32 -> vector<8x128xf32>
    %50 = arith.andi %24, %30 : vector<1x128xi1>
    %cst_15 = arith.constant 0.000000e+00 : f32
    %51 = vector.shape_cast %50 : vector<1x128xi1> to vector<1x128xi1>
    %52 = vector.broadcast %51 : vector<1x128xi1> to vector<8x128xi1>
    %53 = vector.broadcast %cst_15 : f32 to vector<8x128xf32>
    %54 = arith.select %52, %49, %53 : vector<8x128xi1>, vector<8x128xf32>
    %55 = vector.extract_strided_slice %14 {offsets = [2, 0], sizes = [1, 128], strides = [1, 1]} : vector<9x128xf32> to vector<1x128xf32>
    %56 = vector.broadcast %55 : vector<1x128xf32> to vector<8x128xf32>
    %57 = arith.mulf %56, %54 : vector<8x128xf32>
    %58 = arith.addf %48, %57 : vector<8x128xf32>
    %c1_i32_16 = arith.constant 1 : i32
    %59 = tpu.dynamic_rotate %15 by %c1_i32_16 dim 1 : vector<8x128xf32>, i32 -> vector<8x128xf32>
    %cst_17 = arith.constant 0.000000e+00 : f32
    %60 = vector.shape_cast %28 : vector<1x128xi1> to vector<1x128xi1>
    %61 = vector.broadcast %60 : vector<1x128xi1> to vector<8x128xi1>
    %62 = vector.broadcast %cst_17 : f32 to vector<8x128xf32>
    %63 = arith.select %61, %59, %62 : vector<8x128xi1>, vector<8x128xf32>
    %64 = vector.extract_strided_slice %14 {offsets = [3, 0], sizes = [1, 128], strides = [1, 1]} : vector<9x128xf32> to vector<1x128xf32>
    %65 = vector.broadcast %64 : vector<1x128xf32> to vector<8x128xf32>
    %66 = arith.mulf %65, %63 : vector<8x128xf32>
    %67 = arith.addf %58, %66 : vector<8x128xf32>
    %68 = vector.extract_strided_slice %14 {offsets = [4, 0], sizes = [1, 128], strides = [1, 1]} : vector<9x128xf32> to vector<1x128xf32>
    %69 = vector.broadcast %68 : vector<1x128xf32> to vector<8x128xf32>
    %70 = arith.mulf %69, %15 : vector<8x128xf32>
    %71 = arith.addf %67, %70 : vector<8x128xf32>
    %c127_i32 = arith.constant 127 : i32
    %72 = tpu.dynamic_rotate %15 by %c127_i32 dim 1 : vector<8x128xf32>, i32 -> vector<8x128xf32>
    %cst_18 = arith.constant 0.000000e+00 : f32
    %73 = vector.shape_cast %30 : vector<1x128xi1> to vector<1x128xi1>
    %74 = vector.broadcast %73 : vector<1x128xi1> to vector<8x128xi1>
    %75 = vector.broadcast %cst_18 : f32 to vector<8x128xf32>
    %76 = arith.select %74, %72, %75 : vector<8x128xi1>, vector<8x128xf32>
    %77 = vector.extract_strided_slice %14 {offsets = [5, 0], sizes = [1, 128], strides = [1, 1]} : vector<9x128xf32> to vector<1x128xf32>
    %78 = vector.broadcast %77 : vector<1x128xf32> to vector<8x128xf32>
    %79 = arith.mulf %78, %76 : vector<8x128xf32>
    %80 = arith.addf %71, %79 : vector<8x128xf32>
    %c121_i32 = arith.constant 121 : i32
    %81 = tpu.dynamic_rotate %15 by %c121_i32 dim 1 : vector<8x128xf32>, i32 -> vector<8x128xf32>
    %82 = arith.andi %26, %28 : vector<1x128xi1>
    %cst_19 = arith.constant 0.000000e+00 : f32
    %83 = vector.shape_cast %82 : vector<1x128xi1> to vector<1x128xi1>
    %84 = vector.broadcast %83 : vector<1x128xi1> to vector<8x128xi1>
    %85 = vector.broadcast %cst_19 : f32 to vector<8x128xf32>
    %86 = arith.select %84, %81, %85 : vector<8x128xi1>, vector<8x128xf32>
    %87 = vector.extract_strided_slice %14 {offsets = [6, 0], sizes = [1, 128], strides = [1, 1]} : vector<9x128xf32> to vector<1x128xf32>
    %88 = vector.broadcast %87 : vector<1x128xf32> to vector<8x128xf32>
    %89 = arith.mulf %88, %86 : vector<8x128xf32>
    %90 = arith.addf %80, %89 : vector<8x128xf32>
    %c120_i32 = arith.constant 120 : i32
    %91 = tpu.dynamic_rotate %15 by %c120_i32 dim 1 : vector<8x128xf32>, i32 -> vector<8x128xf32>
    %cst_20 = arith.constant 0.000000e+00 : f32
    %92 = vector.shape_cast %26 : vector<1x128xi1> to vector<1x128xi1>
    %93 = vector.broadcast %92 : vector<1x128xi1> to vector<8x128xi1>
    %94 = vector.broadcast %cst_20 : f32 to vector<8x128xf32>
    %95 = arith.select %93, %91, %94 : vector<8x128xi1>, vector<8x128xf32>
    %96 = vector.extract_strided_slice %14 {offsets = [7, 0], sizes = [1, 128], strides = [1, 1]} : vector<9x128xf32> to vector<1x128xf32>
    %97 = vector.broadcast %96 : vector<1x128xf32> to vector<8x128xf32>
    %98 = arith.mulf %97, %95 : vector<8x128xf32>
    %99 = arith.addf %90, %98 : vector<8x128xf32>
    %c119_i32 = arith.constant 119 : i32
    %100 = tpu.dynamic_rotate %15 by %c119_i32 dim 1 : vector<8x128xf32>, i32 -> vector<8x128xf32>
    %101 = arith.andi %26, %30 : vector<1x128xi1>
    %cst_21 = arith.constant 0.000000e+00 : f32
    %102 = vector.shape_cast %101 : vector<1x128xi1> to vector<1x128xi1>
    %103 = vector.broadcast %102 : vector<1x128xi1> to vector<8x128xi1>
    %104 = vector.broadcast %cst_21 : f32 to vector<8x128xf32>
    %105 = arith.select %103, %100, %104 : vector<8x128xi1>, vector<8x128xf32>
    %106 = vector.extract_strided_slice %14 {offsets = [8, 0], sizes = [1, 128], strides = [1, 1]} : vector<9x128xf32> to vector<1x128xf32>
    %107 = vector.broadcast %106 : vector<1x128xf32> to vector<8x128xf32>
    %108 = arith.mulf %107, %105 : vector<8x128xf32>
    %109 = arith.addf %99, %108 : vector<8x128xf32>
    %c0_22 = arith.constant 0 : index
    %c0_23 = arith.constant 0 : index
    %110 = vector.load %arg5[%c0_22, %c0_23] : memref<8x128xf32, #tpu.memory_space<vmem>>, vector<8x128xf32>
    tpu.vector_store %arg5[%c0_22, %c0_23], %109 {strides = array<i32>} : memref<8x128xf32, #tpu.memory_space<vmem>>, vector<8x128xf32>,
    return
  }
  func.func @transform_0(%arg0: i32) -> (i32, i32) {
    %c0_i32 = arith.constant 0 : i32
    %c0_i32_0 = arith.constant 0 : i32
    return %c0_i32, %arg0 : i32, i32
  }
  func.func @transform_1(%arg0: i32) -> (i32, i32) {
    %c0_i32 = arith.constant 0 : i32
    %c0_i32_0 = arith.constant 0 : i32
    return %c0_i32, %arg0 : i32, i32
  }
  func.func @transform_2(%arg0: i32) -> (i32, i32) {
    %c0_i32 = arith.constant 0 : i32
    %c0_i32_0 = arith.constant 0 : i32
    %c0_i32_1 = arith.constant 0 : i32
    return %c0_i32, %c0_i32_0 : i32, i32
  }
  func.func @transform_3(%arg0: i32) -> (i32, i32) {
    %c0_i32 = arith.constant 0 : i32
    %c0_i32_0 = arith.constant 0 : i32
    %c0_i32_1 = arith.constant 0 : i32
    return %c0_i32, %c0_i32_0 : i32, i32
  }
  func.func @transform_4(%arg0: i32) -> (i32, i32) {
    %c0_i32 = arith.constant 0 : i32
    %c0_i32_0 = arith.constant 0 : i32
    return %c0_i32, %arg0 : i32, i32
  }
}

module attributes {stable_mosaic.version = 11 : i64} {
  func.func @kernel(%arg0: i32, %arg1: memref<8x512xf32, #tpu.memory_space<vmem>>, %arg2: memref<8x128xf32, #tpu.memory_space<vmem>>, %arg3: memref<8x512xf32, #tpu.memory_space<vmem>>, %arg4: memref<128x512xf32, #tpu.memory_space<vmem>>, %arg5: memref<10x8xf32, #tpu.memory_space<vmem>>, %arg6: memref<10x1xf32, #tpu.memory_space<vmem>>, %arg7: memref<8x512xf32, #tpu.memory_space<vmem>>) attributes {dimension_semantics = [#tpu.dimension_semantics<parallel>], iteration_bounds = array<i64: 1>, scalar_prefetch = 0 : i64, scratch_operands = 0 : i64, tpu.core_type = #tpu.core_type<tc>, window_params = [{transform_indices = @transform_0, window_bounds = array<i64: 8, 512>}, {transform_indices = @transform_1, window_bounds = array<i64: 8, 128>}, {transform_indices = @transform_2, window_bounds = array<i64: 8, 512>}, {transform_indices = @transform_3, window_bounds = array<i64: 128, 512>}, {pipeline_mode = #tpu.pipeline_mode<synchronous>, transform_indices = @transform_4, window_bounds = array<i64: 10, 8>}, {pipeline_mode = #tpu.pipeline_mode<synchronous>, transform_indices = @transform_5, window_bounds = array<i64: 10, 1>}, {transform_indices = @transform_6, window_bounds = array<i64: 8, 512>}]} {
    %c0 = arith.constant 0 : index
    %c0_0 = arith.constant 0 : index
    %0 = vector.load %arg5[%c0, %c0_0] : memref<10x8xf32, #tpu.memory_space<vmem>>, vector<10x8xf32>
    %c0_1 = arith.constant 0 : index
    %c0_2 = arith.constant 0 : index
    %1 = vector.load %arg1[%c0_1, %c0_2] : memref<8x512xf32, #tpu.memory_space<vmem>>, vector<8x512xf32>
    %cst = arith.constant dense<0.000000e+00> : vector<10x512xf32>
    %2 = tpu.matmul %0, %1, %cst {dimension_numbers = #tpu.dot_dimension_numbers<[1], [0], [0], [1], [0, 0, 1, 1], [], []>} : vector<10x8xf32>, vector<8x512xf32>, vector<10x512xf32> -> vector<10x512xf32>
    %c0_3 = arith.constant 0 : index
    %c0_4 = arith.constant 0 : index
    %3 = vector.load %arg6[%c0_3, %c0_4] : memref<10x1xf32, #tpu.memory_space<vmem>>, vector<10x1xf32>
    %4 = vector.broadcast %3 : vector<10x1xf32> to vector<10x512xf32>
    %5 = arith.addf %2, %4 : vector<10x512xf32>
    %cst_5 = arith.constant dense<0xFF800000> : vector<512xf32>
    %6 = vector.multi_reduction <maximumf>, %5, %cst_5 [0] : vector<10x512xf32> to vector<512xf32>
    %7 = vector.shape_cast %6 : vector<512xf32> to vector<1x512xf32>
    %8 = vector.broadcast %7 : vector<1x512xf32> to vector<10x512xf32>
    %9 = arith.subf %5, %8 : vector<10x512xf32>
    %10 = math.exp %9 : vector<10x512xf32>
    %cst_6 = arith.constant dense<0.000000e+00> : vector<512xf32>
    %11 = vector.multi_reduction <add>, %10, %cst_6 [0] : vector<10x512xf32> to vector<512xf32>
    %12 = vector.shape_cast %11 : vector<512xf32> to vector<1x512xf32>
    %13 = vector.broadcast %12 : vector<1x512xf32> to vector<10x512xf32>
    %14 = arith.divf %10, %13 : vector<10x512xf32>
    %c0_7 = arith.constant 0 : index
    %c0_8 = arith.constant 0 : index
    %15 = vector.load %arg2[%c0_7, %c0_8] : memref<8x128xf32, #tpu.memory_space<vmem>>, vector<8x128xf32>
    %c0_9 = arith.constant 0 : index
    %c0_10 = arith.constant 0 : index
    %16 = vector.load %arg4[%c0_9, %c0_10] : memref<128x512xf32, #tpu.memory_space<vmem>>, vector<128x512xf32>
    %cst_11 = arith.constant dense<0.000000e+00> : vector<8x512xf32>
    %17 = tpu.matmul %15, %16, %cst_11 {dimension_numbers = #tpu.dot_dimension_numbers<[1], [0], [0], [1], [0, 0, 1, 1], [], []>} : vector<8x128xf32>, vector<128x512xf32>, vector<8x512xf32> -> vector<8x512xf32>
    %18 = tpu.iota {dimensions = array<i32: 1>} : vector<1x512xi32>
    %c255_i32 = arith.constant 255 : i32
    %19 = vector.broadcast %c255_i32 : i32 to vector<1x512xi32>
    %20 = arith.andi %18, %19 : vector<1x512xi32>
    %c4_i32 = arith.constant 4 : i32
    %21 = vector.broadcast %c4_i32 : i32 to vector<1x512xi32>
    %22 = arith.shrsi %20, %21 : vector<1x512xi32>
    %c15_i32 = arith.constant 15 : i32
    %23 = vector.broadcast %c15_i32 : i32 to vector<1x512xi32>
    %24 = arith.andi %20, %23 : vector<1x512xi32>
    %c1_i32 = arith.constant 1 : i32
    %25 = vector.broadcast %c1_i32 : i32 to vector<1x512xi32>
    %26 = arith.cmpi sge, %22, %25 : vector<1x512xi32>
    %c15_i32_12 = arith.constant 15 : i32
    %27 = vector.broadcast %c15_i32_12 : i32 to vector<1x512xi32>
    %28 = arith.cmpi slt, %22, %27 : vector<1x512xi32>
    %c1_i32_13 = arith.constant 1 : i32
    %29 = vector.broadcast %c1_i32_13 : i32 to vector<1x512xi32>
    %30 = arith.cmpi sge, %24, %29 : vector<1x512xi32>
    %c15_i32_14 = arith.constant 15 : i32
    %31 = vector.broadcast %c15_i32_14 : i32 to vector<1x512xi32>
    %32 = arith.cmpi slt, %24, %31 : vector<1x512xi32>
    %c0_15 = arith.constant 0 : index
    %c0_16 = arith.constant 0 : index
    %33 = vector.load %arg3[%c0_15, %c0_16] : memref<8x512xf32, #tpu.memory_space<vmem>>, vector<8x512xf32>
    %34 = vector.extract_strided_slice %14 {offsets = [9, 0], sizes = [1, 512], strides = [1, 1]} : vector<10x512xf32> to vector<1x512xf32>
    %c17_i32 = arith.constant 17 : i32
    %35 = tpu.dynamic_rotate %17 by %c17_i32 dim 1 : vector<8x512xf32>, i32 -> vector<8x512xf32>
    %36 = arith.andi %26, %30 : vector<1x512xi1>
    %cst_17 = arith.constant 0.000000e+00 : f32
    %37 = vector.shape_cast %36 : vector<1x512xi1> to vector<1x512xi1>
    %38 = vector.broadcast %37 : vector<1x512xi1> to vector<8x512xi1>
    %39 = vector.broadcast %cst_17 : f32 to vector<8x512xf32>
    %40 = arith.select %38, %35, %39 : vector<8x512xi1>, vector<8x512xf32>
    %41 = vector.extract_strided_slice %14 {offsets = [0, 0], sizes = [1, 512], strides = [1, 1]} : vector<10x512xf32> to vector<1x512xf32>
    %42 = vector.broadcast %41 : vector<1x512xf32> to vector<8x512xf32>
    %43 = arith.mulf %42, %40 : vector<8x512xf32>
    %c16_i32 = arith.constant 16 : i32
    %44 = tpu.dynamic_rotate %17 by %c16_i32 dim 1 : vector<8x512xf32>, i32 -> vector<8x512xf32>
    %cst_18 = arith.constant 0.000000e+00 : f32
    %45 = vector.shape_cast %26 : vector<1x512xi1> to vector<1x512xi1>
    %46 = vector.broadcast %45 : vector<1x512xi1> to vector<8x512xi1>
    %47 = vector.broadcast %cst_18 : f32 to vector<8x512xf32>
    %48 = arith.select %46, %44, %47 : vector<8x512xi1>, vector<8x512xf32>
    %49 = vector.extract_strided_slice %14 {offsets = [1, 0], sizes = [1, 512], strides = [1, 1]} : vector<10x512xf32> to vector<1x512xf32>
    %50 = vector.broadcast %49 : vector<1x512xf32> to vector<8x512xf32>
    %51 = arith.mulf %50, %48 : vector<8x512xf32>
    %52 = arith.addf %43, %51 : vector<8x512xf32>
    %c15_i32_19 = arith.constant 15 : i32
    %53 = tpu.dynamic_rotate %17 by %c15_i32_19 dim 1 : vector<8x512xf32>, i32 -> vector<8x512xf32>
    %54 = arith.andi %26, %32 : vector<1x512xi1>
    %cst_20 = arith.constant 0.000000e+00 : f32
    %55 = vector.shape_cast %54 : vector<1x512xi1> to vector<1x512xi1>
    %56 = vector.broadcast %55 : vector<1x512xi1> to vector<8x512xi1>
    %57 = vector.broadcast %cst_20 : f32 to vector<8x512xf32>
    %58 = arith.select %56, %53, %57 : vector<8x512xi1>, vector<8x512xf32>
    %59 = vector.extract_strided_slice %14 {offsets = [2, 0], sizes = [1, 512], strides = [1, 1]} : vector<10x512xf32> to vector<1x512xf32>
    %60 = vector.broadcast %59 : vector<1x512xf32> to vector<8x512xf32>
    %61 = arith.mulf %60, %58 : vector<8x512xf32>
    %62 = arith.addf %52, %61 : vector<8x512xf32>
    %c1_i32_21 = arith.constant 1 : i32
    %63 = tpu.dynamic_rotate %17 by %c1_i32_21 dim 1 : vector<8x512xf32>, i32 -> vector<8x512xf32>
    %cst_22 = arith.constant 0.000000e+00 : f32
    %64 = vector.shape_cast %30 : vector<1x512xi1> to vector<1x512xi1>
    %65 = vector.broadcast %64 : vector<1x512xi1> to vector<8x512xi1>
    %66 = vector.broadcast %cst_22 : f32 to vector<8x512xf32>
    %67 = arith.select %65, %63, %66 : vector<8x512xi1>, vector<8x512xf32>
    %68 = vector.extract_strided_slice %14 {offsets = [3, 0], sizes = [1, 512], strides = [1, 1]} : vector<10x512xf32> to vector<1x512xf32>
    %69 = vector.broadcast %68 : vector<1x512xf32> to vector<8x512xf32>
    %70 = arith.mulf %69, %67 : vector<8x512xf32>
    %71 = arith.addf %62, %70 : vector<8x512xf32>
    %72 = vector.extract_strided_slice %14 {offsets = [4, 0], sizes = [1, 512], strides = [1, 1]} : vector<10x512xf32> to vector<1x512xf32>
    %73 = vector.broadcast %72 : vector<1x512xf32> to vector<8x512xf32>
    %74 = arith.mulf %73, %17 : vector<8x512xf32>
    %75 = arith.addf %71, %74 : vector<8x512xf32>
    %c511_i32 = arith.constant 511 : i32
    %76 = tpu.dynamic_rotate %17 by %c511_i32 dim 1 : vector<8x512xf32>, i32 -> vector<8x512xf32>
    %cst_23 = arith.constant 0.000000e+00 : f32
    %77 = vector.shape_cast %32 : vector<1x512xi1> to vector<1x512xi1>
    %78 = vector.broadcast %77 : vector<1x512xi1> to vector<8x512xi1>
    %79 = vector.broadcast %cst_23 : f32 to vector<8x512xf32>
    %80 = arith.select %78, %76, %79 : vector<8x512xi1>, vector<8x512xf32>
    %81 = vector.extract_strided_slice %14 {offsets = [5, 0], sizes = [1, 512], strides = [1, 1]} : vector<10x512xf32> to vector<1x512xf32>
    %82 = vector.broadcast %81 : vector<1x512xf32> to vector<8x512xf32>
    %83 = arith.mulf %82, %80 : vector<8x512xf32>
    %84 = arith.addf %75, %83 : vector<8x512xf32>
    %c497_i32 = arith.constant 497 : i32
    %85 = tpu.dynamic_rotate %17 by %c497_i32 dim 1 : vector<8x512xf32>, i32 -> vector<8x512xf32>
    %86 = arith.andi %28, %30 : vector<1x512xi1>
    %cst_24 = arith.constant 0.000000e+00 : f32
    %87 = vector.shape_cast %86 : vector<1x512xi1> to vector<1x512xi1>
    %88 = vector.broadcast %87 : vector<1x512xi1> to vector<8x512xi1>
    %89 = vector.broadcast %cst_24 : f32 to vector<8x512xf32>
    %90 = arith.select %88, %85, %89 : vector<8x512xi1>, vector<8x512xf32>
    %91 = vector.extract_strided_slice %14 {offsets = [6, 0], sizes = [1, 512], strides = [1, 1]} : vector<10x512xf32> to vector<1x512xf32>
    %92 = vector.broadcast %91 : vector<1x512xf32> to vector<8x512xf32>
    %93 = arith.mulf %92, %90 : vector<8x512xf32>
    %94 = arith.addf %84, %93 : vector<8x512xf32>
    %c496_i32 = arith.constant 496 : i32
    %95 = tpu.dynamic_rotate %17 by %c496_i32 dim 1 : vector<8x512xf32>, i32 -> vector<8x512xf32>
    %cst_25 = arith.constant 0.000000e+00 : f32
    %96 = vector.shape_cast %28 : vector<1x512xi1> to vector<1x512xi1>
    %97 = vector.broadcast %96 : vector<1x512xi1> to vector<8x512xi1>
    %98 = vector.broadcast %cst_25 : f32 to vector<8x512xf32>
    %99 = arith.select %97, %95, %98 : vector<8x512xi1>, vector<8x512xf32>
    %100 = vector.extract_strided_slice %14 {offsets = [7, 0], sizes = [1, 512], strides = [1, 1]} : vector<10x512xf32> to vector<1x512xf32>
    %101 = vector.broadcast %100 : vector<1x512xf32> to vector<8x512xf32>
    %102 = arith.mulf %101, %99 : vector<8x512xf32>
    %103 = arith.addf %94, %102 : vector<8x512xf32>
    %c495_i32 = arith.constant 495 : i32
    %104 = tpu.dynamic_rotate %17 by %c495_i32 dim 1 : vector<8x512xf32>, i32 -> vector<8x512xf32>
    %105 = arith.andi %28, %32 : vector<1x512xi1>
    %cst_26 = arith.constant 0.000000e+00 : f32
    %106 = vector.shape_cast %105 : vector<1x512xi1> to vector<1x512xi1>
    %107 = vector.broadcast %106 : vector<1x512xi1> to vector<8x512xi1>
    %108 = vector.broadcast %cst_26 : f32 to vector<8x512xf32>
    %109 = arith.select %107, %104, %108 : vector<8x512xi1>, vector<8x512xf32>
    %110 = vector.extract_strided_slice %14 {offsets = [8, 0], sizes = [1, 512], strides = [1, 1]} : vector<10x512xf32> to vector<1x512xf32>
    %111 = vector.broadcast %110 : vector<1x512xf32> to vector<8x512xf32>
    %112 = arith.mulf %111, %109 : vector<8x512xf32>
    %113 = arith.addf %103, %112 : vector<8x512xf32>
    %114 = vector.broadcast %34 : vector<1x512xf32> to vector<8x512xf32>
    %115 = arith.mulf %114, %33 : vector<8x512xf32>
    %116 = arith.addf %113, %115 : vector<8x512xf32>
    %c0_27 = arith.constant 0 : index
    %c0_28 = arith.constant 0 : index
    %117 = vector.load %arg7[%c0_27, %c0_28] : memref<8x512xf32, #tpu.memory_space<vmem>>, vector<8x512xf32>
    tpu.vector_store %arg7[%c0_27, %c0_28], %116 {strides = array<i32>} : memref<8x512xf32, #tpu.memory_space<vmem>>, vector<8x512xf32>,
    return
  }
  func.func @transform_0(%arg0: i32) -> (i32, i32) {
    %c0_i32 = arith.constant 0 : i32
    %c0_i32_0 = arith.constant 0 : i32
    return %c0_i32, %arg0 : i32, i32
  }
  func.func @transform_1(%arg0: i32) -> (i32, i32) {
    %c0_i32 = arith.constant 0 : i32
    %c0_i32_0 = arith.constant 0 : i32
    return %c0_i32, %arg0 : i32, i32
  }
  func.func @transform_2(%arg0: i32) -> (i32, i32) {
    %c0_i32 = arith.constant 0 : i32
    %c0_i32_0 = arith.constant 0 : i32
    return %c0_i32, %arg0 : i32, i32
  }
  func.func @transform_3(%arg0: i32) -> (i32, i32) {
    %c0_i32 = arith.constant 0 : i32
    return %arg0, %arg0 : i32, i32
  }
  func.func @transform_4(%arg0: i32) -> (i32, i32) {
    %c0_i32 = arith.constant 0 : i32
    %c0_i32_0 = arith.constant 0 : i32
    %c0_i32_1 = arith.constant 0 : i32
    return %c0_i32, %c0_i32_0 : i32, i32
  }
  func.func @transform_5(%arg0: i32) -> (i32, i32) {
    %c0_i32 = arith.constant 0 : i32
    %c0_i32_0 = arith.constant 0 : i32
    %c0_i32_1 = arith.constant 0 : i32
    return %c0_i32, %c0_i32_0 : i32, i32
  }
  func.func @transform_6(%arg0: i32) -> (i32, i32) {
    %c0_i32 = arith.constant 0 : i32
    %c0_i32_0 = arith.constant 0 : i32
    return %c0_i32, %arg0 : i32, i32
  }
}

</mosaic_0001>

<bundles_post_ra>
// kernel: run.4
= control target key start
LH: loop header
LB: loop body
LE: loop exit
PB: predicated region body
PF: predicated region fallthrough
CT: control target
= control target key end

     0   :  { %vm33_vm0 = vcmask 130048   ;;  %v286_v3 = vmov 0   ;;  %s287_s26 = smov 9   ;;  %s288_s29 = smov 8   ;;  %vm115_vm1 = vcmask 1040384   ;;  %v142_v33 = vlaneseq  ;;  %s374_s0 = inlined_call_operand.vmem [shape: f32[16,128], index: 0, kind: input, shape index: {}]   ;;  %s375_s2 = inlined_call_operand.vmem [shape: f32[9,16], index: 2, kind: input, shape index: {}]   ;;  %s376_s3 = inlined_call_operand.vmem [shape: f32[9,1], index: 3, kind: input, shape index: {}]   ;;  %s377_s1 = inlined_call_operand.vmem [shape: f32[8,128], index: 1, kind: input, shape index: {}]   ;;  %s378_s4 = inlined_call_operand.vmem [shape: f32[8,128], index: 4, kind: output, shape index: {}]  }
   0x1   :  { %v19_v0 = vld [vmem:[%s374_s0] sm:$0xff]  ;;  %v20_v1 = vld [vmem:[%s374_s0 + $0x8] sm:$0xff]  ;;  %279 = vset.pattern.permute.xlu0 %v286_v3  ;;  %s290_s30 = smov 1   ;;  %s292_s5 = smov 121  }
   0x2   :  { %v17_v2 = vld [vmem:[%s375_s2] sm:$0xff]  ;;  %v266_v4 = vpack.c.bf16 %v20_v1, %v19_v0  ;;  %v22_v5 = vld [vmem:[%s376_s3 + $0x8] sm:$0x1]  ;;  %s293_s6 = smov 120   ;;  %v143_v36 = vand.u32 127, %v142_v33  ;;  %v158_v43 = vshrl.u32 %v142_v33, 7 }
   0x3   :  { %263 = vmatprep.mubr.msk.f32.mxu0 %vm33_vm0, %v17_v2  ;;  %30 = vperm.xlu0 %279, %v22_v5   ;;  %v336_v6 = vld [vmem:[%s377_s1] sm:$0xff]  ;;  %v18_v8 = vld [vmem:[%s375_s2 + $0x8] sm:$0x1]  ;;  %s289_s1 = smov 7   ;;  %s294_s2 = smov 119  }
   0x4   :  { %267 = vmatprep.subr.bf16.mxu0 %v266_v4  ;;  %v21_v7 = vld [vmem:[%s376_s3] sm:$0xff]  ;;  %151 = vrot.lane.b32.xlu1 %v336_v6, %s287_s26  ;;  %s291_s3 = smov 127   ;;  %v144_v39 = vand.u32 63, %v143_v36  ;;  %v159_v45 = vsub.s32 0, %v158_v43  ;;  %v169_v46 = vsub.s32 1, %v158_v43  ;;  %v181_v47 = vsub.s32 2, %v158_v43 }
   0x5   :  { %269 = vmatpush3.bf16.msra.mxu0 %v266_v4  ;;  %v192_v52 = vsub.s32 3, %v158_v43  ;;  %v198_v59 = vsub.s32 4, %v158_v43  ;;  %v209_v1 = vsub.s32 5, %v158_v43 }
   0x6   :  { %v145_v41 = vshra.s32 %v144_v39, 3  ;;  %v146_v42 = vand.u32 7, %v144_v39 }
   0x7   :  { %25 = vperm.xlu0 %279, %v21_v7  }
   0x8   :  { %264 = vmatmul.mubr.msk.f32.vlgmr.msra.gmra.mrb[0].mxu0 %vm33_vm0, %v18_v8  ;;  %162 = vrot.lane.b32.xlu1 %v336_v6, %s288_s29  ;;  %vm147_vm2 = vcmp.ge.s32.totalorder %v145_v41, 1  ;;  %vm149_vm3 = vcmp.ge.s32.totalorder %v146_v42, 1  ;;  %vm150_vm4 = vcmp.lt.s32.totalorder %v146_v42, 7  ;;  %vm148_vm7 = vcmp.lt.s32.totalorder %v145_v41, 7 }
   0x9   :  { %vm153_vm5 = vmand %vm147_vm2, %vm149_vm3  ;;  %v221_v8 = vsub.s32 6, %v158_v43 }
   0xa   :  { %vm357_vm6 = vmand %vm147_vm2, %vm150_vm4 }
   0xb   :  { %173 = vrot.lane.b32.xlu0 %v336_v6, %s289_s1  ;;  %vm215_vm8 = vmand %vm148_vm7, %vm149_vm3 }
   0xc   :  { %185 = vrot.lane.b32.xlu1 %v336_v6, %s290_s30  ;;  %vm238_vm9 = vmand %vm148_vm7, %vm150_vm4 }
   0xf   :  { %202 = vrot.lane.b32.xlu0 %v336_v6, %s291_s3 }
  0x10   :  { %213 = vrot.lane.b32.xlu1 %v336_v6, %s292_s5 }
  0x13   :  { %225 = vrot.lane.b32.xlu0 %v336_v6, %s293_s6 }
  0x14   :  { %236 = vrot.lane.b32.xlu1 %v336_v6, %s294_s2 }
  0x76   :  { %v152_v40 = vpop.permute.xlu1 %151 }
  0x77   :  { %v156_v60 = vsel %vm153_vm5, %v152_v40, 0.0 }
  0x7a   :  { %v163_v44 = vpop.permute.xlu1 %162 }
  0x7b   :  { %v166_v55 = vsel %vm147_vm2, %v163_v44, 0.0 }
  0x7e   :  { %v186_v53 = vpop.permute.xlu1 %185 }
  0x7f   :  { %v189_v3 = vsel %vm149_vm3, %v186_v53, 0.0 }
  0x82   :  { %v31_v9 = vpop.permute.xlu0 %30 }
  0x86   :  { %v26_v11 = vpop.permute.xlu0 %25 }
  0x8a   :  { %v174_v48 = vpop.permute.xlu0 %173 }
  0x8b   :  { %v178_v61 = vsel %vm357_vm6, %v174_v48, 0.0 }
  0x8e   :  { %v203_v2 = vpop.permute.xlu0 %202 }
  0xdb   :  { %v265_v10 = vpop.f32.mrb[0].mxu0 }
  0xdc   :  { %v112_v12 = vadd.f32 %v265_v10, %v31_v9  ;;  %v106_v13 = vpop.f32.mrb[1].mxu0  ;;  %v214_v9 = vpop.permute.xlu1 %213 }
  0xdd   :  { %v107_v14 = vadd.f32 %v106_v13, %v26_v11  ;;  %v232_v13 = vsub.s32 7, %v158_v43 }
  0xde   :  { %v116_v15 = vsel %vm115_vm1, %v112_v12, -inf }
  0xdf   :  { %v117_v16 = vmax.f32 %v107_v14, %v116_v15 }
  0xe1   :  { %v118_v17 = vrot.slane %v117_v16, 4 }
  0xe3   :  { %v119_v18 = vmax.f32 %v117_v16, %v118_v17 }
  0xe5   :  { %v120_v19 = vrot.slane %v119_v18, 2 }
  0xe7   :  { %v121_v20 = vmax.f32 %v119_v18, %v120_v19  ;;  %v226_v18 = vpop.permute.xlu0 %225  ;;  %v218_v19 = vsel %vm215_vm8, %v214_v9, 0.0 }
  0xe9   :  { %v122_v21 = vrot.slane %v121_v20, 1 }
  0xeb   :  { %v123_v22 = vmax.f32 %v121_v20, %v122_v21 }
  0xed   :  { %v124_v23 = vsub.f32 %v107_v14, %v123_v22  ;;  %v125_v24 = vsub.f32 %v112_v12, %v123_v22  ;;  %v206_v14 = vsel %vm150_vm4, %v203_v2, 0.0 }
  0xef   :  { %v126_v25 = vmul.f32 1.442695, %v124_v23  ;;  %v128_v26 = vmul.f32 1.442695, %v125_v24  ;;  %v237_v23 = vpop.permute.xlu1 %236  ;;  %v229_v24 = vsel %vm148_vm7, %v226_v18, 0.0 }
  0xf1   :  { %280 = vpow2.f32 %v126_v25 }
  0xf2   :  { %282 = vpow2.f32 %v128_v26 }
  0xfb   :  { %v281_v27 = vpop.eup %280 }
  0xfc   :  { %v283_v28 = vpop.eup %282 }
  0xfd   :  { %v130_v29 = vsel %vm115_vm1, %v283_v28, 0.0 }
  0xfe   :  { %v131_v30 = vadd.f32 %v281_v27, %v130_v29 }
 0x100   :  { %v132_v31 = vrot.slane %v131_v30, 4 }
 0x102   :  { %v133_v32 = vadd.f32 %v132_v31, %v131_v30 }
 0x104   :  { %v134_v34 = vrot.slane %v133_v32, 2 }
 0x106   :  { %v135_v35 = vadd.f32 %v134_v34, %v133_v32 }
 0x108   :  { %v136_v37 = vrot.slane %v135_v35, 1 }
 0x10a   :  { %v137_v38 = vadd.f32 %v136_v37, %v135_v35 }
 0x10c   :  { %284 = vrcp.f32 %v137_v38 }
 0x116   :  { %v285_v49 = vpop.eup %284 }
 0x117   :  { %v139_v50 = vmul.f32 %v285_v49, %v281_v27  ;;  %v140_v54 = vmul.f32 %v285_v49, %v283_v28  ;;  %v241_v28 = vsel %vm238_vm9, %v237_v23, 0.0 }
 0x119   :  { %v160_v56 = vrot.slane %v139_v50, %v159_v45  ;;  %v170_v57 = vrot.slane %v139_v50, %v169_v46  ;;  %v182_v58 = vrot.slane %v139_v50, %v181_v47  ;;  %v193_v0 = vrot.slane %v139_v50, %v192_v52 }
 0x11a   :  { %v199_v7 = vrot.slane %v139_v50, %v198_v59  ;;  %v210_v12 = vrot.slane %v139_v50, %v209_v1  ;;  %v222_v17 = vrot.slane %v139_v50, %v221_v8  ;;  %v233_v22 = vrot.slane %v139_v50, %v232_v13 }
 0x11b   :  { %v161_v62 = vmul.f32 %v160_v56, %v156_v60  ;;  %v171_v63 = vmul.f32 %v170_v57, %v166_v55  ;;  %v183_v5 = vmul.f32 %v182_v58, %v178_v61  ;;  %v194_v11 = vmul.f32 %v193_v0, %v189_v3 }
 0x11c   :  { %v200_v16 = vmul.f32 %v199_v7, %v336_v6  ;;  %v211_v21 = vmul.f32 %v210_v12, %v206_v14  ;;  %v223_v26 = vmul.f32 %v222_v17, %v218_v19  ;;  %v245_v27 = vrot.slane %v140_v54, %v159_v45 }
 0x11d   :  { %v172_v4 = vadd.f32 %v171_v63, %v161_v62  ;;  %v234_v30 = vmul.f32 %v233_v22, %v229_v24 }
 0x11e   :  { %v246_v6 = vmul.f32 %v245_v27, %v241_v28 }
 0x11f   :  { %v184_v10 = vadd.f32 %v183_v5, %v172_v4 }
 0x121   :  { %v195_v15 = vadd.f32 %v194_v11, %v184_v10 }
 0x123   :  { %v201_v20 = vadd.f32 %v200_v16, %v195_v15 }
 0x125   :  { %v212_v25 = vadd.f32 %v211_v21, %v201_v20 }
 0x127   :  { %v224_v29 = vadd.f32 %v223_v26, %v212_v25 }
 0x129   :  { %v235_v31 = vadd.f32 %v234_v30, %v224_v29 }
 0x12b   :  { %v247_v32 = vadd.f32 %v246_v6, %v235_v31 }
 0x12d   :  { %248 = vst [vmem:[%s378_s4] sm:$0xff] %v247_v32 }

// kernel: run.5
= control target key start
LH: loop header
LB: loop body
LE: loop exit
PB: predicated region body
PF: predicated region fallthrough
CT: control target
= control target key end

     0   :  { %v1110_v3 = vmov 0.0   ;;  %vm41_vm0 = vcmask 64512   ;;  %v1111_v28 = vmov 0   ;;  %vm202_vm1 = vcmask 1041408   ;;  %s1114_s12 = smov 15   ;;  %s1115_s13 = smov 1   ;;  %s1921_s0 = inlined_call_operand.vmem [shape: f32[8,512], index: 0, kind: input, shape index: {}]   ;;  %s1922_s4 = inlined_call_operand.vmem [shape: f32[10,8], index: 4, kind: input, shape index: {}]   ;;  %s1923_s3 = inlined_call_operand.vmem [shape: f32[128,512], index: 3, kind: input, shape index: {}]   ;;  %s1924_s5 = inlined_call_operand.vmem [shape: f32[10,1], index: 5, kind: input, shape index: {}]   ;;  %s1925_s1 = inlined_call_operand.vmem [shape: f32[8,128], index: 1, kind: input, shape index: {}]   ;;  %s1926_s2 = inlined_call_operand.vmem [shape: f32[8,512], index: 2, kind: input, shape index: {}]   ;;  %s1927_s6 = inlined_call_operand.vmem [shape: f32[8,512], index: 6, kind: output, shape index: {}]  }
   0x1   :  { %v26_v0 = vld [vmem:[%s1921_s0 + $0x8] sm:$0xff]  ;;  %v28_v1 = vld [vmem:[%s1921_s0 + $0x18] sm:$0xff]  ;;  %v25_v2 = vld [vmem:[%s1921_s0] sm:$0xff]  ;;  %112 = vmatprep.mubr.f32.mxu0 %v1110_v3  ;;  %189 = vmatprep.mubr.f32.mxu1 %v1110_v3  ;;  %s1117_s14 = smov 113   ;;  %s1118_s15 = smov 112  }
   0x2   :  { %48 = vmatprep.subr.mxu0 %v26_v0  ;;  %125 = vmatprep.subr.mxu1 %v28_v1  ;;  %v27_v4 = vld [vmem:[%s1921_s0 + $0x10] sm:$0xff]  ;;  %v23_v5 = vld [vmem:[%s1922_s4] sm:$0xff]  ;;  %v305_v6 = vld [vmem:[%s1923_s3 + $0x8] sm:$0xff]  ;;  %s1116_s0 = smov 127   ;;  %s1119_s16 = smov 111  }
   0x3   :  { %49 = vmatpush1.msra.mxu0 %v25_v2  ;;  %126 = vmatpush1.msra.mxu1 %v27_v4  ;;  %v309_v7 = vld [vmem:[%s1923_s3 + $0x28] sm:$0xff]  ;;  %v307_v8 = vld [vmem:[%s1923_s3 + $0x18] sm:$0xff]  ;;  %v304_v12 = vld [vmem:[%s1923_s3] sm:$0xff] }
   0x4   :  { %v311_v9 = vld [vmem:[%s1923_s3 + $0x38] sm:$0xff]  ;;  %1007 = vmatmul.mubr.msk.f32.vlgmr.msra.gmra.mrb[0].mxu0 %vm41_vm0, %v23_v5  ;;  %1009 = vmatmul.mubr.msk.f32.vlgmr.msra.gmra.mrb[0].mxu1 %vm41_vm0, %v23_v5  ;;  %v1011_v10 = vpack.c.bf16 %v309_v7, %v305_v6  ;;  %v308_v13 = vld [vmem:[%s1923_s3 + $0x20] sm:$0xff]  ;;  %v306_v14 = vld [vmem:[%s1923_s3 + $0x10] sm:$0xff] }
   0x5   :  { %v1043_v11 = vpack.c.bf16 %v311_v9, %v307_v8  ;;  %v1013_v15 = vpack.c.bf16 %v308_v13, %v304_v12  ;;  %v310_v16 = vld [vmem:[%s1923_s3 + $0x30] sm:$0xff]  ;;  %118 = vmatprep.mubr.f32.mxu0 %v1110_v3  ;;  %195 = vmatprep.mubr.f32.mxu1 %v1110_v3  ;;  %v24_v17 = vld [vmem:[%s1922_s4 + $0x8] sm:$0x3]  ;;  %v315_v21 = vld [vmem:[%s1923_s3 + $0x58] sm:$0xff] }
   0x6   :  { %v313_v18 = vld [vmem:[%s1923_s3 + $0x48] sm:$0xff]  ;;  %1012 = vmatprep.subr.bf16.mxu0 %v1011_v10  ;;  %v1045_v19 = vpack.c.bf16 %v310_v16, %v306_v14  ;;  %v319_v22 = vld [vmem:[%s1923_s3 + $0x78] sm:$0xff]  ;;  %v312_v25 = vld [vmem:[%s1923_s3 + $0x40] sm:$0xff]  ;;  %1085 = vset.pattern.permute.xlu0 %v1111_v28 }
   0x7   :  { %1044 = vmatprep.subr.bf16.mxu1 %v1043_v11  ;;  %v317_v20 = vld [vmem:[%s1923_s3 + $0x68] sm:$0xff]  ;;  %1014 = vmatpush1.bf16.msra.mxu0 %v1013_v15  ;;  %v1047_v24 = vpack.c.bf16 %v319_v22, %v315_v21  ;;  %v316_v26 = vld [vmem:[%s1923_s3 + $0x60] sm:$0xff]  ;;  %v314_v27 = vld [vmem:[%s1923_s3 + $0x50] sm:$0xff] }
   0x8   :  { %v1015_v23 = vpack.c.bf16 %v317_v20, %v313_v18  ;;  %1046 = vmatpush1.bf16.msra.mxu1 %v1045_v19  ;;  %1008 = vmatmul.mubr.msk.f32.gmra.mrb[2].mxu0 %vm41_vm0, %v24_v17  ;;  %v1017_v29 = vpack.c.bf16 %v316_v26, %v312_v25  ;;  %v318_v30 = vld [vmem:[%s1923_s3 + $0x70] sm:$0xff]  ;;  %v321_v31 = vld [vmem:[%s1923_s3 + $0x88] sm:$0xff]  ;;  %v323_v35 = vld [vmem:[%s1923_s3 + $0x98] sm:$0xff] }
   0x9   :  { %v325_v32 = vld [vmem:[%s1923_s3 + $0xa8] sm:$0xff]  ;;  %1010 = vmatmul.mubr.msk.f32.gmra.mrb[2].mxu1 %vm41_vm0, %v24_v17  ;;  %v1049_v33 = vpack.c.bf16 %v318_v30, %v314_v27  ;;  %v327_v36 = vld [vmem:[%s1923_s3 + $0xb8] sm:$0xff]  ;;  %v320_v37 = vld [vmem:[%s1923_s3 + $0x80] sm:$0xff]  ;;  %1048 = vmatprep.subr.bf16.mxu1 %v1047_v24 }
   0xa   :  { %1016 = vmatprep.subr.bf16.mxu0 %v1015_v23  ;;  %v1019_v34 = vpack.c.bf16 %v325_v32, %v321_v31  ;;  %v1051_v38 = vpack.c.bf16 %v327_v36, %v323_v35  ;;  %v324_v39 = vld [vmem:[%s1923_s3 + $0xa0] sm:$0xff]  ;;  %v322_v40 = vld [vmem:[%s1923_s3 + $0x90] sm:$0xff]  ;;  %432 = vmatprep.mubr.f32.mxu0 %v1110_v3  ;;  %v329_v43 = vld [vmem:[%s1923_s3 + $0xc8] sm:$0xff] }
   0xb   :  { %v326_v41 = vld [vmem:[%s1923_s3 + $0xb0] sm:$0xff]  ;;  %1018 = vmatpush1.bf16.msra.mxu0 %v1017_v29  ;;  %v1021_v42 = vpack.c.bf16 %v324_v39, %v320_v37  ;;  %v333_v44 = vld [vmem:[%s1923_s3 + $0xe8] sm:$0xff]  ;;  %v331_v45 = vld [vmem:[%s1923_s3 + $0xd8] sm:$0xff]  ;;  %503 = vmatprep.mubr.f32.mxu1 %v1110_v3 }
   0xc   :  { %1050 = vmatpush1.bf16.msra.mxu1 %v1049_v33  ;;  %1020 = vmatprep.subr.bf16.mxu0 %v1019_v34  ;;  %v1053_v46 = vpack.c.bf16 %v326_v41, %v322_v40  ;;  %v1023_v47 = vpack.c.bf16 %v333_v44, %v329_v43  ;;  %v335_v48 = vld [vmem:[%s1923_s3 + $0xf8] sm:$0xff]  ;;  %v328_v49 = vld [vmem:[%s1923_s3 + $0xc0] sm:$0xff]  ;;  %v330_v52 = vld [vmem:[%s1923_s3 + $0xd0] sm:$0xff] }
   0xd   :  { %v332_v50 = vld [vmem:[%s1923_s3 + $0xe0] sm:$0xff]  ;;  %1052 = vmatprep.subr.bf16.mxu1 %v1051_v38  ;;  %v1055_v51 = vpack.c.bf16 %v335_v48, %v331_v45  ;;  %v334_v53 = vld [vmem:[%s1923_s3 + $0xf0] sm:$0xff]  ;;  %v337_v54 = vld [vmem:[%s1923_s3 + $0x108] sm:$0xff] }
   0xe   :  { %v341_v55 = vld [vmem:[%s1923_s3 + $0x128] sm:$0xff]  ;;  %v339_v56 = vld [vmem:[%s1923_s3 + $0x118] sm:$0xff]  ;;  %v1025_v58 = vpack.c.bf16 %v332_v50, %v328_v49  ;;  %v1057_v59 = vpack.c.bf16 %v334_v53, %v330_v52  ;;  %v336_v61 = vld [vmem:[%s1923_s3 + $0x100] sm:$0xff] }
   0xf   :  { %v343_v57 = vld [vmem:[%s1923_s3 + $0x138] sm:$0xff]  ;;  %1022 = vmatpush1.bf16.msra.mxu0 %v1021_v42  ;;  %v1027_v60 = vpack.c.bf16 %v341_v55, %v337_v54  ;;  %v340_v62 = vld [vmem:[%s1923_s3 + $0x120] sm:$0xff]  ;;  %v338_v63 = vld [vmem:[%s1923_s3 + $0x110] sm:$0xff] }
  0x10   :  { %1054 = vmatpush1.bf16.msra.mxu1 %v1053_v46  ;;  %1024 = vmatprep.subr.bf16.mxu0 %v1023_v47  ;;  %v1059_v0 = vpack.c.bf16 %v343_v57, %v339_v56  ;;  %v342_v1 = vld [vmem:[%s1923_s3 + $0x130] sm:$0xff]  ;;  %v345_v2 = vld [vmem:[%s1923_s3 + $0x148] sm:$0xff]  ;;  %v347_v4 = vld [vmem:[%s1923_s3 + $0x158] sm:$0xff]  ;;  %v1029_v6 = vpack.c.bf16 %v340_v62, %v336_v61 }
  0x11   :  { %1056 = vmatprep.subr.bf16.mxu1 %v1055_v51  ;;  %v349_v3 = vld [vmem:[%s1923_s3 + $0x168] sm:$0xff]  ;;  %v351_v5 = vld [vmem:[%s1923_s3 + $0x178] sm:$0xff]  ;;  %v1061_v7 = vpack.c.bf16 %v342_v1, %v338_v63  ;;  %v344_v9 = vld [vmem:[%s1923_s3 + $0x140] sm:$0xff] }
  0x12   :  { %v1031_v8 = vpack.c.bf16 %v349_v3, %v345_v2  ;;  %v348_v10 = vld [vmem:[%s1923_s3 + $0x160] sm:$0xff]  ;;  %v346_v11 = vld [vmem:[%s1923_s3 + $0x150] sm:$0xff]  ;;  %v1063_v12 = vpack.c.bf16 %v351_v5, %v347_v4  ;;  %v353_v14 = vld [vmem:[%s1923_s3 + $0x188] sm:$0xff] }
  0x13   :  { %1026 = vmatpush1.bf16.msra.mxu0 %v1025_v58  ;;  %v350_v13 = vld [vmem:[%s1923_s3 + $0x170] sm:$0xff]  ;;  %v357_v15 = vld [vmem:[%s1923_s3 + $0x1a8] sm:$0xff]  ;;  %v355_v16 = vld [vmem:[%s1923_s3 + $0x198] sm:$0xff]  ;;  %v1033_v18 = vpack.c.bf16 %v348_v10, %v344_v9 }
  0x14   :  { %1058 = vmatpush1.bf16.msra.mxu1 %v1057_v59  ;;  %1028 = vmatprep.subr.bf16.mxu0 %v1027_v60  ;;  %v359_v17 = vld [vmem:[%s1923_s3 + $0x1b8] sm:$0xff]  ;;  %v352_v19 = vld [vmem:[%s1923_s3 + $0x180] sm:$0xff]  ;;  %v1065_v20 = vpack.c.bf16 %v350_v13, %v346_v11  ;;  %v1035_v21 = vpack.c.bf16 %v357_v15, %v353_v14  ;;  %v354_v23 = vld [vmem:[%s1923_s3 + $0x190] sm:$0xff] }
  0x15   :  { %1060 = vmatprep.subr.bf16.mxu1 %v1059_v0  ;;  %v356_v22 = vld [vmem:[%s1923_s3 + $0x1a0] sm:$0xff]  ;;  %v30_v24 = vld [vmem:[%s1924_s5 + $0x8] sm:$0x3]  ;;  %v1067_v25 = vpack.c.bf16 %v359_v17, %v355_v16  ;;  %v358_v26 = vld [vmem:[%s1923_s3 + $0x1b0] sm:$0xff] }
  0x16   :  { %v361_v27 = vld [vmem:[%s1923_s3 + $0x1c8] sm:$0xff]  ;;  %38 = vperm.xlu0 %1085, %v30_v24   ;;  %v363_v29 = vld [vmem:[%s1923_s3 + $0x1d8] sm:$0xff]  ;;  %v29_v31 = vld [vmem:[%s1924_s5] sm:$0xff]  ;;  %v1037_v32 = vpack.c.bf16 %v356_v22, %v352_v19  ;;  %v1069_v33 = vpack.c.bf16 %v358_v26, %v354_v23 }
  0x17   :  { %1030 = vmatpush1.bf16.msra.mxu0 %v1029_v6  ;;  %v365_v28 = vld [vmem:[%s1923_s3 + $0x1e8] sm:$0xff]  ;;  %v367_v30 = vld [vmem:[%s1923_s3 + $0x1f8] sm:$0xff]  ;;  %v360_v35 = vld [vmem:[%s1923_s3 + $0x1c0] sm:$0xff] }
  0x18   :  { %1062 = vmatpush1.bf16.msra.mxu1 %v1061_v7  ;;  %1032 = vmatprep.subr.bf16.mxu0 %v1031_v8  ;;  %v1039_v34 = vpack.c.bf16 %v365_v28, %v361_v27  ;;  %v364_v36 = vld [vmem:[%s1923_s3 + $0x1e0] sm:$0xff]  ;;  %v1071_v37 = vpack.c.bf16 %v367_v30, %v363_v29  ;;  %v362_v38 = vld [vmem:[%s1923_s3 + $0x1d0] sm:$0xff] }
  0x19   :  { %1064 = vmatprep.subr.bf16.mxu1 %v1063_v12  ;;  %v366_v39 = vld [vmem:[%s1923_s3 + $0x1f0] sm:$0xff]  ;;  %v1041_v40 = vpack.c.bf16 %v364_v36, %v360_v35  ;;  %v303_v42 = vld [vmem:[%s1925_s1] sm:$0xff]  ;;  %s1112_s1 = smov 17   ;;  %s1113_s3 = smov 16  }
  0x1a   :  { %33 = vperm.xlu0 %1085, %v29_v31   ;;  %v1073_v41 = vpack.c.bf16 %v366_v39, %v362_v38 }
  0x1b   :  { %1034 = vmatpush1.bf16.msra.mxu0 %v1033_v18 }
  0x1c   :  { %1066 = vmatpush1.bf16.msra.mxu1 %v1065_v20  ;;  %1036 = vmatprep.subr.bf16.mxu0 %v1035_v21 }
  0x1d   :  { %1068 = vmatprep.subr.bf16.mxu1 %v1067_v25 }
  0x1f   :  { %1038 = vmatpush1.bf16.msra.mxu0 %v1037_v32 }
  0x20   :  { %1070 = vmatpush1.bf16.msra.mxu1 %v1069_v33  ;;  %1040 = vmatprep.subr.bf16.mxu0 %v1039_v34 }
  0x21   :  { %1072 = vmatprep.subr.bf16.mxu1 %v1071_v37 }
  0x23   :  { %1042 = vmatpush1.bf16.msra.mxu0 %v1041_v40 }
  0x24   :  { %1074 = vmatpush1.bf16.msra.mxu1 %v1073_v41 }
  0x26   :  { %433 = vmatmul.mubr.f32.vlgmr.msra.gmra.mrb[4].mxu0 %v303_v42 }
  0x27   :  { %504 = vmatmul.mubr.f32.vlgmr.msra.gmra.mrb[4].mxu1 %v303_v42 }
  0x95   :  { %v39_v43 = vpop.permute.xlu0 %38 }
  0x99   :  { %v34_v48 = vpop.permute.xlu0 %33 }
  0xd7   :  { %v114_v44 = vpop.f32.mrb[0].mxu0  ;;  %v191_v45 = vpop.f32.mrb[0].mxu1 }
  0xd8   :  { %v116_v46 = vpop.f32.mrb[1].mxu0  ;;  %v193_v47 = vpop.f32.mrb[1].mxu1  ;;  %v192_v50 = vadd.f32 %v191_v45, %v34_v48  ;;  %v115_v55 = vadd.f32 %v114_v44, %v34_v48 }
  0xd9   :  { %v194_v54 = vadd.f32 %v193_v47, %v34_v48  ;;  %v117_v59 = vadd.f32 %v116_v46, %v34_v48 }
  0xdb   :  { %v120_v49 = vpop.f32.mrb[2].mxu0 }
  0xdc   :  { %v121_v51 = vadd.f32 %v120_v49, %v39_v43  ;;  %v197_v52 = vpop.f32.mrb[2].mxu1  ;;  %v122_v53 = vpop.f32.mrb[3].mxu0 }
  0xdd   :  { %v198_v56 = vadd.f32 %v197_v52, %v39_v43  ;;  %v123_v57 = vadd.f32 %v122_v53, %v39_v43  ;;  %v199_v58 = vpop.f32.mrb[3].mxu1 }
  0xde   :  { %v203_v60 = vsel %vm202_vm1, %v121_v51, -inf  ;;  %v200_v61 = vadd.f32 %v199_v58, %v39_v43 }
  0xdf   :  { %v204_v62 = vmax.f32 %v115_v55, %v203_v60  ;;  %v219_v63 = vsel %vm202_vm1, %v198_v56, -inf  ;;  %v211_v0 = vsel %vm202_vm1, %v123_v57, -inf }
  0xe0   :  { %v220_v1 = vmax.f32 %v192_v50, %v219_v63  ;;  %v212_v2 = vmax.f32 %v117_v59, %v211_v0  ;;  %v227_v3 = vsel %vm202_vm1, %v200_v61, -inf }
  0xe1   :  { %v205_v4 = vrot.slane %v204_v62, 4  ;;  %v228_v5 = vmax.f32 %v194_v54, %v227_v3 }
  0xe2   :  { %v221_v6 = vrot.slane %v220_v1, 4  ;;  %v213_v7 = vrot.slane %v212_v2, 4 }
  0xe3   :  { %v206_v8 = vmax.f32 %v204_v62, %v205_v4  ;;  %v229_v9 = vrot.slane %v228_v5, 4 }
  0xe4   :  { %v222_v10 = vmax.f32 %v220_v1, %v221_v6  ;;  %v214_v11 = vmax.f32 %v212_v2, %v213_v7 }
  0xe5   :  { %v207_v12 = vrot.slane %v206_v8, 2  ;;  %v230_v13 = vmax.f32 %v228_v5, %v229_v9 }
  0xe6   :  { %v223_v14 = vrot.slane %v222_v10, 2  ;;  %v215_v15 = vrot.slane %v214_v11, 2 }
  0xe7   :  { %v208_v16 = vmax.f32 %v206_v8, %v207_v12  ;;  %v231_v17 = vrot.slane %v230_v13, 2 }
  0xe8   :  { %v224_v18 = vmax.f32 %v222_v10, %v223_v14  ;;  %v216_v19 = vmax.f32 %v214_v11, %v215_v15 }
  0xe9   :  { %v209_v20 = vrot.slane %v208_v16, 1  ;;  %v232_v21 = vmax.f32 %v230_v13, %v231_v17 }
  0xea   :  { %v225_v22 = vrot.slane %v224_v18, 1  ;;  %v217_v23 = vrot.slane %v216_v19, 1 }
  0xeb   :  { %v210_v24 = vmax.f32 %v208_v16, %v209_v20  ;;  %v233_v25 = vrot.slane %v232_v21, 1 }
  0xec   :  { %v226_v26 = vmax.f32 %v224_v18, %v225_v22  ;;  %v218_v27 = vmax.f32 %v216_v19, %v217_v23 }
  0xed   :  { %v235_v28 = vsub.f32 %v115_v55, %v210_v24  ;;  %v239_v29 = vsub.f32 %v121_v51, %v210_v24  ;;  %v234_v30 = vmax.f32 %v232_v21, %v233_v25  ;;  %v510_v24 = vlaneseq }
  0xee   :  { %v237_v31 = vsub.f32 %v192_v50, %v226_v26  ;;  %v241_v32 = vsub.f32 %v198_v56, %v226_v26  ;;  %v236_v33 = vsub.f32 %v117_v59, %v218_v27  ;;  %v240_v34 = vsub.f32 %v123_v57, %v218_v27 }
  0xef   :  { %v243_v35 = vmul.f32 1.442695, %v235_v28  ;;  %v251_v36 = vmul.f32 1.442695, %v239_v29  ;;  %v238_v37 = vsub.f32 %v194_v54, %v234_v30  ;;  %v242_v38 = vsub.f32 %v200_v61, %v234_v30 }
  0xf0   :  { %v247_v39 = vmul.f32 1.442695, %v237_v31  ;;  %v255_v40 = vmul.f32 1.442695, %v241_v32  ;;  %v245_v41 = vmul.f32 1.442695, %v236_v33 }
  0xf1   :  { %1086 = vpow2.f32 %v243_v35  ;;  %v253_v42 = vmul.f32 1.442695, %v240_v34  ;;  %v249_v43 = vmul.f32 1.442695, %v238_v37  ;;  %v257_v44 = vmul.f32 1.442695, %v242_v38 }
  0xf2   :  { %1088 = vpow2.f32 %v251_v36  ;;  %v1441_v26 = vshrl.u32 %v510_v24, 7 }
  0xf3   :  { %1090 = vpow2.f32 %v247_v39 }
  0xf4   :  { %1092 = vpow2.f32 %v255_v40  ;;  %v749_v28 = vsub.s32 4, %v1441_v26 }
  0xf5   :  { %1094 = vpow2.f32 %v245_v41 }
  0xf6   :  { %1096 = vpow2.f32 %v253_v42 }
  0xf7   :  { %1098 = vpow2.f32 %v249_v43 }
  0xf8   :  { %1100 = vpow2.f32 %v257_v44 }
  0xf9   :  { %v1388_v45 = vpop.f32.mrb[4].mxu0 }
  0xfa   :  { %v1390_v46 = vpop.f32.mrb[4].mxu1  ;;  %547 = vrot.lane.b32.xlu1 %v1388_v45, %s1112_s1  ;;  %v1393_v47 = vpop.f32.mrb[5].mxu0 }
  0xfb   :  { %v1395_v48 = vpop.eup %1086  ;;  %551 = vrot.lane.b32.xlu0 %v1390_v46, %s1112_s1  ;;  %v1398_v49 = vpop.f32.mrb[5].mxu1 }
  0xfc   :  { %v1400_v50 = vpop.eup %1088 }
  0xfd   :  { %v1402_v51 = vpop.eup %1090  ;;  %v259_v52 = vsel %vm202_vm1, %v1400_v50, 0.0 }
  0xfe   :  { %v1406_v53 = vpop.eup %1092  ;;  %v260_v54 = vadd.f32 %v1395_v48, %v259_v52  ;;  %549 = vrot.lane.b32.xlu1 %v1393_v47, %s1112_s1  ;;  %v1503_v52 = vand.u32 127, %v510_v24 }
  0xff   :  { %v1410_v55 = vpop.eup %1094  ;;  %v275_v56 = vsel %vm202_vm1, %v1406_v53, 0.0  ;;  %596 = vrot.lane.b32.xlu0 %v1388_v45, %s1113_s3 }
 0x100   :  { %v1416_v57 = vpop.eup %1096  ;;  %v261_v58 = vrot.slane %v260_v54, 4  ;;  %v276_v59 = vadd.f32 %v1402_v51, %v275_v56  ;;  %v513_v56 = vadd.s32 256, %v1503_v52  ;;  %vm555_vm4 = vcmp.lt.s32.totalorder %v1503_v52, 17 }
 0x101   :  { %v1419_v60 = vpop.eup %1098  ;;  %v267_v61 = vsel %vm202_vm1, %v1416_v57, 0.0  ;;  %vm604_vm11 = vcmp.lt.s32.totalorder %v1503_v52, 16  ;;  %vm653_vm15 = vcmp.lt.s32.totalorder %v1503_v52, 15 }
 0x102   :  { %v1423_v62 = vpop.eup %1100  ;;  %v262_v63 = vadd.f32 %v261_v58, %v260_v54  ;;  %v277_v0 = vrot.slane %v276_v59, 4  ;;  %v268_v1 = vadd.f32 %v1410_v55, %v267_v61  ;;  %553 = vrot.lane.b32.xlu1 %v1398_v49, %s1112_s1 }
 0x103   :  { %v283_v2 = vsel %vm202_vm1, %v1423_v62, 0.0  ;;  %600 = vrot.lane.b32.xlu0 %v1390_v46, %s1113_s3 }
 0x104   :  { %v263_v3 = vrot.slane %v262_v63, 2  ;;  %v278_v4 = vadd.f32 %v277_v0, %v276_v59  ;;  %v269_v5 = vrot.slane %v268_v1, 4  ;;  %v284_v6 = vadd.f32 %v1419_v60, %v283_v2 }
 0x105   :  { %v517_v59 = vand.u32 255, %v513_v56 }
 0x106   :  { %v264_v7 = vadd.f32 %v263_v3, %v262_v63  ;;  %v279_v8 = vrot.slane %v278_v4, 2  ;;  %v270_v9 = vadd.f32 %v269_v5, %v268_v1  ;;  %v285_v10 = vrot.slane %v284_v6, 4  ;;  %598 = vrot.lane.b32.xlu1 %v1393_v47, %s1113_s3 }
 0x107   :  { %645 = vrot.lane.b32.xlu0 %v1388_v45, %s1114_s12  ;;  %v1519_v0 = vshra.s32 %v517_v59, 4  ;;  %v1521_v1 = vand.u32 15, %v517_v59 }
 0x108   :  { %v265_v11 = vrot.slane %v264_v7, 1  ;;  %v280_v12 = vadd.f32 %v279_v8, %v278_v4  ;;  %v271_v13 = vrot.slane %v270_v9, 2  ;;  %v286_v14 = vadd.f32 %v285_v10, %v284_v6 }
 0x109   :  { %v1532_v6 = vsub.s32 0, %v1441_v26  ;;  %v1541_v10 = vsub.s32 3, %v1441_v26  ;;  %vm529_vm5 = vcmp.ge.s32.totalorder %v1519_v0, 1  ;;  %vm1928_vm6 = vcmp.ge.s32.totalorder %v1521_v1, 1 }
 0x10a   :  { %v266_v15 = vadd.f32 %v265_v11, %v264_v7  ;;  %v281_v16 = vrot.slane %v280_v12, 1  ;;  %v272_v17 = vadd.f32 %v271_v13, %v270_v9  ;;  %v287_v18 = vrot.slane %v286_v14, 2  ;;  %602 = vrot.lane.b32.xlu1 %v1398_v49, %s1113_s3  ;;  %vm1575_vm12 = vmand %vm529_vm5, %vm1928_vm6 }
 0x10b   :  { %649 = vrot.lane.b32.xlu0 %v1390_v46, %s1114_s12  ;;  %v1535_v7 = vsub.s32 1, %v1441_v26  ;;  %v1538_v9 = vsub.s32 2, %v1441_v26  ;;  %vm541_vm14 = vcmp.lt.s32.totalorder %v1521_v1, 15 }
 0x10c   :  { %1102 = vrcp.f32 %v266_v15  ;;  %v282_v19 = vadd.f32 %v281_v16, %v280_v12  ;;  %v273_v20 = vrot.slane %v272_v17, 1  ;;  %v288_v21 = vadd.f32 %v287_v18, %v286_v14 }
 0x10d   :  { %v1549_v12 = vsub.s32 5, %v1441_v26 }
 0x10e   :  { %1104 = vrcp.f32 %v282_v19  ;;  %v274_v22 = vadd.f32 %v273_v20, %v272_v17  ;;  %v289_v23 = vrot.slane %v288_v21, 1  ;;  %647 = vrot.lane.b32.xlu1 %v1393_v47, %s1114_s12 }
 0x10f   :  { %698 = vrot.lane.b32.xlu0 %v1388_v45, %s1115_s13 }
 0x110   :  { %1106 = vrcp.f32 %v274_v22  ;;  %v290_v25 = vadd.f32 %v289_v23, %v288_v21 }
 0x112   :  { %1108 = vrcp.f32 %v290_v25  ;;  %651 = vrot.lane.b32.xlu1 %v1398_v49, %s1114_s12 }
 0x113   :  { %702 = vrot.lane.b32.xlu0 %v1390_v46, %s1115_s13 }
 0x116   :  { %v1103_v27 = vpop.eup %1102  ;;  %700 = vrot.lane.b32.xlu1 %v1393_v47, %s1115_s13 }
 0x117   :  { %v1447_v29 = vmul.f32 %v1103_v27, %v1395_v48  ;;  %771 = vrot.lane.b32.xlu0 %v1388_v45, %s1116_s0  ;;  %v1451_v30 = vmul.f32 %v1103_v27, %v1400_v50 }
 0x118   :  { %v1105_v31 = vpop.eup %1104 }
 0x119   :  { %v1454_v32 = vmul.f32 %v1105_v31, %v1402_v51  ;;  %v750_v34 = vrot.slane %v1447_v29, %v749_v28  ;;  %v1488_v50 = vmul.f32 %v1105_v31, %v1406_v53  ;;  %v579_v17 = vrot.slane %v1447_v29, %v1532_v6 }
 0x11a   :  { %v1107_v33 = vpop.eup %1106  ;;  %704 = vrot.lane.b32.xlu1 %v1398_v49, %s1115_s13  ;;  %v624_v19 = vrot.slane %v1447_v29, %v1535_v7 }
 0x11b   :  { %v1459_v35 = vmul.f32 %v1107_v33, %v1410_v55  ;;  %775 = vrot.lane.b32.xlu0 %v1390_v46, %s1116_s0  ;;  %v1463_v37 = vmul.f32 %v750_v34, %v1388_v45  ;;  %v758_v38 = vrot.slane %v1454_v32, %v749_v28  ;;  %v1485_v48 = vmul.f32 %v1107_v33, %v1416_v57 }
 0x11c   :  { %v1109_v36 = vpop.eup %1108  ;;  %v512_v55 = vadd.s32 128, %v1503_v52  ;;  %v587_v16 = vrot.slane %v1454_v32, %v1532_v6  ;;  %v632_v22 = vrot.slane %v1454_v32, %v1535_v7  ;;  %v685_v25 = vrot.slane %v1454_v32, %v1538_v9 }
 0x11d   :  { %v1467_v39 = vmul.f32 %v1109_v36, %v1419_v60  ;;  %v754_v40 = vrot.slane %v1459_v35, %v749_v28  ;;  %v1472_v41 = vmul.f32 %v758_v38, %v1390_v46  ;;  %v1491_v51 = vmul.f32 %v1109_v36, %v1423_v62 }
 0x11e   :  { %773 = vrot.lane.b32.xlu1 %v1393_v47, %s1116_s0  ;;  %v583_v27 = vrot.slane %v1459_v35, %v1532_v6  ;;  %v628_v31 = vrot.slane %v1459_v35, %v1535_v7  ;;  %v681_v33 = vrot.slane %v1459_v35, %v1538_v9  ;;  %v734_v34 = vrot.slane %v1454_v32, %v1541_v10 }
 0x11f   :  { %820 = vrot.lane.b32.xlu0 %v1388_v45, %s1117_s14  ;;  %v1476_v42 = vmul.f32 %v754_v40, %v1393_v47  ;;  %v762_v43 = vrot.slane %v1467_v39, %v749_v28  ;;  %1933 = vst [vmem:[#allocation2_spill] sm:$0xff] %v1491_v51  ;;  %v738_v21 = vrot.slane %v1467_v39, %v1541_v10 }
 0x121   :  { %v1481_v44 = vmul.f32 %v762_v43, %v1398_v49 }
 0x122   :  { %777 = vrot.lane.b32.xlu1 %v1398_v49, %s1116_s0 }
 0x123   :  { %824 = vrot.lane.b32.xlu0 %v1390_v46, %s1117_s14 }
 0x126   :  { %822 = vrot.lane.b32.xlu1 %v1393_v47, %s1117_s14 }
 0x127   :  { %873 = vrot.lane.b32.xlu0 %v1388_v45, %s1118_s15 }
 0x12a   :  { %826 = vrot.lane.b32.xlu1 %v1398_v49, %s1117_s14 }
 0x12b   :  { %877 = vrot.lane.b32.xlu0 %v1390_v46, %s1118_s15 }
 0x12e   :  { %875 = vrot.lane.b32.xlu1 %v1393_v47, %s1118_s15 }
 0x12f   :  { %922 = vrot.lane.b32.xlu0 %v1388_v45, %s1119_s16  ;;  %v514_v45 = vadd.s32 384, %v1503_v52 }
 0x132   :  { %879 = vrot.lane.b32.xlu1 %v1398_v49, %s1118_s15 }
 0x133   :  { %926 = vrot.lane.b32.xlu0 %v1390_v46, %s1119_s16  ;;  %v516_v46 = vand.u32 255, %v512_v55 }
 0x135   :  { %v1515_v61 = vshra.s32 %v516_v46, 4  ;;  %v1517_v62 = vand.u32 15, %v516_v46 }
 0x136   :  { %924 = vrot.lane.b32.xlu1 %v1393_v47, %s1119_s16  ;;  %v515_v47 = vand.u32 255, %v1503_v52 }
 0x137   :  { %vm528_vm2 = vcmp.ge.s32.totalorder %v1515_v61, 1  ;;  %vm1929_vm3 = vcmp.ge.s32.totalorder %v1517_v62, 1 }
 0x138   :  { %v1523_v2 = vshra.s32 %v515_v47, 4  ;;  %v1527_v4 = vand.u32 15, %v515_v47  ;;  %vm1563_vm13 = vmand %vm528_vm2, %vm1929_vm3  ;;  %v591_v47 = vrot.slane %v1467_v39, %v1532_v6 }
 0x13a   :  { %928 = vrot.lane.b32.xlu1 %v1398_v49, %s1119_s16  ;;  %v518_v49 = vand.u32 255, %v514_v45  ;;  %vm527_vm7 = vcmp.ge.s32.totalorder %v1523_v2, 1  ;;  %vm1930_vm9 = vcmp.ge.s32.totalorder %v1527_v4, 1  ;;  %vm539_vm0 = vcmp.lt.s32.totalorder %v1527_v4, 15 }
 0x13b   :  { %vm1591_vm6 = vmand %vm527_vm7, %vm1930_vm9 }
 0x13c   :  { %v1525_v3 = vshra.s32 %v518_v49, 4  ;;  %v1529_v5 = vand.u32 15, %v518_v49 }
 0x13e   :  { %vm530_vm8 = vcmp.ge.s32.totalorder %v1525_v3, 1  ;;  %vm1931_vm10 = vcmp.ge.s32.totalorder %v1529_v5, 1  ;;  %vm542_vm1 = vcmp.lt.s32.totalorder %v1529_v5, 15 }
 0x13f   :  { %vm1611_vm9 = vmand %vm530_vm8, %vm1931_vm10  ;;  %vm1942_vm10 = vcmp.lt.s32.totalorder %v1517_v62, 15 }
 0x140   :  { %vm1637_vm3 = vmand %vm528_vm2, %vm1942_vm10 }
 0x16c   :  { %v1505_v53 = vpop.permute.xlu1 %547 }
 0x16d   :  { %v1507_v54 = vpop.permute.xlu0 %551 }
 0x170   :  { %v550_v57 = vpop.permute.xlu1 %549 }
 0x171   :  { %v1512_v58 = vpop.permute.xlu0 %596  ;;  %v557_v36 = vsel %vm555_vm4, %v550_v57, %v1507_v54  ;;  %v558_v38 = vsel %vm555_vm4, %v1505_v53, %v550_v57 }
 0x174   :  { %v554_v60 = vpop.permute.xlu1 %553 }
 0x175   :  { %v601_v63 = vpop.permute.xlu0 %600  ;;  %v556_v40 = vsel %vm555_vm4, %v1507_v54, %v554_v60  ;;  %v559_v43 = vsel %vm555_vm4, %v554_v60, %v1505_v53  ;;  %vm1649_vm4 = vmand %vm529_vm5, %vm541_vm14 }
 0x176   :  { %v575_v20 = vsel %vm1611_vm9, %v556_v40, 0.0  ;;  %vm1955_vm9 = vcmp.ge.s32.totalorder %v1521_v1, 1 }
 0x178   :  { %v599_v8 = vpop.permute.xlu1 %598 }
 0x179   :  { %v1546_v11 = vpop.permute.xlu0 %645  ;;  %v606_v23 = vsel %vm604_vm11, %v599_v8, %v601_v63  ;;  %v607_v24 = vsel %vm604_vm11, %v1512_v58, %v599_v8  ;;  %v730_v8 = vrot.slane %v1459_v35, %v1541_v10 }
 0x17a   :  { %v618_v45 = vsel %vm528_vm2, %v607_v24, 0.0  ;;  %v619_v57 = vsel %vm529_vm5, %v606_v23, 0.0  ;;  %v573_v23 = vsel %vm1563_vm13, %v558_v38, 0.0  ;;  %v574_v24 = vsel %vm1575_vm12, %v557_v36, 0.0  ;;  %vm1679_vm2 = vmand %vm527_vm7, %vm539_vm0 }
 0x17b   :  { %v639_v13 = vmul.f32 %v632_v22, %v619_v57  ;;  %vm1691_vm5 = vmand %vm530_vm8, %vm542_vm1  ;;  %v594_v55 = vmul.f32 %v587_v16, %v574_v24  ;;  %v689_v57 = vrot.slane %v1467_v39, %v1538_v9  ;;  %vm1958_vm12 = vcmp.ge.s32.totalorder %v1527_v4, 1 }
 0x17c   :  { %v603_v14 = vpop.permute.xlu1 %602  ;;  %vm1959_vm13 = vcmp.ge.s32.totalorder %v1529_v5, 1 }
 0x17d   :  { %v650_v18 = vpop.permute.xlu0 %649  ;;  %v605_v49 = vsel %vm604_vm11, %v601_v63, %v603_v14  ;;  %v608_v60 = vsel %vm604_vm11, %v603_v14, %v1512_v58  ;;  %v638_v63 = vmul.f32 %v628_v31, %v618_v45  ;;  %v636_v45 = vrot.slane %v1467_v39, %v1535_v7 }
 0x17e   :  { %v617_v36 = vsel %vm527_vm7, %v608_v60, 0.0  ;;  %v620_v22 = vsel %vm530_vm8, %v605_v49, 0.0  ;;  %v643_v24 = vadd.f32 %v639_v13, %v594_v55  ;;  %vm1954_vm8 = vcmp.ge.s32.totalorder %v1517_v62, 1 }
 0x17f   :  { %v640_v16 = vmul.f32 %v636_v45, %v620_v22 }
 0x180   :  { %v648_v56 = vpop.permute.xlu1 %647 }
 0x181   :  { %v699_v54 = vpop.permute.xlu0 %698  ;;  %v655_v46 = vsel %vm653_vm15, %v648_v56, %v650_v18  ;;  %v656_v59 = vsel %vm653_vm15, %v1546_v11, %v648_v56  ;;  %v572_v56 = vsel %vm1591_vm6, %v559_v43, 0.0  ;;  %v593_v43 = vmul.f32 %v583_v27, %v573_v23 }
 0x182   :  { %v671_v14 = vsel %vm1637_vm3, %v656_v59, 0.0  ;;  %v672_v15 = vsel %vm1649_vm4, %v655_v46, 0.0  ;;  %vm779_vm3 = vcmp.lt.s32.totalorder %v1503_v52, 127  ;;  %v592_v49 = vmul.f32 %v579_v17, %v572_v56 }
 0x183   :  { %v691_v53 = vmul.f32 %v681_v33, %v671_v14  ;;  %v692_v46 = vmul.f32 %v685_v25, %v672_v15  ;;  %v637_v27 = vmul.f32 %v624_v19, %v617_v36  ;;  %v642_v23 = vadd.f32 %v638_v63, %v593_v43 }
 0x184   :  { %v652_v28 = vpop.permute.xlu1 %651  ;;  %vm1951_vm6 = vcmp.lt.s32.totalorder %v1503_v52, 1  ;;  %v1953_v33 = vrot.slane %v1447_v29, %v1538_v9  ;;  %v726_v9 = vrot.slane %v1447_v29, %v1541_v10  ;;  %vm531_vm4 = vcmp.lt.s32.totalorder %v1523_v2, 15  ;;  %v543_v2 = vld [vmem:[%s1926_s2] sm:$0xff] }
 0x185   :  { %v703_v31 = vpop.permute.xlu0 %702  ;;  %v654_v38 = vsel %vm653_vm15, %v650_v18, %v652_v28  ;;  %v657_v40 = vsel %vm653_vm15, %v652_v28, %v1546_v11  ;;  %v595_v11 = vmul.f32 %v591_v47, %v575_v20  ;;  %vm1952_vm7 = vmmov %vm1951_vm6  ;;  %v695_v20 = vadd.f32 %v691_v53, %v642_v23 }
 0x186   :  { %v670_v59 = vsel %vm1679_vm2, %v657_v40, 0.0  ;;  %v673_v18 = vsel %vm1691_vm5, %v654_v38, 0.0  ;;  %v696_v47 = vadd.f32 %v692_v46, %v643_v24  ;;  %v641_v13 = vadd.f32 %v637_v27, %v592_v49  ;;  %vm1956_vm10 = vmmov %vm1951_vm6 }
 0x187   :  { %v690_v58 = vmul.f32 %v1953_v33, %v670_v59  ;;  %v693_v14 = vmul.f32 %v689_v57, %v673_v18  ;;  %v644_v15 = vadd.f32 %v640_v16, %v595_v11  ;;  %vm1957_vm11 = vmmov %vm1951_vm6  ;;  %vm1960_vm15 = vcmp.lt.s32.totalorder %v1517_v62, 15 }
 0x188   :  { %v701_v60 = vpop.permute.xlu1 %700  ;;  %v807_v33 = vrot.slane %v1454_v32, %v1549_v12  ;;  %vm532_vm2 = vcmp.lt.s32.totalorder %v1515_v61, 15  ;;  %vm828_vm5 = vcmp.lt.s32.totalorder %v1503_v52, 113  ;;  %v982_v61 = vrot.slane %v1485_v48, %v1535_v7 }
 0x189   :  { %v772_v28 = vpop.permute.xlu0 %771  ;;  %v708_v51 = vsel %vm1951_vm6, %v701_v60, %v703_v31  ;;  %v709_v25 = vsel %vm1952_vm7, %v699_v54, %v701_v60  ;;  %vm1961_vm6 = vmmov %vm1958_vm12 }
 0x18a   :  { %v720_v17 = vsel %vm1954_vm8, %v709_v25, 0.0  ;;  %v721_v19 = vsel %vm1955_vm9, %v708_v51, 0.0  ;;  %vm1772_vm7 = vmand %vm531_vm4, %vm1961_vm6  ;;  %vm533_vm9 = vcmp.lt.s32.totalorder %v1519_v0, 15  ;;  %vm881_vm6 = vcmp.lt.s32.totalorder %v1503_v52, 112  ;;  %v1977_v0 = vld [vmem:[#allocation2_spill] sm:$0xff] }
 0x18b   :  { %v740_v56 = vmul.f32 %v730_v8, %v720_v17  ;;  %v741_v63 = vmul.f32 %v734_v34, %v721_v19  ;;  %v694_v8 = vadd.f32 %v690_v58, %v641_v13  ;;  %v697_v34 = vadd.f32 %v693_v14, %v644_v15 }
 0x18c   :  { %v705_v36 = vpop.permute.xlu1 %704  ;;  %v811_v58 = vrot.slane %v1467_v39, %v1549_v12  ;;  %v851_v17 = vsub.s32 6, %v1441_v26 }
 0x18d   :  { %v744_v22 = vadd.f32 %v740_v56, %v695_v20  ;;  %v745_v38 = vadd.f32 %v741_v63, %v696_v47  ;;  %v776_v40 = vpop.permute.xlu0 %775  ;;  %v707_v43 = vsel %vm1956_vm10, %v703_v31, %v705_v36  ;;  %v710_v51 = vsel %vm1957_vm11, %v705_v36, %v699_v54 }
 0x18e   :  { %v719_v55 = vsel %vm1958_vm12, %v710_v51, 0.0  ;;  %v722_v45 = vsel %vm1959_vm13, %v707_v43, 0.0  ;;  %v799_v31 = vrot.slane %v1447_v29, %v1549_v12  ;;  %v803_v54 = vrot.slane %v1459_v35, %v1549_v12 }
 0x18f   :  { %v739_v57 = vmul.f32 %v726_v9, %v719_v55  ;;  %v742_v53 = vmul.f32 %v738_v21, %v722_v45  ;;  %v768_v10 = vadd.f32 %v1476_v42, %v744_v22  ;;  %v769_v46 = vadd.f32 %v1472_v41, %v745_v38 }
 0x190   :  { %v774_v59 = vpop.permute.xlu1 %773  ;;  %v852_v21 = vrot.slane %v1447_v29, %v851_v17  ;;  %v856_v36 = vrot.slane %v1459_v35, %v851_v17  ;;  %vm534_vm10 = vcmp.lt.s32.totalorder %v1525_v3, 15  ;;  %vm1965_vm11 = vcmp.ge.s32.totalorder %v1521_v1, 1 }
 0x191   :  { %v743_v18 = vadd.f32 %v739_v57, %v694_v8  ;;  %v746_v49 = vadd.f32 %v742_v53, %v697_v34  ;;  %v821_v11 = vpop.permute.xlu0 %820  ;;  %v781_v27 = vsel %vm779_vm3, %v774_v59, %v776_v40  ;;  %v782_v16 = vsel %vm779_vm3, %v772_v28, %v774_v59  ;;  %vm1794_vm12 = vmand %vm533_vm9, %vm1965_vm11 }
 0x192   :  { %v792_v42 = vsel %vm539_vm0, %v782_v16, 0.0  ;;  %v793_v41 = vsel %vm1960_vm15, %v781_v27, 0.0  ;;  %vm836_vm15 = vmand %vm534_vm10, %vm1959_vm13  ;;  %v860_v57 = vrot.slane %v1454_v32, %v851_v17  ;;  %v864_v53 = vrot.slane %v1467_v39, %v851_v17 }
 0x193   :  { %v767_v60 = vadd.f32 %v1463_v37, %v743_v18  ;;  %v812_v23 = vmul.f32 %v799_v31, %v792_v42  ;;  %v813_v24 = vmul.f32 %v803_v54, %v793_v41  ;;  %v770_v25 = vadd.f32 %v1481_v44, %v746_v49 }
 0x194   :  { %v778_v14 = vpop.permute.xlu1 %777  ;;  %v962_v1 = vrot.slane %v1488_v50, %v1532_v6 }
 0x195   :  { %v816_v19 = vadd.f32 %v812_v23, %v767_v60  ;;  %v817_v20 = vadd.f32 %v813_v24, %v768_v10  ;;  %v825_v47 = vpop.permute.xlu0 %824  ;;  %v780_v37 = vsel %vm779_vm3, %v776_v40, %v778_v14  ;;  %v783_v44 = vsel %vm779_vm3, %v778_v14, %v772_v28  ;;  %vm1964_vm3 = vmmov %vm1954_vm8 }
 0x196   :  { %v794_v56 = vsel %vm541_vm14, %v780_v37, 0.0  ;;  %v795_v12 = vsel %vm542_vm1, %v783_v44, 0.0  ;;  %vm834_vm8 = vmand %vm532_vm2, %vm1964_vm3  ;;  %vm1970_vm3 = vcmp.lt.s32.totalorder %v1517_v62, 15  ;;  %v958_v62 = vrot.slane %v1485_v48, %v1532_v6 }
 0x197   :  { %v814_v13 = vmul.f32 %v807_v33, %v794_v56  ;;  %v815_v15 = vmul.f32 %v811_v58, %v795_v12 }
 0x198   :  { %v823_v28 = vpop.permute.xlu1 %822 }
 0x199   :  { %v818_v9 = vadd.f32 %v814_v13, %v769_v46  ;;  %v819_v22 = vadd.f32 %v815_v15, %v770_v25  ;;  %v874_v38 = vpop.permute.xlu0 %873  ;;  %v830_v40 = vsel %vm828_vm5, %v823_v28, %v825_v47  ;;  %v831_v43 = vsel %vm828_vm5, %v821_v11, %v823_v28 }
 0x19a   :  { %v845_v51 = vsel %vm1772_vm7, %v831_v43, 0.0  ;;  %v846_v8 = vsel %vm834_vm8, %v830_v40, 0.0  ;;  %v900_v46 = vsub.s32 7, %v1441_v26  ;;  %vm1837_vm7 = vmand %vm531_vm4, %vm539_vm0  ;;  %v544_v40 = vld [vmem:[%s1926_s2 + $0x8] sm:$0xff] }
 0x19b   :  { %v865_v55 = vmul.f32 %v852_v21, %v845_v51  ;;  %v866_v45 = vmul.f32 %v856_v36, %v846_v8  ;;  %vm1845_vm8 = vmand %vm532_vm2, %vm1970_vm3  ;;  %v978_v21 = vrot.slane %v1451_v30, %v1535_v7 }
 0x19c   :  { %v827_v10 = vpop.permute.xlu1 %826  ;;  %v901_v26 = vrot.slane %v1447_v29, %v900_v46  ;;  %v905_v23 = vrot.slane %v1459_v35, %v900_v46  ;;  %v909_v29 = vrot.slane %v1454_v32, %v900_v46  ;;  %v913_v35 = vrot.slane %v1467_v39, %v900_v46  ;;  %vm1875_vm0 = vmand %vm533_vm9, %vm541_vm14 }
 0x19d   :  { %v869_v59 = vadd.f32 %v865_v55, %v816_v19  ;;  %v870_v31 = vadd.f32 %v866_v45, %v817_v20  ;;  %v878_v54 = vpop.permute.xlu0 %877  ;;  %v829_v18 = vsel %vm828_vm5, %v825_v47, %v827_v10  ;;  %v832_v49 = vsel %vm828_vm5, %v827_v10, %v821_v11 }
 0x19e   :  { %v847_v27 = vsel %vm1794_vm12, %v829_v18, 0.0  ;;  %v848_v16 = vsel %vm836_vm15, %v832_v49, 0.0  ;;  %vm930_vm5 = vcmp.lt.s32.totalorder %v1503_v52, 111  ;;  %v991_v45 = vmul.f32 %v978_v21, %v543_v2  ;;  %v545_v49 = vld [vmem:[%s1926_s2 + $0x10] sm:$0xff] }
 0x19f   :  { %v867_v42 = vmul.f32 %v860_v57, %v847_v27  ;;  %v868_v41 = vmul.f32 %v864_v53, %v848_v16  ;;  %v992_v53 = vmul.f32 %v982_v61, %v544_v40  ;;  %v966_v10 = vrot.slane %v1977_v0, %v1532_v6 }
 0x1a0   :  { %v876_v60 = vpop.permute.xlu1 %875  ;;  %v986_v46 = vrot.slane %v1488_v50, %v1535_v7  ;;  %v546_v50 = vld [vmem:[%s1926_s2 + $0x18] sm:$0xff] }
 0x1a1   :  { %v871_v24 = vadd.f32 %v867_v42, %v818_v9  ;;  %v872_v25 = vadd.f32 %v868_v41, %v819_v22  ;;  %v883_v33 = vsel %vm881_vm6, %v876_v60, %v878_v54  ;;  %v884_v11 = vsel %vm881_vm6, %v874_v38, %v876_v60  ;;  %v923_v58 = vpop.permute.xlu0 %922 }
 0x1a2   :  { %v894_v14 = vsel %vm531_vm4, %v884_v11, 0.0  ;;  %v895_v17 = vsel %vm532_vm2, %v883_v33, 0.0  ;;  %v954_v9 = vrot.slane %v1451_v30, %v1532_v6  ;;  %vm1883_vm4 = vmand %vm534_vm10, %vm542_vm1  ;;  %v993_v52 = vmul.f32 %v986_v46, %v545_v49 }
 0x1a3   :  { %v914_v19 = vmul.f32 %v901_v26, %v894_v14  ;;  %v915_v20 = vmul.f32 %v905_v23, %v895_v17 }
 0x1a4   :  { %v880_v47 = vpop.permute.xlu1 %879 }
 0x1a5   :  { %v918_v37 = vadd.f32 %v914_v19, %v869_v59  ;;  %v919_v44 = vadd.f32 %v915_v20, %v870_v31  ;;  %v882_v56 = vsel %vm881_vm6, %v878_v54, %v880_v47  ;;  %v885_v12 = vsel %vm881_vm6, %v880_v47, %v874_v38  ;;  %v927_v4 = vpop.permute.xlu0 %926 }
 0x1a6   :  { %v896_v63 = vsel %vm533_vm9, %v882_v56, 0.0  ;;  %v897_v13 = vsel %vm534_vm10, %v885_v12, 0.0  ;;  %v990_v59 = vrot.slane %v1977_v0, %v1535_v7 }
 0x1a7   :  { %v916_v39 = vmul.f32 %v909_v29, %v896_v63  ;;  %v917_v15 = vmul.f32 %v913_v35, %v897_v13 }
 0x1a8   :  { %v925_v36 = vpop.permute.xlu1 %924  ;;  %v994_v60 = vmul.f32 %v990_v59, %v546_v50 }
 0x1a9   :  { %v920_v22 = vadd.f32 %v916_v39, %v871_v24  ;;  %v921_v38 = vadd.f32 %v917_v15, %v872_v25  ;;  %v932_v43 = vsel %vm930_vm5, %v925_v36, %v927_v4  ;;  %v933_v51 = vsel %vm930_vm5, %v923_v58, %v925_v36 }
 0x1aa   :  { %v947_v30 = vsel %vm1837_vm7, %v933_v51, 0.0  ;;  %v948_v8 = vsel %vm1845_vm8, %v932_v43, 0.0 }
 0x1ab   :  { %v967_v34 = vmul.f32 %v954_v9, %v947_v30  ;;  %v968_v55 = vmul.f32 %v958_v62, %v948_v8 }
 0x1ac   :  { %v929_v5 = vpop.permute.xlu1 %928 }
 0x1ad   :  { %v971_v31 = vadd.f32 %v967_v34, %v918_v37  ;;  %v972_v3 = vadd.f32 %v968_v55, %v919_v44  ;;  %v931_v54 = vsel %vm930_vm5, %v927_v4, %v929_v5  ;;  %v934_v18 = vsel %vm930_vm5, %v929_v5, %v923_v58 }
 0x1ae   :  { %v949_v6 = vsel %vm1875_vm0, %v931_v54, 0.0  ;;  %v950_v7 = vsel %vm1883_vm4, %v934_v18, 0.0 }
 0x1af   :  { %v995_v27 = vadd.f32 %v991_v45, %v971_v31  ;;  %v996_v16 = vadd.f32 %v992_v53, %v972_v3  ;;  %v969_v42 = vmul.f32 %v962_v1, %v949_v6  ;;  %v970_v41 = vmul.f32 %v966_v10, %v950_v7 }
 0x1b1   :  { %999 = vst [vmem:[%s1927_s6] sm:$0xff] %v995_v27  ;;  %1000 = vst [vmem:[%s1927_s6 + $0x8] sm:$0xff] %v996_v16  ;;  %v973_v26 = vadd.f32 %v969_v42, %v920_v22  ;;  %v974_v23 = vadd.f32 %v970_v41, %v921_v38 }
 0x1b3   :  { %v997_v24 = vadd.f32 %v993_v52, %v973_v26  ;;  %v998_v25 = vadd.f32 %v994_v60, %v974_v23 }
 0x1b5   :  { %1001 = vst [vmem:[%s1927_s6 + $0x10] sm:$0xff] %v997_v24  ;;  %1002 = vst [vmem:[%s1927_s6 + $0x18] sm:$0xff] %v998_v25 }

// kernel: run.3
= control target key start
LH: loop header
LB: loop body
LE: loop exit
PB: predicated region body
PF: predicated region fallthrough
CT: control target
= control target key end

     0   :  { %v1451_v3 = vmov 0.0   ;;  %vm47_vm0 = vcmask 64512   ;;  %v1452_v9 = vmov 0   ;;  %s1453_s18 = smov 17   ;;  %s1455_s20 = smov 15   ;;  %vm224_vm1 = vcmask 1041408   ;;  %s2636_s0 = inlined_call_operand.vmem [shape: f32[8,512], index: 0, kind: input, shape index: {}]   ;;  %s2637_s3 = inlined_call_operand.vmem [shape: f32[18,8], index: 3, kind: input, shape index: {}]   ;;  %s2638_s4 = inlined_call_operand.vmem [shape: f32[18,1], index: 4, kind: input, shape index: {}]   ;;  %s2639_s1 = inlined_call_operand.vmem [shape: f32[4,512], index: 1, kind: input, shape index: {}]   ;;  %s2640_s2 = inlined_call_operand.vmem [shape: f32[512,128], index: 2, kind: input, shape index: {}]   ;;  %s2641_s5 = inlined_call_operand.vmem [shape: f32[8,512], index: 5, kind: output, shape index: {0}]   ;;  %s2642_s6 = inlined_call_operand.vmem [shape: f32[8,128], index: 6, kind: output, shape index: {1}]  }
   0x1   :  { %v26_v0 = vld [vmem:[%s2636_s0 + $0x8] sm:$0xff]  ;;  %v28_v1 = vld [vmem:[%s2636_s0 + $0x18] sm:$0xff]  ;;  %v25_v2 = vld [vmem:[%s2636_s0] sm:$0xff]  ;;  %121 = vmatprep.mubr.f32.mxu0 %v1451_v3  ;;  %204 = vmatprep.mubr.f32.mxu1 %v1451_v3  ;;  %s1456_s21 = smov 1   ;;  %s1457_s22 = smov 127  }
   0x2   :  { %57 = vmatprep.subr.mxu0 %v26_v0  ;;  %140 = vmatprep.subr.mxu1 %v28_v1  ;;  %v27_v4 = vld [vmem:[%s2636_s0 + $0x10] sm:$0xff]  ;;  %v22_v5 = vld [vmem:[%s2637_s3] sm:$0xff]  ;;  %v23_v8 = vld [vmem:[%s2637_s3 + $0x8] sm:$0xff]  ;;  %s1458_s23 = smov 113   ;;  %s1459_s24 = smov 112  }
   0x3   :  { %58 = vmatpush1.msra.mxu0 %v25_v2  ;;  %141 = vmatpush1.msra.mxu1 %v27_v4  ;;  %v29_v6 = vld [vmem:[%s2638_s4] sm:$0xff]  ;;  %v31_v7 = vld [vmem:[%s2638_s4 + $0x10] sm:$0x3]  ;;  %v30_v10 = vld [vmem:[%s2638_s4 + $0x8] sm:$0xff]  ;;  %s1460_s25 = smov 111  }
   0x4   :  { %1263 = vmatmul.mubr.msk.f32.vlgmr.msra.gmra.mrb[0].mxu0 %vm47_vm0, %v22_v5  ;;  %1266 = vmatmul.mubr.msk.f32.vlgmr.msra.gmra.mrb[0].mxu1 %vm47_vm0, %v22_v5  ;;  %v348_v11 = vld [vmem:[%s2639_s1] sm:$0xff]  ;;  %v24_v12 = vld [vmem:[%s2637_s3 + $0x10] sm:$0x3]  ;;  %v349_v14 = vld [vmem:[%s2639_s1 + $0x8] sm:$0xff]  ;;  %s1454_s3 = smov 16  }
   0x5   :  { %127 = vmatprep.mubr.f32.mxu0 %v1451_v3  ;;  %210 = vmatprep.mubr.f32.mxu1 %v1451_v3  ;;  %v1533_v13 = vcombine.high %v348_v11, %v348_v11  ;;  %v1541_v15 = vcombine.high %v349_v14, %v349_v14  ;;  %v1066_v21 = vld [vmem:[%s2640_s2 + $0x80] sm:$0xff]  ;;  %v1067_v22 = vld [vmem:[%s2640_s2 + $0x88] sm:$0xff]  ;;  %v1068_v35 = vld [vmem:[%s2640_s2 + $0x90] sm:$0xff] }
   0x6   :  { %1413 = vset.pattern.permute.xlu0 %v1452_v9  ;;  %1414 = vset.pattern.permute.xlu1 %v1452_v9  ;;  %v1098_v23 = vld [vmem:[%s2640_s2 + $0x180] sm:$0xff]  ;;  %v1339_v26 = vpack.c.bf16 %v1067_v22, %v1066_v21  ;;  %v1099_v27 = vld [vmem:[%s2640_s2 + $0x188] sm:$0xff]  ;;  %v1069_v36 = vld [vmem:[%s2640_s2 + $0x98] sm:$0xff] }
   0x7   :  { %34 = vperm.xlu0 %1413, %v29_v6   ;;  %44 = vperm.xlu1 %1414, %v31_v7   ;;  %2662 = vst [vmem:[#allocation2_spill] sm:$0xff] %v1533_v13  ;;  %2663 = vst [vmem:[#allocation3_spill] sm:$0xff] %v1541_v15  ;;  %v1050_v28 = vld [vmem:[%s2640_s2] sm:$0xff]  ;;  %v1051_v29 = vld [vmem:[%s2640_s2 + $0x8] sm:$0xff]  ;;  %v1371_v30 = vpack.c.bf16 %v1099_v27, %v1098_v23  ;;  %v1343_v38 = vpack.c.bf16 %v1069_v36, %v1068_v35 }
   0x8   :  { %1264 = vmatmul.mubr.msk.f32.gmra.mrb[2].mxu0 %vm47_vm0, %v23_v8  ;;  %1267 = vmatmul.mubr.msk.f32.gmra.mrb[2].mxu1 %vm47_vm0, %v23_v8  ;;  %v1341_v31 = vpack.c.bf16 %v1051_v29, %v1050_v28  ;;  %v1082_v32 = vld [vmem:[%s2640_s2 + $0x100] sm:$0xff]  ;;  %v1083_v33 = vld [vmem:[%s2640_s2 + $0x108] sm:$0xff]  ;;  %v1100_v37 = vld [vmem:[%s2640_s2 + $0x190] sm:$0xff] }
   0x9   :  { %133 = vmatprep.mubr.f32.mxu0 %v1451_v3  ;;  %216 = vmatprep.mubr.f32.mxu1 %v1451_v3  ;;  %v1373_v34 = vpack.c.bf16 %v1083_v33, %v1082_v32  ;;  %v1101_v39 = vld [vmem:[%s2640_s2 + $0x198] sm:$0xff]  ;;  %v1052_v40 = vld [vmem:[%s2640_s2 + $0x10] sm:$0xff]  ;;  %v1070_v51 = vld [vmem:[%s2640_s2 + $0xa0] sm:$0xff]  ;;  %v350_v33 = vlaneseq }
   0xa   :  { %1340 = vmatprep.subr.bf16.mxu0 %v1339_v26  ;;  %1372 = vmatprep.subr.bf16.mxu1 %v1371_v30  ;;  %v1053_v41 = vld [vmem:[%s2640_s2 + $0x18] sm:$0xff]  ;;  %v1375_v44 = vpack.c.bf16 %v1101_v39, %v1100_v37  ;;  %v1084_v46 = vld [vmem:[%s2640_s2 + $0x110] sm:$0xff]  ;;  %v1071_v52 = vld [vmem:[%s2640_s2 + $0xa8] sm:$0xff] }
   0xb   :  { %39 = vperm.xlu0 %1413, %v30_v10   ;;  %389 = vrot.lane.b32.xlu1 %v348_v11, %s1453_s18  ;;  %v1345_v45 = vpack.c.bf16 %v1053_v41, %v1052_v40  ;;  %v1085_v47 = vld [vmem:[%s2640_s2 + $0x118] sm:$0xff]  ;;  %v1347_v53 = vpack.c.bf16 %v1071_v52, %v1070_v51  ;;  %v1102_v54 = vld [vmem:[%s2640_s2 + $0x1a0] sm:$0xff]  ;;  %v1103_v55 = vld [vmem:[%s2640_s2 + $0x1a8] sm:$0xff] }
   0xc   :  { %1265 = vmatmul.mubr.msk.f32.gmra.mrb[4].mxu0 %vm47_vm0, %v24_v12  ;;  %1268 = vmatmul.mubr.msk.f32.gmra.mrb[4].mxu1 %vm47_vm0, %v24_v12  ;;  %v1377_v48 = vpack.c.bf16 %v1085_v47, %v1084_v46  ;;  %v1054_v56 = vld [vmem:[%s2640_s2 + $0x20] sm:$0xff]  ;;  %v1379_v57 = vpack.c.bf16 %v1103_v55, %v1102_v54  ;;  %v1055_v58 = vld [vmem:[%s2640_s2 + $0x28] sm:$0xff]  ;;  %v1072_v63 = vld [vmem:[%s2640_s2 + $0xb0] sm:$0xff] }
   0xd   :  { %1342 = vmatpush3.bf16.msra.mxu0 %v1341_v31  ;;  %1374 = vmatpush3.bf16.msra.mxu1 %v1373_v34  ;;  %v1086_v59 = vld [vmem:[%s2640_s2 + $0x120] sm:$0xff]  ;;  %v1087_v60 = vld [vmem:[%s2640_s2 + $0x128] sm:$0xff]  ;;  %v1349_v61 = vpack.c.bf16 %v1055_v58, %v1054_v56  ;;  %v1073_v0 = vld [vmem:[%s2640_s2 + $0xb8] sm:$0xff] }
   0xe   :  { %1344 = vmatprep.subr.bf16.mxu0 %v1343_v38  ;;  %1376 = vmatprep.subr.bf16.mxu1 %v1375_v44  ;;  %v1381_v62 = vpack.c.bf16 %v1087_v60, %v1086_v59  ;;  %v1104_v1 = vld [vmem:[%s2640_s2 + $0x1b0] sm:$0xff]  ;;  %v1351_v4 = vpack.c.bf16 %v1073_v0, %v1072_v63  ;;  %v1105_v5 = vld [vmem:[%s2640_s2 + $0x1b8] sm:$0xff]  ;;  %v1074_v22 = vld [vmem:[%s2640_s2 + $0xc0] sm:$0xff] }
   0xf   :  { %391 = vrot.lane.b32.xlu0 %v1533_v13, %s1453_s18  ;;  %393 = vrot.lane.b32.xlu1 %v349_v14, %s1453_s18  ;;  %v1056_v6 = vld [vmem:[%s2640_s2 + $0x30] sm:$0xff]  ;;  %v1057_v7 = vld [vmem:[%s2640_s2 + $0x38] sm:$0xff]  ;;  %v1383_v8 = vpack.c.bf16 %v1105_v5, %v1104_v1 }
  0x10   :  { %v1353_v9 = vpack.c.bf16 %v1057_v7, %v1056_v6  ;;  %v1088_v10 = vld [vmem:[%s2640_s2 + $0x130] sm:$0xff]  ;;  %v1075_v23 = vld [vmem:[%s2640_s2 + $0xc8] sm:$0xff]  ;;  %v1106_v26 = vld [vmem:[%s2640_s2 + $0x1c0] sm:$0xff]  ;;  %v1763_v7 = vand.u32 127, %v350_v33 }
  0x11   :  { %1346 = vmatpush3.bf16.msra.mxu0 %v1345_v45  ;;  %1378 = vmatpush3.bf16.msra.mxu1 %v1377_v48  ;;  %v1355_v29 = vpack.c.bf16 %v1075_v23, %v1074_v22  ;;  %v1107_v30 = vld [vmem:[%s2640_s2 + $0x1c8] sm:$0xff]  ;;  %v1058_v31 = vld [vmem:[%s2640_s2 + $0x40] sm:$0xff]  ;;  %v1076_v38 = vld [vmem:[%s2640_s2 + $0xd0] sm:$0xff] }
  0x12   :  { %1348 = vmatprep.subr.bf16.mxu0 %v1347_v53  ;;  %1380 = vmatprep.subr.bf16.mxu1 %v1379_v57  ;;  %v1059_v32 = vld [vmem:[%s2640_s2 + $0x48] sm:$0xff]  ;;  %v1387_v34 = vpack.c.bf16 %v1107_v30, %v1106_v26  ;;  %v1090_v36 = vld [vmem:[%s2640_s2 + $0x140] sm:$0xff]  ;;  %v1077_v46 = vld [vmem:[%s2640_s2 + $0xd8] sm:$0xff]  ;;  %vm397_vm4 = vcmp.lt.s32.totalorder %v1763_v7, 17  ;;  %vm466_vm13 = vcmp.lt.s32.totalorder %v1763_v7, 16 }
  0x13   :  { %395 = vrot.lane.b32.xlu0 %v1541_v15, %s1453_s18  ;;  %458 = vrot.lane.b32.xlu1 %v348_v11, %s1454_s3  ;;  %v1357_v35 = vpack.c.bf16 %v1059_v32, %v1058_v31  ;;  %v1091_v37 = vld [vmem:[%s2640_s2 + $0x148] sm:$0xff]  ;;  %v1108_v47 = vld [vmem:[%s2640_s2 + $0x1d0] sm:$0xff]  ;;  %v1359_v55 = vpack.c.bf16 %v1077_v46, %v1076_v38 }
  0x14   :  { %v1389_v45 = vpack.c.bf16 %v1091_v37, %v1090_v36  ;;  %v1109_v48 = vld [vmem:[%s2640_s2 + $0x1d8] sm:$0xff]  ;;  %v1060_v57 = vld [vmem:[%s2640_s2 + $0x50] sm:$0xff]  ;;  %v1078_v1 = vld [vmem:[%s2640_s2 + $0xe0] sm:$0xff] }
  0x15   :  { %1350 = vmatpush3.bf16.msra.mxu0 %v1349_v61  ;;  %1382 = vmatpush3.bf16.msra.mxu1 %v1381_v62  ;;  %v1391_v56 = vpack.c.bf16 %v1109_v48, %v1108_v47  ;;  %v1061_v58 = vld [vmem:[%s2640_s2 + $0x58] sm:$0xff]  ;;  %v1092_v59 = vld [vmem:[%s2640_s2 + $0x150] sm:$0xff]  ;;  %v1063_v22 = vld [vmem:[%s2640_s2 + $0x68] sm:$0xff] }
  0x16   :  { %1352 = vmatprep.subr.bf16.mxu0 %v1351_v4  ;;  %1384 = vmatprep.subr.bf16.mxu1 %v1383_v8  ;;  %v1361_v63 = vpack.c.bf16 %v1061_v58, %v1060_v57  ;;  %v1093_v0 = vld [vmem:[%s2640_s2 + $0x158] sm:$0xff]  ;;  %v1079_v4 = vld [vmem:[%s2640_s2 + $0xe8] sm:$0xff]  ;;  %v1094_v23 = vld [vmem:[%s2640_s2 + $0x160] sm:$0xff] }
  0x17   :  { %460 = vrot.lane.b32.xlu0 %v1533_v13, %s1454_s3  ;;  %462 = vrot.lane.b32.xlu1 %v349_v14, %s1454_s3  ;;  %v1393_v8 = vpack.c.bf16 %v1093_v0, %v1092_v59  ;;  %v1095_v26 = vld [vmem:[%s2640_s2 + $0x168] sm:$0xff]  ;;  %v1112_v36 = vld [vmem:[%s2640_s2 + $0x1f0] sm:$0xff]  ;;  %v352_v0 = vadd.s32 128, %v1763_v7 }
  0x18   :  { %v1397_v32 = vpack.c.bf16 %v1095_v26, %v1094_v23  ;;  %v1113_v48 = vld [vmem:[%s2640_s2 + $0x1f8] sm:$0xff] }
  0x19   :  { %1354 = vmatpush3.bf16.msra.mxu0 %v1353_v9  ;;  %v1110_v9 = vld [vmem:[%s2640_s2 + $0x1e0] sm:$0xff]  ;;  %v1399_v59 = vpack.c.bf16 %v1113_v48, %v1112_v36 }
  0x1a   :  { %1356 = vmatprep.subr.bf16.mxu0 %v1355_v29 }
  0x1b   :  { %464 = vrot.lane.b32.xlu0 %v1541_v15, %s1454_s3  ;;  %531 = vrot.lane.b32.xlu1 %v348_v11, %s1455_s20 }
  0x1d   :  { %1358 = vmatpush3.bf16.msra.mxu0 %v1357_v35  ;;  %v1081_v35 = vld [vmem:[%s2640_s2 + $0xf8] sm:$0xff] }
  0x1e   :  { %1360 = vmatprep.subr.bf16.mxu0 %v1359_v55 }
  0x1f   :  { %533 = vrot.lane.b32.xlu0 %v1533_v13, %s1455_s20  ;;  %535 = vrot.lane.b32.xlu1 %v349_v14, %s1455_s20 }
  0x21   :  { %1362 = vmatpush3.bf16.msra.mxu0 %v1361_v63 }
  0x23   :  { %537 = vrot.lane.b32.xlu0 %v1541_v15, %s1455_s20  ;;  %608 = vrot.lane.b32.xlu1 %v348_v11, %s1456_s21 }
  0x27   :  { %610 = vrot.lane.b32.xlu0 %v1533_v13, %s1456_s21  ;;  %612 = vrot.lane.b32.xlu1 %v349_v14, %s1456_s21 }
  0x2b   :  { %614 = vrot.lane.b32.xlu0 %v1541_v15, %s1456_s21  ;;  %729 = vrot.lane.b32.xlu1 %v348_v11, %s1457_s22 }
  0x2f   :  { %731 = vrot.lane.b32.xlu0 %v1533_v13, %s1457_s22  ;;  %733 = vrot.lane.b32.xlu1 %v349_v14, %s1457_s22 }
  0x33   :  { %735 = vrot.lane.b32.xlu0 %v1541_v15, %s1457_s22  ;;  %802 = vrot.lane.b32.xlu1 %v348_v11, %s1458_s23 }
  0x37   :  { %804 = vrot.lane.b32.xlu0 %v1533_v13, %s1458_s23  ;;  %806 = vrot.lane.b32.xlu1 %v349_v14, %s1458_s23 }
  0x3b   :  { %808 = vrot.lane.b32.xlu0 %v1541_v15, %s1458_s23  ;;  %879 = vrot.lane.b32.xlu1 %v348_v11, %s1459_s24 }
  0x3f   :  { %881 = vrot.lane.b32.xlu0 %v1533_v13, %s1459_s24  ;;  %883 = vrot.lane.b32.xlu1 %v349_v14, %s1459_s24 }
  0x43   :  { %885 = vrot.lane.b32.xlu0 %v1541_v15, %s1459_s24  ;;  %952 = vrot.lane.b32.xlu1 %v348_v11, %s1460_s25  ;;  %v1089_v11 = vld [vmem:[%s2640_s2 + $0x138] sm:$0xff] }
  0x44   :  { %v1385_v12 = vpack.c.bf16 %v1089_v11, %v1088_v10  ;;  %v1111_v10 = vld [vmem:[%s2640_s2 + $0x1e8] sm:$0xff]  ;;  %v1062_v11 = vld [vmem:[%s2640_s2 + $0x60] sm:$0xff] }
  0x45   :  { %v1365_v31 = vpack.c.bf16 %v1063_v22, %v1062_v11 }
  0x46   :  { %1386 = vmatpush3.bf16.msra.mxu1 %v1385_v12 }
  0x47   :  { %954 = vrot.lane.b32.xlu0 %v1533_v13, %s1460_s25  ;;  %956 = vrot.lane.b32.xlu1 %v349_v14, %s1460_s25 }
  0x48   :  { %1388 = vmatprep.subr.bf16.mxu1 %v1387_v34  ;;  %v1080_v34 = vld [vmem:[%s2640_s2 + $0xf0] sm:$0xff] }
  0x49   :  { %v1367_v47 = vpack.c.bf16 %v1081_v35, %v1080_v34  ;;  %v353_v34 = vadd.s32 256, %v1763_v7 }
  0x4a   :  { %1390 = vmatpush3.bf16.msra.mxu1 %v1389_v45 }
  0x4b   :  { %958 = vrot.lane.b32.xlu0 %v1541_v15, %s1460_s25  ;;  %1392 = vmatprep.subr.bf16.mxu1 %v1391_v56 }
  0x4e   :  { %1394 = vmatpush3.bf16.msra.mxu1 %v1393_v8 }
  0x86   :  { %v1558_v16 = vpop.permute.xlu0 %34  ;;  %v1562_v18 = vpop.permute.xlu1 %44 }
  0x8a   :  { %v1560_v17 = vpop.permute.xlu0 %39  ;;  %v1564_v19 = vpop.permute.xlu1 %389 }
  0x8e   :  { %v1566_v20 = vpop.permute.xlu0 %391  ;;  %v1577_v24 = vpop.permute.xlu1 %393 }
  0x92   :  { %v1579_v25 = vpop.permute.xlu0 %395  ;;  %v1614_v42 = vpop.permute.xlu1 %458 }
  0x96   :  { %v1616_v43 = vpop.permute.xlu0 %460  ;;  %v1624_v49 = vpop.permute.xlu1 %462 }
  0x9a   :  { %v1626_v50 = vpop.permute.xlu0 %464  ;;  %v1661_v2 = vpop.permute.xlu1 %531 }
  0x9e   :  { %v1663_v3 = vpop.permute.xlu0 %533  ;;  %v1713_v41 = vpop.permute.xlu1 %535 }
  0xa2   :  { %v1715_v44 = vpop.permute.xlu0 %537  ;;  %v1821_v57 = vpop.permute.xlu1 %608 }
  0xa6   :  { %v1823_v58 = vpop.permute.xlu0 %610  ;;  %v1841_v35 = vpop.permute.xlu1 %612 }
  0xaa   :  { %v1843_v36 = vpop.permute.xlu0 %614 }
  0xd7   :  { %v123_v14 = vpop.f32.mrb[0].mxu0  ;;  %v206_v21 = vpop.f32.mrb[0].mxu1 }
  0xd8   :  { %v125_v27 = vpop.f32.mrb[1].mxu0  ;;  %v208_v28 = vpop.f32.mrb[1].mxu1  ;;  %v1708_v39 = vadd.f32 %v123_v14, %v1558_v16  ;;  %v1711_v40 = vadd.f32 %v206_v21, %v1558_v16  ;;  %v1363_v14 = vpack.c.bf16 %v1079_v4, %v1078_v1  ;;  %v1395_v21 = vpack.c.bf16 %v1111_v10, %v1110_v9 }
  0xd9   :  { %v1727_v51 = vadd.f32 %v125_v27, %v1558_v16  ;;  %v1730_v52 = vadd.f32 %v208_v28, %v1558_v16 }
  0xda   :  { %1364 = vmatprep.subr.bf16.mxu0 %v1363_v14  ;;  %1396 = vmatprep.subr.bf16.mxu1 %v1395_v21 }
  0xdb   :  { %v129_v53 = vpop.f32.mrb[2].mxu0  ;;  %v212_v54 = vpop.f32.mrb[2].mxu1  ;;  %1366 = vmatpush3.bf16.msra.mxu0 %v1365_v31  ;;  %1398 = vmatpush3.bf16.msra.mxu1 %v1397_v32 }
  0xdc   :  { %v1742_v16 = vadd.f32 %v129_v53, %v1560_v17  ;;  %v1745_v60 = vadd.f32 %v212_v54, %v1560_v17  ;;  %v131_v61 = vpop.f32.mrb[3].mxu0  ;;  %v214_v62 = vpop.f32.mrb[3].mxu1  ;;  %v1064_v53 = vld [vmem:[%s2640_s2 + $0x70] sm:$0xff]  ;;  %v1065_v54 = vld [vmem:[%s2640_s2 + $0x78] sm:$0xff]  ;;  %1368 = vmatprep.subr.bf16.mxu0 %v1367_v47  ;;  %1400 = vmatprep.subr.bf16.mxu1 %v1399_v59 }
  0xdd   :  { %v1757_v5 = vadd.f32 %v131_v61, %v1560_v17  ;;  %v1760_v6 = vadd.f32 %v214_v62, %v1560_v17  ;;  %v1096_v61 = vld [vmem:[%s2640_s2 + $0x170] sm:$0xff]  ;;  %v1097_v62 = vld [vmem:[%s2640_s2 + $0x178] sm:$0xff]  ;;  %v1369_v1 = vpack.c.bf16 %v1065_v54, %v1064_v53  ;;  %v357_v54 = vand.u32 255, %v353_v34 }
  0xde   :  { %v223_v17 = vmax.f32 %v1708_v39, %v1742_v16  ;;  %v242_v12 = vmax.f32 %v1711_v40, %v1745_v60  ;;  %v1401_v21 = vpack.c.bf16 %v1097_v62, %v1096_v61  ;;  %v354_v62 = vadd.s32 384, %v1763_v7 }
  0xdf   :  { %v233_v27 = vmax.f32 %v1727_v51, %v1757_v5  ;;  %v251_v28 = vmax.f32 %v1730_v52, %v1760_v6  ;;  %v135_v29 = vpop.f32.mrb[4].mxu0  ;;  %v218_v30 = vpop.f32.mrb[4].mxu1  ;;  %1370 = vmatpush3.bf16.msra.mxu0 %v1369_v1 }
  0xe0   :  { %v1801_v37 = vadd.f32 %v135_v29, %v1562_v18  ;;  %v1804_v38 = vadd.f32 %v218_v30, %v1562_v18  ;;  %v137_v45 = vpop.f32.mrb[5].mxu0  ;;  %v220_v46 = vpop.f32.mrb[5].mxu1  ;;  %1402 = vmatpush3.bf16.msra.mxu1 %v1401_v21  ;;  %v355_v21 = vand.u32 255, %v1763_v7 }
  0xe1   :  { %v1816_v55 = vadd.f32 %v137_v45, %v1562_v18  ;;  %v1819_v56 = vadd.f32 %v220_v46, %v1562_v18 }
  0xe2   :  { %v225_v63 = vsel %vm224_vm1, %v1801_v37, -inf  ;;  %v243_v18 = vsel %vm224_vm1, %v1804_v38, -inf }
  0xe3   :  { %v226_v4 = vmax.f32 %v223_v17, %v225_v63  ;;  %v244_v8 = vmax.f32 %v242_v12, %v243_v18  ;;  %v234_v9 = vsel %vm224_vm1, %v1816_v55, -inf  ;;  %v252_v10 = vsel %vm224_vm1, %v1819_v56, -inf }
  0xe4   :  { %v235_v11 = vmax.f32 %v233_v27, %v234_v9  ;;  %v253_v14 = vmax.f32 %v251_v28, %v252_v10  ;;  %v356_v12 = vand.u32 255, %v352_v0  ;;  %v1848_v0 = vpop.permute.xlu1 %729 }
  0xe5   :  { %v227_v22 = vrot.slane %v226_v4, 4  ;;  %v245_v23 = vrot.slane %v244_v8, 4 }
  0xe6   :  { %v236_v26 = vrot.slane %v235_v11, 4  ;;  %v254_v29 = vrot.slane %v253_v14, 4  ;;  %v1845_v53 = vshra.s32 %v356_v12, 4  ;;  %v1852_v1 = vand.u32 15, %v356_v12 }
  0xe7   :  { %v228_v30 = vmax.f32 %v226_v4, %v227_v22  ;;  %v246_v17 = vmax.f32 %v244_v8, %v245_v23  ;;  %v1850_v4 = vpop.permute.xlu0 %731 }
  0xe8   :  { %v237_v27 = vmax.f32 %v235_v11, %v236_v26  ;;  %v255_v28 = vmax.f32 %v253_v14, %v254_v29  ;;  %vm368_vm2 = vcmp.ge.s32.totalorder %v1845_v53, 1  ;;  %v1855_v14 = vshra.s32 %v357_v54, 4 }
  0xe9   :  { %v229_v31 = vrot.slane %v228_v30, 2  ;;  %v247_v32 = vrot.slane %v246_v17, 2  ;;  %v1858_v26 = vand.u32 15, %v357_v54  ;;  %v358_v29 = vand.u32 255, %v354_v62 }
  0xea   :  { %v238_v45 = vrot.slane %v237_v27, 2  ;;  %v256_v46 = vrot.slane %v255_v28, 2  ;;  %v1874_v54 = vshra.s32 %v355_v21, 4  ;;  %vm376_vm3 = vcmp.ge.s32.totalorder %v1852_v1, 1 }
  0xeb   :  { %v230_v47 = vmax.f32 %v228_v30, %v229_v31  ;;  %v248_v48 = vmax.f32 %v246_v17, %v247_v32  ;;  %vm369_vm5 = vcmp.ge.s32.totalorder %v1855_v14, 1  ;;  %vm2645_vm6 = vcmp.ge.s32.totalorder %v1858_v26, 1  ;;  %vm1898_vm9 = vmand %vm368_vm2, %vm376_vm3 }
  0xec   :  { %v239_v59 = vmax.f32 %v237_v27, %v238_v45  ;;  %v257_v61 = vmax.f32 %v255_v28, %v256_v46  ;;  %vm367_vm7 = vcmp.ge.s32.totalorder %v1874_v54, 1  ;;  %vm1908_vm12 = vmand %vm369_vm5, %vm2645_vm6  ;;  %vm380_vm0 = vcmp.lt.s32.totalorder %v1852_v1, 15 }
  0xed   :  { %v231_v63 = vrot.slane %v230_v47, 1  ;;  %v249_v18 = vrot.slane %v248_v48, 1 }
  0xee   :  { %v240_v8 = vrot.slane %v239_v59, 1  ;;  %v258_v9 = vrot.slane %v257_v61, 1 }
  0xef   :  { %v232_v10 = vmax.f32 %v230_v47, %v231_v63  ;;  %v250_v11 = vmax.f32 %v248_v48, %v249_v18 }
  0xf0   :  { %v241_v22 = vmax.f32 %v239_v59, %v240_v8  ;;  %v259_v23 = vmax.f32 %v257_v61, %v258_v9 }
  0xf1   :  { %v260_v30 = vsub.f32 %v1708_v39, %v232_v10  ;;  %v264_v17 = vsub.f32 %v1742_v16, %v232_v10  ;;  %v268_v12 = vsub.f32 %v1801_v37, %v232_v10  ;;  %v262_v34 = vsub.f32 %v1711_v40, %v250_v11  ;;  %v1869_v39 = vpop.permute.xlu1 %733  ;;  %v1871_v16 = vpop.permute.xlu0 %735 }
  0xf2   :  { %v266_v27 = vsub.f32 %v1745_v60, %v250_v11  ;;  %v270_v28 = vsub.f32 %v1804_v38, %v250_v11  ;;  %v261_v31 = vsub.f32 %v1727_v51, %v241_v22  ;;  %v265_v32 = vsub.f32 %v1757_v5, %v241_v22 }
  0xf3   :  { %v272_v45 = vmul.f32 1.442695, %v260_v30  ;;  %v280_v46 = vmul.f32 1.442695, %v264_v17  ;;  %v288_v47 = vmul.f32 1.442695, %v268_v12  ;;  %v269_v48 = vsub.f32 %v1816_v55, %v241_v22 }
  0xf4   :  { %v276_v37 = vmul.f32 1.442695, %v262_v34  ;;  %v263_v40 = vsub.f32 %v1730_v52, %v259_v23  ;;  %v1876_v60 = vand.u32 15, %v355_v21  ;;  %v284_v51 = vmul.f32 1.442695, %v266_v27 }
  0xf5   :  { %1417 = vpow2.f32 %v272_v45  ;;  %v1878_v38 = vshra.s32 %v358_v29, 4  ;;  %v1880_v5 = vand.u32 15, %v358_v29  ;;  %v292_v59 = vmul.f32 1.442695, %v270_v28 }
  0xf6   :  { %1419 = vpow2.f32 %v280_v46  ;;  %v267_v55 = vsub.f32 %v1760_v6, %v259_v23  ;;  %v271_v61 = vsub.f32 %v1819_v56, %v259_v23  ;;  %v274_v52 = vmul.f32 1.442695, %v261_v31  ;;  %v1890_v6 = vpop.permute.xlu1 %802  ;;  %v1892_v56 = vpop.permute.xlu0 %804 }
  0xf7   :  { %1421 = vpow2.f32 %v288_v47  ;;  %v282_v62 = vmul.f32 1.442695, %v265_v32  ;;  %v290_v63 = vmul.f32 1.442695, %v269_v48  ;;  %vm2643_vm8 = vcmp.ge.s32.totalorder %v1876_v60, 1 }
  0xf8   :  { %1423 = vpow2.f32 %v276_v37  ;;  %v278_v8 = vmul.f32 1.442695, %v263_v40  ;;  %vm370_vm10 = vcmp.ge.s32.totalorder %v1878_v38, 1  ;;  %vm2644_vm11 = vcmp.ge.s32.totalorder %v1880_v5, 1  ;;  %vm1925_vm14 = vmand %vm367_vm7, %vm2643_vm8 }
  0xf9   :  { %1425 = vpow2.f32 %v284_v51  ;;  %v286_v9 = vmul.f32 1.442695, %v267_v55  ;;  %v400_v11 = vsel %vm397_vm4, %v1564_v19, %v1566_v20  ;;  %v294_v21 = vmul.f32 1.442695, %v271_v61  ;;  %vm1933_vm15 = vmand %vm370_vm10, %vm2644_vm11 }
  0xfa   :  { %1427 = vpow2.f32 %v292_v59  ;;  %v399_v22 = vsel %vm397_vm4, %v1566_v20, %v1577_v24  ;;  %v398_v20 = vsel %vm397_vm4, %v1577_v24, %v1579_v25  ;;  %v401_v30 = vsel %vm397_vm4, %v1579_v25, %v1564_v19  ;;  %v1960_v19 = vpop.permute.xlu1 %806  ;;  %v1962_v25 = vpop.permute.xlu0 %808 }
  0xfb   :  { %1429 = vpow2.f32 %v274_v52  ;;  %vm539_vm8 = vcmp.lt.s32.totalorder %v1763_v7, 15  ;;  %vm381_vm11 = vcmp.lt.s32.totalorder %v1858_v26, 15  ;;  %vm379_vm6 = vcmp.lt.s32.totalorder %v1876_v60, 15 }
  0xfc   :  { %1431 = vpow2.f32 %v282_v62  ;;  %v1953_v12 = vsel %vm1898_vm9, %v400_v11, 0.0  ;;  %v1957_v24 = vsel %vm1908_vm12, %v399_v22, 0.0  ;;  %vm382_vm4 = vcmp.lt.s32.totalorder %v1880_v5, 15  ;;  %vm1978_vm9 = vmand %vm368_vm2, %vm380_vm0 }
  0xfd   :  { %1433 = vpow2.f32 %v290_v63  ;;  %v1968_v27 = vsel %vm1925_vm14, %v401_v30, 0.0  ;;  %v1972_v28 = vsel %vm1933_vm15, %v398_v20, 0.0  ;;  %vm616_vm12 = vcmp.lt.s32.totalorder %v1763_v7, 1  ;;  %vm2003_vm14 = vmand %vm369_vm5, %vm381_vm11 }
  0xfe   :  { %1435 = vpow2.f32 %v278_v8  ;;  %v469_v46 = vsel %vm466_vm13, %v1614_v42, %v1616_v43  ;;  %v468_v47 = vsel %vm466_vm13, %v1616_v43, %v1624_v49  ;;  %v470_v48 = vsel %vm466_vm13, %v1626_v50, %v1614_v42  ;;  %vm2027_vm15 = vmand %vm367_vm7, %vm379_vm6  ;;  %v2082_v22 = vpop.permute.xlu0 %881 }
  0xff   :  { %v1949_v17 = vpop.eup %1417  ;;  %1437 = vpow2.f32 %v286_v9  ;;  %v467_v43 = vsel %vm466_vm13, %v1624_v49, %v1626_v50  ;;  %v542_v42 = vsel %vm539_vm8, %v1661_v2, %v1663_v3  ;;  %v541_v59 = vsel %vm539_vm8, %v1663_v3, %v1713_v41  ;;  %vm2040_vm13 = vmand %vm370_vm10, %vm382_vm4 }
 0x100   :  { %v1964_v34 = vpop.eup %1419  ;;  %1439 = vpow2.f32 %v294_v21  ;;  %v2034_v50 = vshrl.u32 %v350_v33, 7  ;;  %v540_v52 = vsel %vm539_vm8, %v1713_v41, %v1715_v44  ;;  %v543_v62 = vsel %vm539_vm8, %v1715_v44, %v1661_v2  ;;  %v2080_v21 = vpop.permute.xlu1 %879 }
 0x101   :  { %v1983_v32 = vpop.eup %1421  ;;  %v296_v45 = vadd.f32 %v1964_v34, %v1949_v17  ;;  %v2058_v18 = vsel %vm368_vm2, %v469_v46, 0.0  ;;  %v2062_v8 = vsel %vm369_vm5, %v468_v47, 0.0  ;;  %v2066_v41 = vsel %vm367_vm7, %v470_v48, 0.0 }
 0x102   :  { %v2007_v40 = vpop.eup %1423  ;;  %v297_v51 = vsel %vm224_vm1, %v1983_v32, 0.0  ;;  %v2074_v10 = vsel %vm370_vm10, %v467_v43, 0.0  ;;  %v2078_v11 = vsel %vm1978_vm9, %v542_v42, 0.0  ;;  %v2088_v20 = vsel %vm2003_vm14, %v541_v59, 0.0 }
 0x103   :  { %v2031_v61 = vpop.eup %1425  ;;  %v298_v49 = vadd.f32 %v297_v51, %v296_v45  ;;  %2681 = vst [vmem:[#allocation5_spill] sm:$0xff] %v2088_v20  ;;  %v2092_v30 = vsel %vm2027_vm15, %v543_v62, 0.0  ;;  %v2096_v31 = vsel %vm2040_vm13, %v540_v52, 0.0  ;;  %v2103_v48 = vsub.s32 0, %v2034_v50 }
 0x104   :  { %v2052_v33 = vpop.eup %1427  ;;  %v314_v63 = vadd.f32 %v2031_v61, %v2007_v40  ;;  %2682 = vst [vmem:[#allocation6_spill] sm:$0xff] %v2092_v30  ;;  %2683 = vst [vmem:[#allocation7_spill] sm:$0xff] %v2096_v31  ;;  %vm737_vm2 = vcmp.lt.s32.totalorder %v1763_v7, 127  ;;  %v2111_v42 = vsub.s32 1, %v2034_v50  ;;  %v2114_v59 = vsub.s32 2, %v2034_v50 }
 0x105   :  { %2680 = vst [vmem:[#allocation4_spill] sm:$0xff] %v2052_v33  ;;  %v2068_v9 = vpop.eup %1429  ;;  %v299_v2 = vrot.slane %v298_v49, 4  ;;  %v315_v44 = vsel %vm224_vm1, %v2052_v33, 0.0  ;;  %v619_v52 = vsel %vm616_vm12, %v1821_v57, %v1823_v58  ;;  %v618_v62 = vsel %vm616_vm12, %v1823_v58, %v1841_v35 }
 0x106   :  { %v2084_v23 = vpop.eup %1431  ;;  %v316_v29 = vadd.f32 %v315_v44, %v314_v63  ;;  %v2131_v33 = vsub.s32 3, %v2034_v50  ;;  %v617_v58 = vsel %vm616_vm12, %v1841_v35, %v1843_v36  ;;  %v2149_v20 = vsel %vm376_vm3, %v619_v52, 0.0 }
 0x107   :  { %v2098_v45 = vpop.eup %1433  ;;  %v300_v46 = vadd.f32 %v299_v2, %v298_v49  ;;  %v305_v47 = vadd.f32 %v2084_v23, %v2068_v9  ;;  %vm2686_vm5 = vcmp.ge.s32.totalorder %v1858_v26, 1  ;;  %vm2688_vm7 = vcmp.ge.s32.totalorder %v1880_v5, 1 }
 0x108   :  { %2684 = vst [vmem:[#allocation8_spill] sm:$0xff] %v2098_v45  ;;  %v2106_v37 = vpop.eup %1435  ;;  %v317_v51 = vrot.slane %v316_v29, 4  ;;  %v306_v43 = vsel %vm224_vm1, %v2098_v45, 0.0  ;;  %v740_v52 = vsel %vm737_vm2, %v1848_v0, %v1850_v4  ;;  %vm371_vm8 = vcmp.lt.s32.totalorder %v1874_v54, 15 }
 0x109   :  { %v2116_v55 = vpop.eup %1437  ;;  %v301_v49 = vrot.slane %v300_v46, 2  ;;  %v307_v3 = vadd.f32 %v306_v43, %v305_v47  ;;  %v620_v47 = vsel %vm616_vm12, %v1843_v36, %v1821_v57  ;;  %v2153_v57 = vsel %vm2686_vm5, %v618_v62, 0.0  ;;  %vm2696_vm5 = vmmov %vm2688_vm7 }
 0x10a   :  { %v2126_v63 = vpop.eup %1439  ;;  %v318_v2 = vadd.f32 %v317_v51, %v316_v29  ;;  %v323_v44 = vadd.f32 %v2116_v55, %v2106_v37  ;;  %v2143_v29 = vpop.permute.xlu1 %883  ;;  %vm810_vm10 = vcmp.lt.s32.totalorder %v1763_v7, 113  ;;  %vm372_vm9 = vcmp.lt.s32.totalorder %v1845_v53, 15 }
 0x10b   :  { %2685 = vst [vmem:[#allocation9_spill] sm:$0xff] %v2126_v63  ;;  %v302_v43 = vadd.f32 %v301_v49, %v300_v46  ;;  %v308_v45 = vrot.slane %v307_v3, 4  ;;  %v324_v15 = vsel %vm224_vm1, %v2126_v63, 0.0  ;;  %v2145_v51 = vpop.permute.xlu0 %885  ;;  %v2156_v63 = vsub.s32 4, %v2034_v50 }
 0x10c   :  { %v319_v13 = vrot.slane %v318_v2, 2  ;;  %v325_v31 = vadd.f32 %v324_v15, %v323_v44  ;;  %vm2687_vm1 = vcmp.ge.s32.totalorder %v1876_v60, 1  ;;  %v2164_v15 = vsel %vm2688_vm7, %v617_v58, 0.0 }
 0x10d   :  { %v303_v46 = vrot.slane %v302_v43, 1  ;;  %v309_v49 = vadd.f32 %v308_v45, %v307_v3  ;;  %v2160_v35 = vsel %vm2687_vm1, %v620_v47, 0.0  ;;  %2689 = vst [vmem:[#allocation10_spill] sm:$0xff] %v2164_v15  ;;  %v2171_v3 = vsub.s32 5, %v2034_v50  ;;  %vm2691_vm14 = vmmov %vm2687_vm1 }
 0x10e   :  { %v320_v36 = vadd.f32 %v319_v13, %v318_v2  ;;  %v326_v30 = vrot.slane %v325_v31, 4  ;;  %v739_v13 = vsel %vm737_vm2, %v1850_v4, %v1869_v39  ;;  %v738_v47 = vsel %vm737_vm2, %v1869_v39, %v1871_v16  ;;  %v953_v58 = vpop.permute.xlu1 %952  ;;  %vm2200_vm15 = vmand %vm371_vm8, %vm2691_vm14 }
 0x10f   :  { %v304_v62 = vadd.f32 %v303_v46, %v302_v43  ;;  %v310_v45 = vrot.slane %v309_v49, 2  ;;  %2690 = vst [vmem:[#allocation11_spill] sm:$0xff] %v2171_v3  ;;  %v955_v46 = vpop.permute.xlu0 %954  ;;  %v741_v4 = vsel %vm737_vm2, %v1871_v16, %v1848_v0  ;;  %vm374_vm12 = vcmp.lt.s32.totalorder %v1878_v38, 15  ;;  %vm2217_vm2 = vmand %vm372_vm9, %vm376_vm3 }
 0x110   :  { %v321_v2 = vrot.slane %v320_v36, 1  ;;  %v327_v44 = vadd.f32 %v326_v30, %v325_v31  ;;  %v2190_v30 = vsub.s32 6, %v2034_v50  ;;  %v2194_v31 = vsel %vm379_vm6, %v740_v52, 0.0  ;;  %vm2233_vm1 = vmand %vm374_vm12, %vm2696_vm5 }
 0x111   :  { %1441 = vrcp.f32 %v304_v62  ;;  %v311_v43 = vadd.f32 %v310_v45, %v309_v49  ;;  %vm373_vm13 = vcmp.lt.s32.totalorder %v1855_v14, 15  ;;  %v2207_v16 = vsel %vm380_vm0, %v739_v13, 0.0 }
 0x112   :  { %v322_v3 = vadd.f32 %v321_v2, %v320_v36  ;;  %v328_v15 = vrot.slane %v327_v44, 2  ;;  %v813_v36 = vsel %vm810_vm10, %v1890_v6, %v1892_v56  ;;  %v2227_v45 = vsel %vm382_vm4, %v741_v4, 0.0 }
 0x113   :  { %v312_v39 = vrot.slane %v311_v43, 1  ;;  %vm887_vm3 = vcmp.lt.s32.totalorder %v1763_v7, 112  ;;  %v812_v2 = vsel %vm810_vm10, %v1892_v56, %v1960_v19  ;;  %vm2699_vm7 = vcmp.ge.s32.totalorder %v1858_v26, 1 }
 0x114   :  { %1443 = vrcp.f32 %v322_v3  ;;  %v329_v0 = vadd.f32 %v328_v15, %v327_v44  ;;  %v2223_v15 = vsel %vm381_vm11, %v738_v47, 0.0  ;;  %vm2246_vm14 = vmand %vm373_vm13, %vm2699_vm7  ;;  %v814_v47 = vsel %vm810_vm10, %v1962_v25, %v1890_v6 }
 0x115   :  { %v313_v62 = vadd.f32 %v312_v39, %v311_v43  ;;  %vm960_vm5 = vcmp.lt.s32.totalorder %v1763_v7, 111  ;;  %v2256_v43 = vsub.s32 7, %v2034_v50  ;;  %v2260_v56 = vsel %vm2200_vm15, %v813_v36, 0.0  ;;  %vm2270_vm7 = vmand %vm371_vm8, %vm379_vm6  ;;  %v957_v39 = vpop.permute.xlu1 %956  ;;  %v959_v50 = vpop.permute.xlu0 %958 }
 0x116   :  { %v330_v13 = vrot.slane %v329_v0, 1  ;;  %v811_v4 = vsel %vm810_vm10, %v1960_v19, %v1962_v25  ;;  %v890_v49 = vsel %vm887_vm3, %v2080_v21, %v2082_v22  ;;  %v889_v19 = vsel %vm887_vm3, %v2082_v22, %v2143_v29  ;;  %vm2290_vm6 = vmand %vm372_vm9, %vm380_vm0 }
 0x117   :  { %1445 = vrcp.f32 %v313_v62  ;;  %v888_v60 = vsel %vm887_vm3, %v2143_v29, %v2145_v51  ;;  %v2300_v22 = vsel %vm2233_vm1, %v814_v47, 0.0  ;;  %v891_v29 = vsel %vm887_vm3, %v2145_v51, %v2080_v21  ;;  %vm2312_vm0 = vmand %vm373_vm13, %vm381_vm11 }
 0x118   :  { %v331_v62 = vadd.f32 %v330_v13, %v329_v0  ;;  %v2296_v0 = vsel %vm2217_vm2, %v812_v2, 0.0  ;;  %v963_v1 = vsel %vm960_vm5, %v953_v58, %v955_v46  ;;  %v962_v52 = vsel %vm960_vm5, %v955_v46, %v957_v39  ;;  %vm968_vm10 = vmand %vm374_vm12, %vm382_vm4 }
 0x119   :  { %v961_v21 = vsel %vm960_vm5, %v957_v39, %v959_v50  ;;  %v964_v26 = vsel %vm960_vm5, %v959_v50, %v953_v58  ;;  %v2328_v3 = vsel %vm2246_vm14, %v811_v4, 0.0  ;;  %v2332_v13 = vsel %vm371_vm8, %v890_v49, 0.0 }
 0x11a   :  { %1447 = vrcp.f32 %v331_v62  ;;  %v2336_v5 = vsel %vm372_vm9, %v889_v19, 0.0  ;;  %v2340_v46 = vsel %vm373_vm13, %v888_v60, 0.0  ;;  %v2353_v54 = vsel %vm374_vm12, %v891_v29, 0.0 }
 0x11b   :  { %v1442_v51 = vpop.eup %1441  ;;  %v2357_v53 = vsel %vm2270_vm7, %v963_v1, 0.0  ;;  %v2361_v14 = vsel %vm2290_vm6, %v962_v52, 0.0  ;;  %vm1041_vm11 = vcmask 1043456  }
 0x11c   :  { %v2343_v7 = vmul.f32 %v1442_v51, %v1949_v17  ;;  %v2346_v58 = vmul.f32 %v1442_v51, %v1964_v34  ;;  %v2349_v2 = vmul.f32 %v1442_v51, %v1983_v32  ;;  %2708 = vst [vmem:[#allocation12_spill] sm:$0xff] %v2357_v53  ;;  %2709 = vst [vmem:[#allocation13_spill] sm:$0xff] %v2361_v14  ;;  %v2365_v17 = vsel %vm2312_vm0, %v961_v21, 0.0 }
 0x11d   :  { %2710 = vst [vmem:[#allocation14_spill] sm:$0xff] %v2365_v17  ;;  %v2367_v34 = vsel %vm968_vm10, %v964_v26, 0.0 }
 0x11e   :  { %2711 = vst [vmem:[#allocation15_spill] sm:$0xff] %v2367_v34  ;;  %v2369_v32 = vpop.eup %1443  ;;  %v421_v38 = vrot.slane %v2343_v7, %v2103_v48  ;;  %v441_v44 = vrot.slane %v2346_v58, %v2111_v42  ;;  %v486_v47 = vrot.slane %v2343_v7, %v2111_v42  ;;  %v510_v4 = vrot.slane %v2346_v58, %v2114_v59 }
 0x11f   :  { %v2381_v6 = vmul.f32 %v2369_v32, %v2007_v40  ;;  %v2385_v39 = vmul.f32 %v2369_v32, %v2031_v61  ;;  %v563_v50 = vrot.slane %v2343_v7, %v2114_v59  ;;  %v587_v62 = vrot.slane %v2346_v58, %v2131_v33 }
 0x120   :  { %v434_v49 = vmul.f32 %v421_v38, %v1968_v27  ;;  %v454_v19 = vmul.f32 %v441_v44, %v1968_v27  ;;  %v499_v60 = vmul.f32 %v486_v47, %v2066_v41  ;;  %v523_v25 = vmul.f32 %v510_v4, %v2066_v41 }
 0x121   :  { %v2395_v40 = vpop.eup %1445  ;;  %v429_v61 = vrot.slane %v2381_v6, %v2103_v48  ;;  %v449_v29 = vrot.slane %v2385_v39, %v2111_v42  ;;  %v494_v1 = vrot.slane %v2381_v6, %v2111_v42  ;;  %v518_v36 = vrot.slane %v2385_v39, %v2114_v59 }
 0x122   :  { %v2407_v27 = vmul.f32 %v2395_v40, %v2068_v9  ;;  %v2411_v41 = vmul.f32 %v2395_v40, %v2084_v23  ;;  %v503_v52 = vadd.f32 %v499_v60, %v434_v49  ;;  %v527_v21 = vadd.f32 %v523_v25, %v454_v19 }
 0x123   :  { %v436_v26 = vmul.f32 %v429_v61, %v1957_v24  ;;  %v456_v51 = vmul.f32 %v449_v29, %v1957_v24  ;;  %v501_v38 = vmul.f32 %v494_v1, %v2062_v8  ;;  %v525_v44 = vmul.f32 %v518_v36, %v2062_v8 }
 0x124   :  { %v2417_v47 = vpop.eup %1447  ;;  %v425_v9 = vrot.slane %v2407_v27, %v2103_v48  ;;  %v445_v4 = vrot.slane %v2411_v41, %v2111_v42  ;;  %v490_v23 = vrot.slane %v2407_v27, %v2111_v42  ;;  %v514_v49 = vrot.slane %v2411_v41, %v2114_v59 }
 0x125   :  { %v2429_v24 = vmul.f32 %v2417_v47, %v2106_v37  ;;  %v2433_v8 = vmul.f32 %v2417_v47, %v2116_v55  ;;  %v505_v19 = vadd.f32 %v501_v38, %v436_v26  ;;  %v529_v60 = vadd.f32 %v525_v44, %v456_v51 }
 0x126   :  { %v435_v25 = vmul.f32 %v425_v9, %v1953_v12  ;;  %v455_v61 = vmul.f32 %v445_v4, %v1953_v12  ;;  %v500_v29 = vmul.f32 %v490_v23, %v2058_v18  ;;  %v524_v1 = vmul.f32 %v514_v49, %v2058_v18 }
 0x127   :  { %v433_v36 = vrot.slane %v2429_v24, %v2103_v48  ;;  %v453_v37 = vrot.slane %v2433_v8, %v2111_v42  ;;  %v498_v55 = vrot.slane %v2429_v24, %v2111_v42  ;;  %v522_v26 = vrot.slane %v2433_v8, %v2114_v59 }
 0x128   :  { %v504_v51 = vadd.f32 %v500_v29, %v435_v25  ;;  %v528_v38 = vadd.f32 %v524_v1, %v455_v61  ;;  %v567_v12 = vrot.slane %v2407_v27, %v2114_v59  ;;  %v591_v18 = vrot.slane %v2411_v41, %v2131_v33 }
 0x129   :  { %v437_v44 = vmul.f32 %v433_v36, %v1972_v28  ;;  %v457_v9 = vmul.f32 %v453_v37, %v1972_v28  ;;  %v502_v4 = vmul.f32 %v498_v55, %v2074_v10  ;;  %v526_v23 = vmul.f32 %v522_v26, %v2074_v10  ;;  %v2712_v28 = vld [vmem:[#allocation6_spill] sm:$0xff]  ;;  %v2713_v10 = vld [vmem:[#allocation5_spill] sm:$0xff] }
 0x12a   :  { %v577_v49 = vmul.f32 %v567_v12, %v2078_v11  ;;  %v601_v34 = vmul.f32 %v591_v18, %v2078_v11  ;;  %v571_v25 = vrot.slane %v2381_v6, %v2114_v59  ;;  %v595_v61 = vrot.slane %v2385_v39, %v2131_v33  ;;  %v2714_v11 = vld [vmem:[#allocation7_spill] sm:$0xff] }
 0x12b   :  { %v506_v29 = vadd.f32 %v502_v4, %v437_v44  ;;  %v530_v1 = vadd.f32 %v526_v23, %v457_v9  ;;  %v575_v36 = vrot.slane %v2429_v24, %v2114_v59  ;;  %v576_v37 = vmul.f32 %v563_v50, %v2712_v28 }
 0x12c   :  { %v581_v55 = vadd.f32 %v577_v49, %v504_v51  ;;  %v605_v17 = vadd.f32 %v601_v34, %v528_v38  ;;  %v578_v26 = vmul.f32 %v571_v25, %v2713_v10  ;;  %v602_v12 = vmul.f32 %v595_v61, %v2713_v10 }
 0x12d   :  { %v579_v18 = vmul.f32 %v575_v36, %v2714_v11  ;;  %v580_v14 = vadd.f32 %v576_v37, %v503_v52  ;;  %v599_v53 = vrot.slane %v2433_v8, %v2131_v33  ;;  %v600_v44 = vmul.f32 %v587_v62, %v2712_v28  ;;  %v2715_v37 = vld [vmem:[#allocation10_spill] sm:$0xff] }
 0x12e   :  { %v582_v9 = vadd.f32 %v578_v26, %v505_v19  ;;  %v606_v4 = vadd.f32 %v602_v12, %v529_v60  ;;  %v640_v59 = vrot.slane %v2407_v27, %v2131_v33  ;;  %v664_v34 = vrot.slane %v2411_v41, %v2156_v63 }
 0x12f   :  { %v583_v50 = vadd.f32 %v579_v18, %v506_v29  ;;  %v603_v51 = vmul.f32 %v599_v53, %v2714_v11  ;;  %v604_v38 = vadd.f32 %v600_v44, %v527_v21  ;;  %v644_v52 = vrot.slane %v2381_v6, %v2131_v33  ;;  %v2716_v18 = vld [vmem:[#allocation11_spill] sm:$0xff] }
 0x130   :  { %v650_v23 = vmul.f32 %v640_v59, %v2149_v20  ;;  %v674_v49 = vmul.f32 %v664_v34, %v2149_v20  ;;  %v668_v62 = vrot.slane %v2385_v39, %v2156_v63  ;;  %v636_v19 = vrot.slane %v2343_v7, %v2131_v33  ;;  %v1449_v59 = vld [vmem:[%s2639_s1] sm:$0xff] }
 0x131   :  { %v607_v60 = vadd.f32 %v603_v51, %v530_v1  ;;  %v651_v25 = vmul.f32 %v644_v52, %v2153_v57  ;;  %v648_v53 = vrot.slane %v2429_v24, %v2131_v33  ;;  %v660_v21 = vrot.slane %v2346_v58, %v2156_v63 }
 0x132   :  { %v654_v61 = vadd.f32 %v650_v23, %v581_v55  ;;  %v678_v29 = vadd.f32 %v674_v49, %v605_v17  ;;  %v675_v36 = vmul.f32 %v668_v62, %v2153_v57  ;;  %v649_v20 = vmul.f32 %v636_v19, %v2160_v35  ;;  %v2717_v19 = vld [vmem:[#allocation2_spill] sm:$0xff] }
 0x133   :  { %v655_v28 = vadd.f32 %v651_v25, %v582_v9  ;;  %v652_v10 = vmul.f32 %v648_v53, %v2715_v37  ;;  %v672_v1 = vrot.slane %v2433_v8, %v2156_v63  ;;  %v673_v26 = vmul.f32 %v660_v21, %v2160_v35 }
 0x134   :  { %v679_v12 = vadd.f32 %v675_v36, %v606_v4  ;;  %v653_v11 = vadd.f32 %v649_v20, %v580_v14  ;;  %v684_v33 = vrot.slane %v2343_v7, %v2156_v63  ;;  %v708_v17 = vrot.slane %v2346_v58, %v2716_v18 }
 0x135   :  { %v656_v55 = vadd.f32 %v652_v10, %v583_v50  ;;  %v676_v57 = vmul.f32 %v672_v1, %v2715_v37  ;;  %v677_v44 = vadd.f32 %v673_v26, %v604_v38  ;;  %v757_v9 = vrot.slane %v2343_v7, %v2716_v18 }
 0x136   :  { %v697_v35 = vmul.f32 %v1449_v59, %v684_v33  ;;  %v721_v4 = vmul.f32 %v1449_v59, %v708_v17  ;;  %v781_v14 = vrot.slane %v2346_v58, %v2190_v30  ;;  %v688_v34 = vrot.slane %v2407_v27, %v2156_v63 }
 0x137   :  { %v680_v51 = vadd.f32 %v676_v57, %v607_v60  ;;  %v770_v50 = vmul.f32 %v757_v9, %v2194_v31  ;;  %v712_v38 = vrot.slane %v2411_v41, %v2716_v18  ;;  %v761_v52 = vrot.slane %v2407_v27, %v2716_v18 }
 0x138   :  { %v701_v23 = vadd.f32 %v697_v35, %v653_v11  ;;  %v725_v49 = vadd.f32 %v721_v4, %v677_v44  ;;  %v794_v62 = vmul.f32 %v781_v14, %v2194_v31  ;;  %v698_v25 = vmul.f32 %v688_v34, %v2717_v19  ;;  %v1450_v11 = vld [vmem:[%s2639_s1 + $0x8] sm:$0xff] }
 0x139   :  { %v722_v53 = vmul.f32 %v712_v38, %v2717_v19  ;;  %v771_v21 = vmul.f32 %v761_v52, %v2207_v16  ;;  %v785_v60 = vrot.slane %v2411_v41, %v2190_v30  ;;  %v692_v36 = vrot.slane %v2381_v6, %v2156_v63  ;;  %v2718_v44 = vld [vmem:[#allocation3_spill] sm:$0xff] }
 0x13a   :  { %v774_v20 = vadd.f32 %v770_v50, %v701_v23  ;;  %v798_v37 = vadd.f32 %v794_v62, %v725_v49  ;;  %v702_v10 = vadd.f32 %v698_v25, %v654_v61  ;;  %v696_v1 = vrot.slane %v2429_v24, %v2156_v63 }
 0x13b   :  { %v726_v26 = vadd.f32 %v722_v53, %v678_v29  ;;  %v795_v31 = vmul.f32 %v785_v60, %v2207_v16  ;;  %v699_v33 = vmul.f32 %v1450_v11, %v692_v36  ;;  %v716_v17 = vrot.slane %v2385_v39, %v2716_v18 }
 0x13c   :  { %v775_v57 = vadd.f32 %v771_v21, %v702_v10  ;;  %v700_v9 = vmul.f32 %v696_v1, %v2718_v44  ;;  %v720_v61 = vrot.slane %v2433_v8, %v2716_v18  ;;  %v765_v63 = vrot.slane %v2381_v6, %v2716_v18 }
 0x13d   :  { %v799_v29 = vadd.f32 %v795_v31, %v726_v26  ;;  %v703_v59 = vadd.f32 %v699_v33, %v655_v28  ;;  %v723_v16 = vmul.f32 %v1450_v11, %v716_v17  ;;  %v769_v35 = vrot.slane %v2429_v24, %v2716_v18 }
 0x13e   :  { %v704_v4 = vadd.f32 %v700_v9, %v656_v55  ;;  %v724_v14 = vmul.f32 %v720_v61, %v2718_v44  ;;  %v772_v34 = vmul.f32 %v765_v63, %v2223_v15  ;;  %v789_v50 = vrot.slane %v2385_v39, %v2190_v30 }
 0x13f   :  { %v727_v38 = vadd.f32 %v723_v16, %v679_v12  ;;  %v773_v52 = vmul.f32 %v769_v35, %v2227_v45  ;;  %v793_v23 = vrot.slane %v2433_v8, %v2190_v30  ;;  %v834_v28 = vrot.slane %v2343_v7, %v2190_v30 }
 0x140   :  { %v728_v49 = vadd.f32 %v724_v14, %v680_v51  ;;  %v776_v62 = vadd.f32 %v772_v34, %v703_v59  ;;  %v796_v18 = vmul.f32 %v789_v50, %v2223_v15  ;;  %v858_v55 = vrot.slane %v2346_v58, %v2256_v43  ;;  %v2719_v59 = vld [vmem:[#allocation8_spill] sm:$0xff] }
 0x141   :  { %v777_v19 = vadd.f32 %v773_v52, %v704_v4  ;;  %v797_v25 = vmul.f32 %v793_v23, %v2227_v45  ;;  %v847_v12 = vmul.f32 %v834_v28, %v2260_v56  ;;  %v838_v53 = vrot.slane %v2407_v27, %v2190_v30 }
 0x142   :  { %v800_v21 = vadd.f32 %v796_v18, %v727_v38  ;;  %v871_v60 = vmul.f32 %v858_v55, %v2260_v56  ;;  %v862_v51 = vrot.slane %v2411_v41, %v2256_v43  ;;  %v842_v15 = vrot.slane %v2381_v6, %v2190_v30  ;;  %v2721_v38 = vld [vmem:[#allocation9_spill] sm:$0xff] }
 0x143   :  { %v801_v36 = vadd.f32 %v797_v25, %v728_v49  ;;  %v851_v10 = vadd.f32 %v847_v12, %v774_v20  ;;  %v848_v1 = vmul.f32 %v838_v53, %v2296_v0  ;;  %v846_v45 = vrot.slane %v2429_v24, %v2190_v30 }
 0x144   :  { %v875_v26 = vadd.f32 %v871_v60, %v798_v37  ;;  %v872_v31 = vmul.f32 %v862_v51, %v2296_v0  ;;  %v849_v11 = vmul.f32 %v842_v15, %v2328_v3  ;;  %v866_v56 = vrot.slane %v2385_v39, %v2256_v43 }
 0x145   :  { %v852_v33 = vadd.f32 %v848_v1, %v775_v57  ;;  %v850_v17 = vmul.f32 %v846_v45, %v2300_v22  ;;  %v870_v44 = vrot.slane %v2433_v8, %v2256_v43  ;;  %v907_v20 = vrot.slane %v2343_v7, %v2256_v43 }
 0x146   :  { %v876_v9 = vadd.f32 %v872_v31, %v799_v29  ;;  %v853_v61 = vadd.f32 %v849_v11, %v776_v62  ;;  %v873_v30 = vmul.f32 %v866_v56, %v2328_v3  ;;  %v931_v0 = vrot.slane %v2349_v2, %v2103_v48  ;;  %v2720_v29 = vld [vmem:[#allocation4_spill] sm:$0xff]  ;;  %v2724_v11 = vld [vmem:[#allocation14_spill] sm:$0xff] }
 0x147   :  { %v854_v37 = vadd.f32 %v850_v17, %v777_v19  ;;  %v874_v63 = vmul.f32 %v870_v44, %v2300_v22  ;;  %v920_v57 = vmul.f32 %v907_v20, %v2332_v13  ;;  %v345_v16 = vmul.f32 %v2395_v40, %v2719_v59 }
 0x148   :  { %v877_v35 = vadd.f32 %v873_v30, %v800_v21  ;;  %v944_v4 = vmul.f32 %v931_v0, %v2332_v13  ;;  %v911_v7 = vrot.slane %v2407_v27, %v2256_v43  ;;  %v346_v3 = vmul.f32 %v2369_v32, %v2720_v29 }
 0x149   :  { %v878_v14 = vadd.f32 %v874_v63, %v801_v36  ;;  %v924_v34 = vadd.f32 %v920_v57, %v851_v10  ;;  %v935_v50 = vrot.slane %v345_v16, %v2103_v48  ;;  %v347_v22 = vmul.f32 %v2417_v47, %v2721_v38  ;;  %v2723_v36 = vld [vmem:[#allocation13_spill] sm:$0xff] }
 0x14a   :  { %v948_v52 = vadd.f32 %v944_v4, %v875_v26  ;;  %v921_v23 = vmul.f32 %v911_v7, %v2336_v5  ;;  %v915_v40 = vrot.slane %v2381_v6, %v2256_v43  ;;  %v919_v13 = vrot.slane %v2429_v24, %v2256_v43  ;;  %v2722_v24 = vld [vmem:[#allocation12_spill] sm:$0xff] }
 0x14b   :  { %v945_v27 = vmul.f32 %v935_v50, %v2336_v5  ;;  %v939_v32 = vrot.slane %v346_v3, %v2103_v48  ;;  %v943_v28 = vrot.slane %v347_v22, %v2103_v48  ;;  %v984_v49 = vrot.slane %v2346_v58, %v2103_v48 }
 0x14c   :  { %v925_v62 = vadd.f32 %v921_v23, %v852_v33  ;;  %v922_v47 = vmul.f32 %v915_v40, %v2340_v46  ;;  %v923_v18 = vmul.f32 %v919_v13, %v2353_v54  ;;  %v1008_v6 = vrot.slane %v2349_v2, %v2111_v42  ;;  %v2725_v33 = vld [vmem:[#allocation15_spill] sm:$0xff] }
 0x14d   :  { %v949_v55 = vadd.f32 %v945_v27, %v876_v9  ;;  %v946_v43 = vmul.f32 %v939_v32, %v2340_v46  ;;  %v947_v5 = vmul.f32 %v943_v28, %v2353_v54  ;;  %v997_v19 = vmul.f32 %v984_v49, %v2722_v24 }
 0x14e   :  { %v926_v25 = vadd.f32 %v922_v47, %v853_v61  ;;  %v927_v12 = vadd.f32 %v923_v18, %v854_v37  ;;  %v1021_v53 = vmul.f32 %v1008_v6, %v2722_v24  ;;  %v988_v58 = vrot.slane %v2411_v41, %v2103_v48 }
 0x14f   :  { %v950_v21 = vadd.f32 %v946_v43, %v877_v35  ;;  %v951_v60 = vadd.f32 %v947_v5, %v878_v14  ;;  %v1001_v51 = vadd.f32 %v997_v19, %v924_v34  ;;  %v1012_v15 = vrot.slane %v345_v16, %v2111_v42 }
 0x150   :  { %v1025_v2 = vadd.f32 %v1021_v53, %v948_v52  ;;  %v998_v10 = vmul.f32 %v988_v58, %v2723_v36  ;;  %v992_v46 = vrot.slane %v2385_v39, %v2103_v48  ;;  %v996_v54 = vrot.slane %v2433_v8, %v2103_v48 }
 0x151   :  { %v1022_v1 = vmul.f32 %v1012_v15, %v2723_v36  ;;  %v1016_v45 = vrot.slane %v346_v3, %v2111_v42  ;;  %v1020_v41 = vrot.slane %v347_v22, %v2111_v42 }
 0x152   :  { %v1033_v26 = vrot.slane %v1025_v2, 4  ;;  %v1002_v31 = vadd.f32 %v998_v10, %v925_v62  ;;  %v999_v56 = vmul.f32 %v992_v46, %v2724_v11  ;;  %v1000_v17 = vmul.f32 %v996_v54, %v2725_v33 }
 0x153   :  { %v1026_v44 = vadd.f32 %v1022_v1, %v949_v55  ;;  %v1023_v20 = vmul.f32 %v1016_v45, %v2724_v11  ;;  %v1024_v39 = vmul.f32 %v1020_v41, %v2725_v33 }
 0x154   :  { %v1003_v9 = vadd.f32 %v999_v56, %v926_v25  ;;  %v1004_v48 = vadd.f32 %v1000_v17, %v927_v12  ;;  %v1042_v8 = vsel %vm1041_vm11, %v1001_v51, %v1033_v26 }
 0x155   :  { %v1027_v61 = vadd.f32 %v1023_v20, %v950_v21  ;;  %v1028_v30 = vadd.f32 %v1024_v39, %v951_v60  ;;  %v1034_v0 = vrot.slane %v1026_v44, 4  ;;  %1046 = vst [vmem:[%s2641_s5] sm:$0xff] %v1042_v8 }
 0x157   :  { %v1035_v42 = vrot.slane %v1027_v61, 4  ;;  %v1043_v37 = vsel %vm1041_vm11, %v1002_v31, %v1034_v0  ;;  %v1036_v63 = vrot.slane %v1028_v30, 4 }
 0x158   :  { %1047 = vst [vmem:[%s2641_s5 + $0x8] sm:$0xff] %v1043_v37  ;;  %1178 = vmatprep.mubr.f32.mxu0 %v1043_v37 }
 0x159   :  { %v1045_v57 = vsel %vm1041_vm11, %v1004_v48, %v1036_v63  ;;  %1179 = vmatmul.mubr.f32.vlgmr.msra.gmra.mrb[6].mxu0 %v1042_v8  ;;  %v1044_v59 = vsel %vm1041_vm11, %v1003_v9, %v1035_v42 }
 0x15a   :  { %1049 = vst [vmem:[%s2641_s5 + $0x18] sm:$0xff] %v1045_v57  ;;  %1248 = vmatprep.mubr.f32.mxu1 %v1045_v57  ;;  %1048 = vst [vmem:[%s2641_s5 + $0x10] sm:$0xff] %v1044_v59 }
 0x15b   :  { %1249 = vmatmul.mubr.f32.vlgmr.msra.gmra.mrb[6].mxu1 %v1044_v59 }
 0x22c   :  { %v1301_v16 = vpop.f32.mrb[6].mxu0 }
 0x22d   :  { %v1302_v35 = vpop.f32.mrb[7].mxu0 }
 0x22e   :  { %v1336_v4 = vpop.f32.mrb[6].mxu1  ;;  %v1303_v7 = vadd.f32 %v1302_v35, %v1301_v16 }
 0x22f   :  { %v1337_v29 = vpop.f32.mrb[7].mxu1 }
 0x230   :  { %v1338_v3 = vadd.f32 %v1337_v29, %v1336_v4 }
 0x232   :  { %v1251_v14 = vadd.f32 %v1338_v3, %v1303_v7 }
 0x234   :  { %1254 = vst [vmem:[%s2642_s6] sm:$0xff] %v1251_v14 }

</bundles_post_ra>
